<compile_context>
chip_gen: v5e
topology: v5e:2x2
jax: 0.10.0
libtpu: 0.0.40
codegen_flags: <defaults>
</compile_context>

<pallas_src>
import math
import numpy as np

import jax
import jax.numpy as jnp
from jax.experimental import pallas as pl
from jax.experimental.pallas import tpu as pltpu


_BLOCK_BUDGET_BYTES = 20 * 1024 * 1024   # budget for (double-buffered) blocks
_VMEM_LIMIT_BYTES = 32 * 1024 * 1024     # well under v7x's 64 MiB physical VMEM


# ----------------------------------------------------------------------------
# DFT matrix / coefficient construction (deterministic — module has no weights)
# ----------------------------------------------------------------------------
def _freq_fold(l_in, n_out, l_high):
    """Stored coefficient index -> actual DFT frequency (pad/cat folded in)."""
    j = np.arange(l_in)
    return np.where(j < l_high, j, j + (n_out - l_in)).astype(np.float64)


def _make_hw_matrix(nh, nw, lh, lw, lh_high):
    """Kronecker-fused inverse-DFT(h) x inverse-rDFT(w) matrix.

    Shape (2*lh*lw, 2*nh*nw); rows ordered (kh, kw, re/im) to match the
    interleaved input layout, columns ordered (re/im, h', w').  Ortho scaling
    and the Hermitian w-weights (1 at DC/Nyquist, 2 elsewhere) are folded in;
    the final real part is taken by the d stage.
    """
    fh = _freq_fold(lh, nh, lh_high)
    th = 2.0 * np.pi * np.outer(fh, np.arange(nh)) / nh                # (lh, nh)
    tw = 2.0 * np.pi * np.outer(np.arange(lw), np.arange(nw)) / nw     # (lw, nw)
    phi = th[:, None, :, None] + tw[None, :, None, :]                  # (lh,lw,nh,nw)
    wgt = np.full((lw,), 2.0)
    wgt[0] = 1.0
    if nw % 2 == 0 and lw > nw // 2:
        wgt[nw // 2] = 1.0
    g = (wgt / math.sqrt(nh * nw))[None, :, None, None]
    c = np.cos(phi) * g
    s = np.sin(phi) * g
    m = np.empty((lh, lw, 2, 2, nh, nw), np.float64)
    m[:, :, 0, 0] = c        # re_in -> re_out
    m[:, :, 1, 0] = -s       # im_in -> re_out
    m[:, :, 0, 1] = s        # re_in -> im_out
    m[:, :, 1, 1] = c        # im_in -> im_out
    return m.reshape(lh * lw * 2, 2 * nh * nw)


def _make_d_matrix(nd, ld, ld_high):
    """Real-output inverse-DFT(d) coefficients applied to the complex hw output.

    Shape (nd, 2*ld); columns ordered (kd, re/im).  y = Re{sum U e^{i th}}/sqrt(nd).
    """
    fd = _freq_fold(ld, nd, ld_high)
    th = 2.0 * np.pi * np.outer(np.arange(nd), fd) / nd                # (nd, ld)
    m = np.empty((nd, ld, 2), np.float64)
    m[:, :, 0] = np.cos(th) / math.sqrt(nd)
    m[:, :, 1] = -np.sin(th) / math.sqrt(nd)
    return m.reshape(nd, 2 * ld)


# ----------------------------------------------------------------------------
# Pallas kernels
# ----------------------------------------------------------------------------
def _hw_matmul_kernel(z_ref, w_ref, o_ref):
    # bf16 operands, f32 accumulation: single MXU pass; f32 output (lane dense).
    o_ref[...] = jnp.dot(z_ref[...], w_ref[...],
                         preferred_element_type=jnp.float32)


def _build_d_stage_kernel(wd):
    """Unrolled VPU broadcast-FMA kernel: y[b, d, :] = sum_k wd[d, k] * u[b, k, :].

    Coefficients are baked in as immediates (tiny, grid-invariant matrix), so
    there is no weight DMA, no MXU starvation, and the math stays f32.
    """
    nd, k2 = wd.shape
    coef = [[float(wd[d, k]) for k in range(k2)] for d in range(nd)]

    def kernel(u_ref, o_ref):
        for d in range(nd):
            acc = coef[d][0] * u_ref[:, 0, :]
            for k in range(1, k2):
                acc = acc + coef[d][k] * u_ref[:, k, :]
            o_ref[:, d, :] = acc

    return kernel


# ----------------------------------------------------------------------------
# Module
# ----------------------------------------------------------------------------
class InverseRealFFT3:
    """JAX/Pallas equivalent of makani InverseRealFFT3 (no learnable params)."""

    def __init__(self, nd, nh, nw, ldmax=None, lhmax=None, lwmax=None):
        self.nd = nd
        self.nh = nh
        self.nw = nw
        self.ldmax = min(ldmax or self.nd, self.nd)
        self.lhmax = min(lhmax or self.nh, self.nh)
        self.lwmax = min(lwmax or self.nw // 2 + 1, self.nw // 2 + 1)
        self.ldmax_high = math.ceil(self.ldmax / 2)
        self.ldmax_low = math.floor(self.ldmax / 2)
        self.lhmax_high = math.ceil(self.lhmax / 2)
        self.lhmax_low = math.floor(self.lhmax / 2)

        self.k_hw = 2 * self.lhmax * self.lwmax     # contraction dim of stage 1
        self.n_hw = 2 * self.nh * self.nw           # output width of stage 1
        self.n_sp = self.nh * self.nw               # final spatial lane width

        # TODO(synk): for very large nh*nw the hw matrix should be N-tiled
        # (extra grid axis) instead of held whole in VMEM.
        self.whw = jnp.asarray(
            _make_hw_matrix(self.nh, self.nw, self.lhmax, self.lwmax,
                            self.lhmax_high),
            jnp.bfloat16)                                          # (2*lh*lw, 2*nh*nw)
        self._d_kernel = _build_d_stage_kernel(
            _make_d_matrix(self.nd, self.ldmax, self.ldmax_high))  # (nd, 2*ld) baked

    # -- stage 1: fused inverse DFT over (h, w), complex output ---------------
    def _hw_stage(self, z):
        m, k = z.shape
        n = self.n_hw
        # Row tile from a VMEM block budget (double-buffered in/out blocks,
        # single-buffered weight); big tiles amortize the ~0.35us/step overhead.
        weight_bytes = k * n * 2
        bytes_per_row = 2 * (k * 2 + n * 4)
        tile = max(8, (_BLOCK_BUDGET_BYTES - weight_bytes) // bytes_per_row)
        if m <= 8:
            tile = m
        else:
            half = ((-(-m // 2)) + 7) // 8 * 8     # keep >=2 blocks (v7x: 2 TCs)
            tile = min(tile, half, m)
            tile = max(8, (tile // 8) * 8)
        grid = (pl.cdiv(m, tile),)
        cost = pl.CostEstimate(
            flops=2 * m * k * n, transcendentals=0,
            bytes_accessed=m * k * 2 + m * n * 4 + k * n * 2)
        return pl.pallas_call(
            _hw_matmul_kernel,
            out_shape=jax.ShapeDtypeStruct((m, n), jnp.float32),
            grid=grid,
            in_specs=[
                pl.BlockSpec((tile, k), lambda i: (i, 0)),
                # grid-invariant DFT matrix: single-buffered, never re-DMA'd
                pl.BlockSpec((k, n), lambda i: (0, 0),
                             pipeline_mode=pl.Buffered(1)),
            ],
            out_specs=pl.BlockSpec((tile, n), lambda i: (i, 0)),
            compiler_params=pltpu.CompilerParams(
                dimension_semantics=("parallel",),
                vmem_limit_bytes=_VMEM_LIMIT_BYTES),
            cost_estimate=cost,
        )(z, self.whw)

    # -- stage 2: inverse DFT over d, real output, final layout ---------------
    def _d_stage(self, u):
        nbc, k2, n2 = u.shape
        nd = self.nd
        bytes_per_item = 2 * (k2 * n2 + nd * n2) * 4
        tb = max(1, min(nbc, _BLOCK_BUDGET_BYTES // bytes_per_item, 128))
        if tb >= nbc and nbc > 1:
            tb = -(-nbc // 2)          # >=2 grid blocks when possible (v7x)
        grid = (pl.cdiv(nbc, tb),)
        cost = pl.CostEstimate(
            flops=2 * nbc * nd * k2 * n2, transcendentals=0,
            bytes_accessed=nbc * k2 * n2 * 4 + nbc * nd * n2 * 4)
        return pl.pallas_call(
            self._d_kernel,
            out_shape=jax.ShapeDtypeStruct((nbc, nd, n2), jnp.float32),
            grid=grid,
            in_specs=[pl.BlockSpec((tb, k2, n2), lambda i: (i, 0, 0))],
            out_specs=pl.BlockSpec((tb, nd, n2), lambda i: (i, 0, 0)),
            compiler_params=pltpu.CompilerParams(
                dimension_semantics=("parallel",),
                vmem_limit_bytes=_VMEM_LIMIT_BYTES),
            cost_estimate=cost,
        )(u)

    def __call__(self, x):
        # x: (..., ldmax, lhmax, lwmax) complex -> (..., nd, nh, nw) float32
        lead = x.shape[:-3]
        d, h, w = x.shape[-3:]
        assert (d, h, w) == (self.ldmax, self.lhmax, self.lwmax), (d, h, w)
        nbc = 1
        for s in lead:
            nbc *= int(s)

        # re/im interleave + bf16 cast of the small, spectrally truncated input
        # (one fused XLA pass).  Column order (kh, kw, re/im) matches the hw
        # matrix rows, so no transposes are needed anywhere downstream.
        # TODO(synk): a complex64 -> 2xf32 bitcast would make even this pass free.
        z = jnp.stack((jnp.real(x), jnp.imag(x)), axis=-1).astype(jnp.bfloat16)
        z = z.reshape(nbc * d, h * w * 2)

        u = self._hw_stage(z)                              # (nbc*ld, 2*nh*nw) f32
        # free reshape: rows become (kd, re/im) — exactly the d-stage ordering
        u = u.reshape(nbc, 2 * self.ldmax, self.n_sp)
        y = self._d_stage(u)                               # (nbc, nd, nh*nw) f32
        return y.reshape(lead + (self.nd, self.nh, self.nw))


# ----------------------------------------------------------------------------
# main
# ----------------------------------------------------------------------------
if __name__ == "__main__":
    B, C = 2, 4
    nd, nh, nw = 8, 16, 16
    ldmax, lhmax, lwmax = 5, 11, 6   # exercise the ldmax<nd / lhmax<nh branches

    key = jax.random.PRNGKey(0)
    k1, k2 = jax.random.split(key)
    xr = jax.random.normal(k1, (B, C, ldmax, lhmax, lwmax), jnp.float32)
    xi = jax.random.normal(k2, (B, C, ldmax, lhmax, lwmax), jnp.float32)
    x = (xr + 1j * xi).astype(jnp.complex64)

    model = InverseRealFFT3(nd, nh, nw, ldmax=ldmax, lhmax=lhmax, lwmax=lwmax)
    fwd = jax.jit(model.__call__)
    y = jax.block_until_ready(fwd(x))

    assert y.shape == (B, C, nd, nh, nw), y.shape
    assert y.dtype == jnp.float32, y.dtype

    # reference: reproduce the module's frequency-domain padding + irfftn
    ldh, ldl = model.ldmax_high, model.ldmax_low
    lhh, lhl = model.lhmax_high, model.lhmax_low
    xd = jnp.zeros((B, C, nd, lhmax, lwmax), jnp.complex64)
    xd = xd.at[:, :, :ldh].set(x[:, :, :ldh])
    xd = xd.at[:, :, nd - ldl:].set(x[:, :, ldh:])
    xdh = jnp.zeros((B, C, nd, nh, lwmax), jnp.complex64)
    xdh = xdh.at[:, :, :, :lhh].set(xd[:, :, :, :lhh])
    xdh = xdh.at[:, :, :, nh - lhl:].set(xd[:, :, :, lhh:])
    y_ref = jnp.fft.irfftn(xdh, s=(nd, nh, nw), axes=(-3, -2, -1), norm="ortho")
    y_ref = jax.block_until_ready(y_ref)

    # bf16 MXU operands (single pass) with f32 accumulation / f32 intermediates:
    # compare with a bf16-level tolerance.
    err = float(jnp.max(jnp.abs(y - y_ref)))
    assert err < 5e-2, f"max abs error vs irfftn reference: {err}"

    print("KERNEL_OK")
</pallas_src>

<mosaic_0001>
module attributes {stable_mosaic.version = 11 : i64} {
  func.func @_hw_matmul_kernel(%arg0: i32, %arg1: memref<24x132xbf16, #tpu.memory_space<vmem>>, %arg2: memref<132x512xbf16, #tpu.memory_space<vmem>>, %arg3: memref<24x512xf32, #tpu.memory_space<vmem>>) attributes {dimension_semantics = [#tpu.dimension_semantics<parallel>], iteration_bounds = array<i64: 2>, scalar_prefetch = 0 : i64, scratch_operands = 0 : i64, tpu.core_type = #tpu.core_type<tc>, window_params = [{transform_indices = @transform_0, window_bounds = array<i64: 24, 132>}, {pipeline_mode = #tpu.pipeline_mode<synchronous>, transform_indices = @transform_1, window_bounds = array<i64: 132, 512>}, {transform_indices = @transform_2, window_bounds = array<i64: 24, 512>}]} {
    %c0 = arith.constant 0 : index
    %c0_0 = arith.constant 0 : index
    %0 = vector.load %arg1[%c0, %c0_0] : memref<24x132xbf16, #tpu.memory_space<vmem>>, vector<24x132xbf16>
    %c0_1 = arith.constant 0 : index
    %c0_2 = arith.constant 0 : index
    %1 = vector.load %arg2[%c0_1, %c0_2] : memref<132x512xbf16, #tpu.memory_space<vmem>>, vector<132x512xbf16>
    %cst = arith.constant dense<0.000000e+00> : vector<24x512xf32>
    %2 = tpu.matmul %0, %1, %cst {dimension_numbers = #tpu.dot_dimension_numbers<[1], [0], [0], [1], [0, 0, 1, 1], [], []>} : vector<24x132xbf16>, vector<132x512xbf16>, vector<24x512xf32> -> vector<24x512xf32>
    %c0_3 = arith.constant 0 : index
    %c0_4 = arith.constant 0 : index
    %3 = vector.load %arg3[%c0_3, %c0_4] : memref<24x512xf32, #tpu.memory_space<vmem>>, vector<24x512xf32>
    tpu.vector_store %arg3[%c0_3, %c0_4], %2 {strides = array<i32>} : memref<24x512xf32, #tpu.memory_space<vmem>>, vector<24x512xf32>,
    return
  }
  func.func @transform_0(%arg0: i32) -> (i32, i32) {
    %c0_i32 = arith.constant 0 : i32
    %c0_i32_0 = arith.constant 0 : i32
    return %arg0, %c0_i32 : i32, i32
  }
  func.func @transform_1(%arg0: i32) -> (i32, i32) {
    %c0_i32 = arith.constant 0 : i32
    %c0_i32_0 = arith.constant 0 : i32
    %c0_i32_1 = arith.constant 0 : i32
    return %c0_i32, %c0_i32_0 : i32, i32
  }
  func.func @transform_2(%arg0: i32) -> (i32, i32) {
    %c0_i32 = arith.constant 0 : i32
    %c0_i32_0 = arith.constant 0 : i32
    return %arg0, %c0_i32 : i32, i32
  }
}

module attributes {stable_mosaic.version = 11 : i64} {
  func.func @kernel(%arg0: i32, %arg1: memref<4x10x256xf32, #tpu.memory_space<vmem>>, %arg2: memref<4x8x256xf32, #tpu.memory_space<vmem>>) attributes {dimension_semantics = [#tpu.dimension_semantics<parallel>], iteration_bounds = array<i64: 2>, scalar_prefetch = 0 : i64, scratch_operands = 0 : i64, tpu.core_type = #tpu.core_type<tc>, window_params = [{transform_indices = @transform_0, window_bounds = array<i64: 4, 10, 256>}, {transform_indices = @transform_1, window_bounds = array<i64: 4, 8, 256>}]} {
    %c0 = arith.constant 0 : index
    %c0_0 = arith.constant 0 : index
    %c0_1 = arith.constant 0 : index
    %0 = vector.load %arg1[%c0, %c0_0, %c0_1] : memref<4x10x256xf32, #tpu.memory_space<vmem>>, vector<4x1x256xf32>
    %1 = vector.shape_cast %0 : vector<4x1x256xf32> to vector<4x256xf32>
    %cst = arith.constant 0.353553385 : f32
    %2 = vector.broadcast %cst : f32 to vector<4x256xf32>
    %3 = arith.mulf %2, %1 : vector<4x256xf32>
    %c0_2 = arith.constant 0 : index
    %c1 = arith.constant 1 : index
    %c0_3 = arith.constant 0 : index
    %4 = vector.load %arg1[%c0_2, %c1, %c0_3] : memref<4x10x256xf32, #tpu.memory_space<vmem>>, vector<4x1x256xf32>
    %5 = vector.shape_cast %4 : vector<4x1x256xf32> to vector<4x256xf32>
    %cst_4 = arith.constant -0.000000e+00 : f32
    %6 = vector.broadcast %cst_4 : f32 to vector<4x256xf32>
    %7 = arith.mulf %6, %5 : vector<4x256xf32>
    %8 = arith.addf %3, %7 : vector<4x256xf32>
    %c0_5 = arith.constant 0 : index
    %c2 = arith.constant 2 : index
    %c0_6 = arith.constant 0 : index
    %9 = vector.load %arg1[%c0_5, %c2, %c0_6] : memref<4x10x256xf32, #tpu.memory_space<vmem>>, vector<4x1x256xf32>
    %10 = vector.shape_cast %9 : vector<4x1x256xf32> to vector<4x256xf32>
    %cst_7 = arith.constant 0.353553385 : f32
    %11 = vector.broadcast %cst_7 : f32 to vector<4x256xf32>
    %12 = arith.mulf %11, %10 : vector<4x256xf32>
    %13 = arith.addf %8, %12 : vector<4x256xf32>
    %c0_8 = arith.constant 0 : index
    %c3 = arith.constant 3 : index
    %c0_9 = arith.constant 0 : index
    %14 = vector.load %arg1[%c0_8, %c3, %c0_9] : memref<4x10x256xf32, #tpu.memory_space<vmem>>, vector<4x1x256xf32>
    %15 = vector.shape_cast %14 : vector<4x1x256xf32> to vector<4x256xf32>
    %cst_10 = arith.constant -0.000000e+00 : f32
    %16 = vector.broadcast %cst_10 : f32 to vector<4x256xf32>
    %17 = arith.mulf %16, %15 : vector<4x256xf32>
    %18 = arith.addf %13, %17 : vector<4x256xf32>
    %c0_11 = arith.constant 0 : index
    %c4 = arith.constant 4 : index
    %c0_12 = arith.constant 0 : index
    %19 = vector.load %arg1[%c0_11, %c4, %c0_12] : memref<4x10x256xf32, #tpu.memory_space<vmem>>, vector<4x1x256xf32>
    %20 = vector.shape_cast %19 : vector<4x1x256xf32> to vector<4x256xf32>
    %cst_13 = arith.constant 0.353553385 : f32
    %21 = vector.broadcast %cst_13 : f32 to vector<4x256xf32>
    %22 = arith.mulf %21, %20 : vector<4x256xf32>
    %23 = arith.addf %18, %22 : vector<4x256xf32>
    %c0_14 = arith.constant 0 : index
    %c5 = arith.constant 5 : index
    %c0_15 = arith.constant 0 : index
    %24 = vector.load %arg1[%c0_14, %c5, %c0_15] : memref<4x10x256xf32, #tpu.memory_space<vmem>>, vector<4x1x256xf32>
    %25 = vector.shape_cast %24 : vector<4x1x256xf32> to vector<4x256xf32>
    %cst_16 = arith.constant -0.000000e+00 : f32
    %26 = vector.broadcast %cst_16 : f32 to vector<4x256xf32>
    %27 = arith.mulf %26, %25 : vector<4x256xf32>
    %28 = arith.addf %23, %27 : vector<4x256xf32>
    %c0_17 = arith.constant 0 : index
    %c6 = arith.constant 6 : index
    %c0_18 = arith.constant 0 : index
    %29 = vector.load %arg1[%c0_17, %c6, %c0_18] : memref<4x10x256xf32, #tpu.memory_space<vmem>>, vector<4x1x256xf32>
    %30 = vector.shape_cast %29 : vector<4x1x256xf32> to vector<4x256xf32>
    %cst_19 = arith.constant 0.353553385 : f32
    %31 = vector.broadcast %cst_19 : f32 to vector<4x256xf32>
    %32 = arith.mulf %31, %30 : vector<4x256xf32>
    %33 = arith.addf %28, %32 : vector<4x256xf32>
    %c0_20 = arith.constant 0 : index
    %c7 = arith.constant 7 : index
    %c0_21 = arith.constant 0 : index
    %34 = vector.load %arg1[%c0_20, %c7, %c0_21] : memref<4x10x256xf32, #tpu.memory_space<vmem>>, vector<4x1x256xf32>
    %35 = vector.shape_cast %34 : vector<4x1x256xf32> to vector<4x256xf32>
    %cst_22 = arith.constant -0.000000e+00 : f32
    %36 = vector.broadcast %cst_22 : f32 to vector<4x256xf32>
    %37 = arith.mulf %36, %35 : vector<4x256xf32>
    %38 = arith.addf %33, %37 : vector<4x256xf32>
    %c0_23 = arith.constant 0 : index
    %c8 = arith.constant 8 : index
    %c0_24 = arith.constant 0 : index
    %39 = vector.load %arg1[%c0_23, %c8, %c0_24] : memref<4x10x256xf32, #tpu.memory_space<vmem>>, vector<4x1x256xf32>
    %40 = vector.shape_cast %39 : vector<4x1x256xf32> to vector<4x256xf32>
    %cst_25 = arith.constant 0.353553385 : f32
    %41 = vector.broadcast %cst_25 : f32 to vector<4x256xf32>
    %42 = arith.mulf %41, %40 : vector<4x256xf32>
    %43 = arith.addf %38, %42 : vector<4x256xf32>
    %c0_26 = arith.constant 0 : index
    %c9 = arith.constant 9 : index
    %c0_27 = arith.constant 0 : index
    %44 = vector.load %arg1[%c0_26, %c9, %c0_27] : memref<4x10x256xf32, #tpu.memory_space<vmem>>, vector<4x1x256xf32>
    %45 = vector.shape_cast %44 : vector<4x1x256xf32> to vector<4x256xf32>
    %cst_28 = arith.constant -0.000000e+00 : f32
    %46 = vector.broadcast %cst_28 : f32 to vector<4x256xf32>
    %47 = arith.mulf %46, %45 : vector<4x256xf32>
    %48 = arith.addf %43, %47 : vector<4x256xf32>
    %c0_29 = arith.constant 0 : index
    %c0_30 = arith.constant 0 : index
    %c0_31 = arith.constant 0 : index
    %49 = vector.load %arg2[%c0_29, %c0_30, %c0_31] : memref<4x8x256xf32, #tpu.memory_space<vmem>>, vector<4x1x256xf32>
    %50 = vector.shape_cast %49 : vector<4x1x256xf32> to vector<4x256xf32>
    %51 = vector.shape_cast %48 : vector<4x256xf32> to vector<4x1x256xf32>
    tpu.vector_store %arg2[%c0_29, %c0_30, %c0_31], %51 {strides = array<i32>} : memref<4x8x256xf32, #tpu.memory_space<vmem>>, vector<4x1x256xf32>,
    %c0_32 = arith.constant 0 : index
    %c0_33 = arith.constant 0 : index
    %c0_34 = arith.constant 0 : index
    %52 = vector.load %arg1[%c0_32, %c0_33, %c0_34] : memref<4x10x256xf32, #tpu.memory_space<vmem>>, vector<4x1x256xf32>
    %53 = vector.shape_cast %52 : vector<4x1x256xf32> to vector<4x256xf32>
    %cst_35 = arith.constant 0.353553385 : f32
    %54 = vector.broadcast %cst_35 : f32 to vector<4x256xf32>
    %55 = arith.mulf %54, %53 : vector<4x256xf32>
    %c0_36 = arith.constant 0 : index
    %c1_37 = arith.constant 1 : index
    %c0_38 = arith.constant 0 : index
    %56 = vector.load %arg1[%c0_36, %c1_37, %c0_38] : memref<4x10x256xf32, #tpu.memory_space<vmem>>, vector<4x1x256xf32>
    %57 = vector.shape_cast %56 : vector<4x1x256xf32> to vector<4x256xf32>
    %cst_39 = arith.constant -0.000000e+00 : f32
    %58 = vector.broadcast %cst_39 : f32 to vector<4x256xf32>
    %59 = arith.mulf %58, %57 : vector<4x256xf32>
    %60 = arith.addf %55, %59 : vector<4x256xf32>
    %c0_40 = arith.constant 0 : index
    %c2_41 = arith.constant 2 : index
    %c0_42 = arith.constant 0 : index
    %61 = vector.load %arg1[%c0_40, %c2_41, %c0_42] : memref<4x10x256xf32, #tpu.memory_space<vmem>>, vector<4x1x256xf32>
    %62 = vector.shape_cast %61 : vector<4x1x256xf32> to vector<4x256xf32>
    %cst_43 = arith.constant 2.500000e-01 : f32
    %63 = vector.broadcast %cst_43 : f32 to vector<4x256xf32>
    %64 = arith.mulf %63, %62 : vector<4x256xf32>
    %65 = arith.addf %60, %64 : vector<4x256xf32>
    %c0_44 = arith.constant 0 : index
    %c3_45 = arith.constant 3 : index
    %c0_46 = arith.constant 0 : index
    %66 = vector.load %arg1[%c0_44, %c3_45, %c0_46] : memref<4x10x256xf32, #tpu.memory_space<vmem>>, vector<4x1x256xf32>
    %67 = vector.shape_cast %66 : vector<4x1x256xf32> to vector<4x256xf32>
    %cst_47 = arith.constant -2.500000e-01 : f32
    %68 = vector.broadcast %cst_47 : f32 to vector<4x256xf32>
    %69 = arith.mulf %68, %67 : vector<4x256xf32>
    %70 = arith.addf %65, %69 : vector<4x256xf32>
    %c0_48 = arith.constant 0 : index
    %c4_49 = arith.constant 4 : index
    %c0_50 = arith.constant 0 : index
    %71 = vector.load %arg1[%c0_48, %c4_49, %c0_50] : memref<4x10x256xf32, #tpu.memory_space<vmem>>, vector<4x1x256xf32>
    %72 = vector.shape_cast %71 : vector<4x1x256xf32> to vector<4x256xf32>
    %cst_51 = arith.constant 2.16489015E-17 : f32
    %73 = vector.broadcast %cst_51 : f32 to vector<4x256xf32>
    %74 = arith.mulf %73, %72 : vector<4x256xf32>
    %75 = arith.addf %70, %74 : vector<4x256xf32>
    %c0_52 = arith.constant 0 : index
    %c5_53 = arith.constant 5 : index
    %c0_54 = arith.constant 0 : index
    %76 = vector.load %arg1[%c0_52, %c5_53, %c0_54] : memref<4x10x256xf32, #tpu.memory_space<vmem>>, vector<4x1x256xf32>
    %77 = vector.shape_cast %76 : vector<4x1x256xf32> to vector<4x256xf32>
    %cst_55 = arith.constant -0.353553385 : f32
    %78 = vector.broadcast %cst_55 : f32 to vector<4x256xf32>
    %79 = arith.mulf %78, %77 : vector<4x256xf32>
    %80 = arith.addf %75, %79 : vector<4x256xf32>
    %c0_56 = arith.constant 0 : index
    %c6_57 = arith.constant 6 : index
    %c0_58 = arith.constant 0 : index
    %81 = vector.load %arg1[%c0_56, %c6_57, %c0_58] : memref<4x10x256xf32, #tpu.memory_space<vmem>>, vector<4x1x256xf32>
    %82 = vector.shape_cast %81 : vector<4x1x256xf32> to vector<4x256xf32>
    %cst_59 = arith.constant -6.494670e-17 : f32
    %83 = vector.broadcast %cst_59 : f32 to vector<4x256xf32>
    %84 = arith.mulf %83, %82 : vector<4x256xf32>
    %85 = arith.addf %80, %84 : vector<4x256xf32>
    %c0_60 = arith.constant 0 : index
    %c7_61 = arith.constant 7 : index
    %c0_62 = arith.constant 0 : index
    %86 = vector.load %arg1[%c0_60, %c7_61, %c0_62] : memref<4x10x256xf32, #tpu.memory_space<vmem>>, vector<4x1x256xf32>
    %87 = vector.shape_cast %86 : vector<4x1x256xf32> to vector<4x256xf32>
    %cst_63 = arith.constant 0.353553385 : f32
    %88 = vector.broadcast %cst_63 : f32 to vector<4x256xf32>
    %89 = arith.mulf %88, %87 : vector<4x256xf32>
    %90 = arith.addf %85, %89 : vector<4x256xf32>
    %c0_64 = arith.constant 0 : index
    %c8_65 = arith.constant 8 : index
    %c0_66 = arith.constant 0 : index
    %91 = vector.load %arg1[%c0_64, %c8_65, %c0_66] : memref<4x10x256xf32, #tpu.memory_space<vmem>>, vector<4x1x256xf32>
    %92 = vector.shape_cast %91 : vector<4x1x256xf32> to vector<4x256xf32>
    %cst_67 = arith.constant 2.500000e-01 : f32
    %93 = vector.broadcast %cst_67 : f32 to vector<4x256xf32>
    %94 = arith.mulf %93, %92 : vector<4x256xf32>
    %95 = arith.addf %90, %94 : vector<4x256xf32>
    %c0_68 = arith.constant 0 : index
    %c9_69 = arith.constant 9 : index
    %c0_70 = arith.constant 0 : index
    %96 = vector.load %arg1[%c0_68, %c9_69, %c0_70] : memref<4x10x256xf32, #tpu.memory_space<vmem>>, vector<4x1x256xf32>
    %97 = vector.shape_cast %96 : vector<4x1x256xf32> to vector<4x256xf32>
    %cst_71 = arith.constant 2.500000e-01 : f32
    %98 = vector.broadcast %cst_71 : f32 to vector<4x256xf32>
    %99 = arith.mulf %98, %97 : vector<4x256xf32>
    %100 = arith.addf %95, %99 : vector<4x256xf32>
    %c0_72 = arith.constant 0 : index
    %c1_73 = arith.constant 1 : index
    %c0_74 = arith.constant 0 : index
    %101 = vector.load %arg2[%c0_72, %c1_73, %c0_74] : memref<4x8x256xf32, #tpu.memory_space<vmem>>, vector<4x1x256xf32>
    %102 = vector.shape_cast %101 : vector<4x1x256xf32> to vector<4x256xf32>
    %103 = vector.shape_cast %100 : vector<4x256xf32> to vector<4x1x256xf32>
    tpu.vector_store %arg2[%c0_72, %c1_73, %c0_74], %103 {strides = array<i32>} : memref<4x8x256xf32, #tpu.memory_space<vmem>>, vector<4x1x256xf32>,
    %c0_75 = arith.constant 0 : index
    %c0_76 = arith.constant 0 : index
    %c0_77 = arith.constant 0 : index
    %104 = vector.load %arg1[%c0_75, %c0_76, %c0_77] : memref<4x10x256xf32, #tpu.memory_space<vmem>>, vector<4x1x256xf32>
    %105 = vector.shape_cast %104 : vector<4x1x256xf32> to vector<4x256xf32>
    %cst_78 = arith.constant 0.353553385 : f32
    %106 = vector.broadcast %cst_78 : f32 to vector<4x256xf32>
    %107 = arith.mulf %106, %105 : vector<4x256xf32>
    %c0_79 = arith.constant 0 : index
    %c1_80 = arith.constant 1 : index
    %c0_81 = arith.constant 0 : index
    %108 = vector.load %arg1[%c0_79, %c1_80, %c0_81] : memref<4x10x256xf32, #tpu.memory_space<vmem>>, vector<4x1x256xf32>
    %109 = vector.shape_cast %108 : vector<4x1x256xf32> to vector<4x256xf32>
    %cst_82 = arith.constant -0.000000e+00 : f32
    %110 = vector.broadcast %cst_82 : f32 to vector<4x256xf32>
    %111 = arith.mulf %110, %109 : vector<4x256xf32>
    %112 = arith.addf %107, %111 : vector<4x256xf32>
    %c0_83 = arith.constant 0 : index
    %c2_84 = arith.constant 2 : index
    %c0_85 = arith.constant 0 : index
    %113 = vector.load %arg1[%c0_83, %c2_84, %c0_85] : memref<4x10x256xf32, #tpu.memory_space<vmem>>, vector<4x1x256xf32>
    %114 = vector.shape_cast %113 : vector<4x1x256xf32> to vector<4x256xf32>
    %cst_86 = arith.constant 2.16489015E-17 : f32
    %115 = vector.broadcast %cst_86 : f32 to vector<4x256xf32>
    %116 = arith.mulf %115, %114 : vector<4x256xf32>
    %117 = arith.addf %112, %116 : vector<4x256xf32>
    %c0_87 = arith.constant 0 : index
    %c3_88 = arith.constant 3 : index
    %c0_89 = arith.constant 0 : index
    %118 = vector.load %arg1[%c0_87, %c3_88, %c0_89] : memref<4x10x256xf32, #tpu.memory_space<vmem>>, vector<4x1x256xf32>
    %119 = vector.shape_cast %118 : vector<4x1x256xf32> to vector<4x256xf32>
    %cst_90 = arith.constant -0.353553385 : f32
    %120 = vector.broadcast %cst_90 : f32 to vector<4x256xf32>
    %121 = arith.mulf %120, %119 : vector<4x256xf32>
    %122 = arith.addf %117, %121 : vector<4x256xf32>
    %c0_91 = arith.constant 0 : index
    %c4_92 = arith.constant 4 : index
    %c0_93 = arith.constant 0 : index
    %123 = vector.load %arg1[%c0_91, %c4_92, %c0_93] : memref<4x10x256xf32, #tpu.memory_space<vmem>>, vector<4x1x256xf32>
    %124 = vector.shape_cast %123 : vector<4x1x256xf32> to vector<4x256xf32>
    %cst_94 = arith.constant -0.353553385 : f32
    %125 = vector.broadcast %cst_94 : f32 to vector<4x256xf32>
    %126 = arith.mulf %125, %124 : vector<4x256xf32>
    %127 = arith.addf %122, %126 : vector<4x256xf32>
    %c0_95 = arith.constant 0 : index
    %c5_96 = arith.constant 5 : index
    %c0_97 = arith.constant 0 : index
    %128 = vector.load %arg1[%c0_95, %c5_96, %c0_97] : memref<4x10x256xf32, #tpu.memory_space<vmem>>, vector<4x1x256xf32>
    %129 = vector.shape_cast %128 : vector<4x1x256xf32> to vector<4x256xf32>
    %cst_98 = arith.constant -4.3297803E-17 : f32
    %130 = vector.broadcast %cst_98 : f32 to vector<4x256xf32>
    %131 = arith.mulf %130, %129 : vector<4x256xf32>
    %132 = arith.addf %127, %131 : vector<4x256xf32>
    %c0_99 = arith.constant 0 : index
    %c6_100 = arith.constant 6 : index
    %c0_101 = arith.constant 0 : index
    %133 = vector.load %arg1[%c0_99, %c6_100, %c0_101] : memref<4x10x256xf32, #tpu.memory_space<vmem>>, vector<4x1x256xf32>
    %134 = vector.shape_cast %133 : vector<4x1x256xf32> to vector<4x256xf32>
    %cst_102 = arith.constant -0.353553385 : f32
    %135 = vector.broadcast %cst_102 : f32 to vector<4x256xf32>
    %136 = arith.mulf %135, %134 : vector<4x256xf32>
    %137 = arith.addf %132, %136 : vector<4x256xf32>
    %c0_103 = arith.constant 0 : index
    %c7_104 = arith.constant 7 : index
    %c0_105 = arith.constant 0 : index
    %138 = vector.load %arg1[%c0_103, %c7_104, %c0_105] : memref<4x10x256xf32, #tpu.memory_space<vmem>>, vector<4x1x256xf32>
    %139 = vector.shape_cast %138 : vector<4x1x256xf32> to vector<4x256xf32>
    %cst_106 = arith.constant -1.29893402E-16 : f32
    %140 = vector.broadcast %cst_106 : f32 to vector<4x256xf32>
    %141 = arith.mulf %140, %139 : vector<4x256xf32>
    %142 = arith.addf %137, %141 : vector<4x256xf32>
    %c0_107 = arith.constant 0 : index
    %c8_108 = arith.constant 8 : index
    %c0_109 = arith.constant 0 : index
    %143 = vector.load %arg1[%c0_107, %c8_108, %c0_109] : memref<4x10x256xf32, #tpu.memory_space<vmem>>, vector<4x1x256xf32>
    %144 = vector.shape_cast %143 : vector<4x1x256xf32> to vector<4x256xf32>
    %cst_110 = arith.constant -1.51542307E-16 : f32
    %145 = vector.broadcast %cst_110 : f32 to vector<4x256xf32>
    %146 = arith.mulf %145, %144 : vector<4x256xf32>
    %147 = arith.addf %142, %146 : vector<4x256xf32>
    %c0_111 = arith.constant 0 : index
    %c9_112 = arith.constant 9 : index
    %c0_113 = arith.constant 0 : index
    %148 = vector.load %arg1[%c0_111, %c9_112, %c0_113] : memref<4x10x256xf32, #tpu.memory_space<vmem>>, vector<4x1x256xf32>
    %149 = vector.shape_cast %148 : vector<4x1x256xf32> to vector<4x256xf32>
    %cst_114 = arith.constant 0.353553385 : f32
    %150 = vector.broadcast %cst_114 : f32 to vector<4x256xf32>
    %151 = arith.mulf %150, %149 : vector<4x256xf32>
    %152 = arith.addf %147, %151 : vector<4x256xf32>
    %c0_115 = arith.constant 0 : index
    %c2_116 = arith.constant 2 : index
    %c0_117 = arith.constant 0 : index
    %153 = vector.load %arg2[%c0_115, %c2_116, %c0_117] : memref<4x8x256xf32, #tpu.memory_space<vmem>>, vector<4x1x256xf32>
    %154 = vector.shape_cast %153 : vector<4x1x256xf32> to vector<4x256xf32>
    %155 = vector.shape_cast %152 : vector<4x256xf32> to vector<4x1x256xf32>
    tpu.vector_store %arg2[%c0_115, %c2_116, %c0_117], %155 {strides = array<i32>} : memref<4x8x256xf32, #tpu.memory_space<vmem>>, vector<4x1x256xf32>,
    %c0_118 = arith.constant 0 : index
    %c0_119 = arith.constant 0 : index
    %c0_120 = arith.constant 0 : index
    %156 = vector.load %arg1[%c0_118, %c0_119, %c0_120] : memref<4x10x256xf32, #tpu.memory_space<vmem>>, vector<4x1x256xf32>
    %157 = vector.shape_cast %156 : vector<4x1x256xf32> to vector<4x256xf32>
    %cst_121 = arith.constant 0.353553385 : f32
    %158 = vector.broadcast %cst_121 : f32 to vector<4x256xf32>
    %159 = arith.mulf %158, %157 : vector<4x256xf32>
    %c0_122 = arith.constant 0 : index
    %c1_123 = arith.constant 1 : index
    %c0_124 = arith.constant 0 : index
    %160 = vector.load %arg1[%c0_122, %c1_123, %c0_124] : memref<4x10x256xf32, #tpu.memory_space<vmem>>, vector<4x1x256xf32>
    %161 = vector.shape_cast %160 : vector<4x1x256xf32> to vector<4x256xf32>
    %cst_125 = arith.constant -0.000000e+00 : f32
    %162 = vector.broadcast %cst_125 : f32 to vector<4x256xf32>
    %163 = arith.mulf %162, %161 : vector<4x256xf32>
    %164 = arith.addf %159, %163 : vector<4x256xf32>
    %c0_126 = arith.constant 0 : index
    %c2_127 = arith.constant 2 : index
    %c0_128 = arith.constant 0 : index
    %165 = vector.load %arg1[%c0_126, %c2_127, %c0_128] : memref<4x10x256xf32, #tpu.memory_space<vmem>>, vector<4x1x256xf32>
    %166 = vector.shape_cast %165 : vector<4x1x256xf32> to vector<4x256xf32>
    %cst_129 = arith.constant -2.500000e-01 : f32
    %167 = vector.broadcast %cst_129 : f32 to vector<4x256xf32>
    %168 = arith.mulf %167, %166 : vector<4x256xf32>
    %169 = arith.addf %164, %168 : vector<4x256xf32>
    %c0_130 = arith.constant 0 : index
    %c3_131 = arith.constant 3 : index
    %c0_132 = arith.constant 0 : index
    %170 = vector.load %arg1[%c0_130, %c3_131, %c0_132] : memref<4x10x256xf32, #tpu.memory_space<vmem>>, vector<4x1x256xf32>
    %171 = vector.shape_cast %170 : vector<4x1x256xf32> to vector<4x256xf32>
    %cst_133 = arith.constant -2.500000e-01 : f32
    %172 = vector.broadcast %cst_133 : f32 to vector<4x256xf32>
    %173 = arith.mulf %172, %171 : vector<4x256xf32>
    %174 = arith.addf %169, %173 : vector<4x256xf32>
    %c0_134 = arith.constant 0 : index
    %c4_135 = arith.constant 4 : index
    %c0_136 = arith.constant 0 : index
    %175 = vector.load %arg1[%c0_134, %c4_135, %c0_136] : memref<4x10x256xf32, #tpu.memory_space<vmem>>, vector<4x1x256xf32>
    %176 = vector.shape_cast %175 : vector<4x1x256xf32> to vector<4x256xf32>
    %cst_137 = arith.constant -6.494670e-17 : f32
    %177 = vector.broadcast %cst_137 : f32 to vector<4x256xf32>
    %178 = arith.mulf %177, %176 : vector<4x256xf32>
    %179 = arith.addf %174, %178 : vector<4x256xf32>
    %c0_138 = arith.constant 0 : index
    %c5_139 = arith.constant 5 : index
    %c0_140 = arith.constant 0 : index
    %180 = vector.load %arg1[%c0_138, %c5_139, %c0_140] : memref<4x10x256xf32, #tpu.memory_space<vmem>>, vector<4x1x256xf32>
    %181 = vector.shape_cast %180 : vector<4x1x256xf32> to vector<4x256xf32>
    %cst_141 = arith.constant 0.353553385 : f32
    %182 = vector.broadcast %cst_141 : f32 to vector<4x256xf32>
    %183 = arith.mulf %182, %181 : vector<4x256xf32>
    %184 = arith.addf %179, %183 : vector<4x256xf32>
    %c0_142 = arith.constant 0 : index
    %c6_143 = arith.constant 6 : index
    %c0_144 = arith.constant 0 : index
    %185 = vector.load %arg1[%c0_142, %c6_143, %c0_144] : memref<4x10x256xf32, #tpu.memory_space<vmem>>, vector<4x1x256xf32>
    %186 = vector.shape_cast %185 : vector<4x1x256xf32> to vector<4x256xf32>
    %cst_145 = arith.constant 1.94840117E-16 : f32
    %187 = vector.broadcast %cst_145 : f32 to vector<4x256xf32>
    %188 = arith.mulf %187, %186 : vector<4x256xf32>
    %189 = arith.addf %184, %188 : vector<4x256xf32>
    %c0_146 = arith.constant 0 : index
    %c7_147 = arith.constant 7 : index
    %c0_148 = arith.constant 0 : index
    %190 = vector.load %arg1[%c0_146, %c7_147, %c0_148] : memref<4x10x256xf32, #tpu.memory_space<vmem>>, vector<4x1x256xf32>
    %191 = vector.shape_cast %190 : vector<4x1x256xf32> to vector<4x256xf32>
    %cst_149 = arith.constant -0.353553385 : f32
    %192 = vector.broadcast %cst_149 : f32 to vector<4x256xf32>
    %193 = arith.mulf %192, %191 : vector<4x256xf32>
    %194 = arith.addf %189, %193 : vector<4x256xf32>
    %c0_150 = arith.constant 0 : index
    %c8_151 = arith.constant 8 : index
    %c0_152 = arith.constant 0 : index
    %195 = vector.load %arg1[%c0_150, %c8_151, %c0_152] : memref<4x10x256xf32, #tpu.memory_space<vmem>>, vector<4x1x256xf32>
    %196 = vector.shape_cast %195 : vector<4x1x256xf32> to vector<4x256xf32>
    %cst_153 = arith.constant -2.500000e-01 : f32
    %197 = vector.broadcast %cst_153 : f32 to vector<4x256xf32>
    %198 = arith.mulf %197, %196 : vector<4x256xf32>
    %199 = arith.addf %194, %198 : vector<4x256xf32>
    %c0_154 = arith.constant 0 : index
    %c9_155 = arith.constant 9 : index
    %c0_156 = arith.constant 0 : index
    %200 = vector.load %arg1[%c0_154, %c9_155, %c0_156] : memref<4x10x256xf32, #tpu.memory_space<vmem>>, vector<4x1x256xf32>
    %201 = vector.shape_cast %200 : vector<4x1x256xf32> to vector<4x256xf32>
    %cst_157 = arith.constant 2.500000e-01 : f32
    %202 = vector.broadcast %cst_157 : f32 to vector<4x256xf32>
    %203 = arith.mulf %202, %201 : vector<4x256xf32>
    %204 = arith.addf %199, %203 : vector<4x256xf32>
    %c0_158 = arith.constant 0 : index
    %c3_159 = arith.constant 3 : index
    %c0_160 = arith.constant 0 : index
    %205 = vector.load %arg2[%c0_158, %c3_159, %c0_160] : memref<4x8x256xf32, #tpu.memory_space<vmem>>, vector<4x1x256xf32>
    %206 = vector.shape_cast %205 : vector<4x1x256xf32> to vector<4x256xf32>
    %207 = vector.shape_cast %204 : vector<4x256xf32> to vector<4x1x256xf32>
    tpu.vector_store %arg2[%c0_158, %c3_159, %c0_160], %207 {strides = array<i32>} : memref<4x8x256xf32, #tpu.memory_space<vmem>>, vector<4x1x256xf32>,
    %c0_161 = arith.constant 0 : index
    %c0_162 = arith.constant 0 : index
    %c0_163 = arith.constant 0 : index
    %208 = vector.load %arg1[%c0_161, %c0_162, %c0_163] : memref<4x10x256xf32, #tpu.memory_space<vmem>>, vector<4x1x256xf32>
    %209 = vector.shape_cast %208 : vector<4x1x256xf32> to vector<4x256xf32>
    %cst_164 = arith.constant 0.353553385 : f32
    %210 = vector.broadcast %cst_164 : f32 to vector<4x256xf32>
    %211 = arith.mulf %210, %209 : vector<4x256xf32>
    %c0_165 = arith.constant 0 : index
    %c1_166 = arith.constant 1 : index
    %c0_167 = arith.constant 0 : index
    %212 = vector.load %arg1[%c0_165, %c1_166, %c0_167] : memref<4x10x256xf32, #tpu.memory_space<vmem>>, vector<4x1x256xf32>
    %213 = vector.shape_cast %212 : vector<4x1x256xf32> to vector<4x256xf32>
    %cst_168 = arith.constant -0.000000e+00 : f32
    %214 = vector.broadcast %cst_168 : f32 to vector<4x256xf32>
    %215 = arith.mulf %214, %213 : vector<4x256xf32>
    %216 = arith.addf %211, %215 : vector<4x256xf32>
    %c0_169 = arith.constant 0 : index
    %c2_170 = arith.constant 2 : index
    %c0_171 = arith.constant 0 : index
    %217 = vector.load %arg1[%c0_169, %c2_170, %c0_171] : memref<4x10x256xf32, #tpu.memory_space<vmem>>, vector<4x1x256xf32>
    %218 = vector.shape_cast %217 : vector<4x1x256xf32> to vector<4x256xf32>
    %cst_172 = arith.constant -0.353553385 : f32
    %219 = vector.broadcast %cst_172 : f32 to vector<4x256xf32>
    %220 = arith.mulf %219, %218 : vector<4x256xf32>
    %221 = arith.addf %216, %220 : vector<4x256xf32>
    %c0_173 = arith.constant 0 : index
    %c3_174 = arith.constant 3 : index
    %c0_175 = arith.constant 0 : index
    %222 = vector.load %arg1[%c0_173, %c3_174, %c0_175] : memref<4x10x256xf32, #tpu.memory_space<vmem>>, vector<4x1x256xf32>
    %223 = vector.shape_cast %222 : vector<4x1x256xf32> to vector<4x256xf32>
    %cst_176 = arith.constant -4.3297803E-17 : f32
    %224 = vector.broadcast %cst_176 : f32 to vector<4x256xf32>
    %225 = arith.mulf %224, %223 : vector<4x256xf32>
    %226 = arith.addf %221, %225 : vector<4x256xf32>
    %c0_177 = arith.constant 0 : index
    %c4_178 = arith.constant 4 : index
    %c0_179 = arith.constant 0 : index
    %227 = vector.load %arg1[%c0_177, %c4_178, %c0_179] : memref<4x10x256xf32, #tpu.memory_space<vmem>>, vector<4x1x256xf32>
    %228 = vector.shape_cast %227 : vector<4x1x256xf32> to vector<4x256xf32>
    %cst_180 = arith.constant 0.353553385 : f32
    %229 = vector.broadcast %cst_180 : f32 to vector<4x256xf32>
    %230 = arith.mulf %229, %228 : vector<4x256xf32>
    %231 = arith.addf %226, %230 : vector<4x256xf32>
    %c0_181 = arith.constant 0 : index
    %c5_182 = arith.constant 5 : index
    %c0_183 = arith.constant 0 : index
    %232 = vector.load %arg1[%c0_181, %c5_182, %c0_183] : memref<4x10x256xf32, #tpu.memory_space<vmem>>, vector<4x1x256xf32>
    %233 = vector.shape_cast %232 : vector<4x1x256xf32> to vector<4x256xf32>
    %cst_184 = arith.constant 8.6595606E-17 : f32
    %234 = vector.broadcast %cst_184 : f32 to vector<4x256xf32>
    %235 = arith.mulf %234, %233 : vector<4x256xf32>
    %236 = arith.addf %231, %235 : vector<4x256xf32>
    %c0_185 = arith.constant 0 : index
    %c6_186 = arith.constant 6 : index
    %c0_187 = arith.constant 0 : index
    %237 = vector.load %arg1[%c0_185, %c6_186, %c0_187] : memref<4x10x256xf32, #tpu.memory_space<vmem>>, vector<4x1x256xf32>
    %238 = vector.shape_cast %237 : vector<4x1x256xf32> to vector<4x256xf32>
    %cst_188 = arith.constant 0.353553385 : f32
    %239 = vector.broadcast %cst_188 : f32 to vector<4x256xf32>
    %240 = arith.mulf %239, %238 : vector<4x256xf32>
    %241 = arith.addf %236, %240 : vector<4x256xf32>
    %c0_189 = arith.constant 0 : index
    %c7_190 = arith.constant 7 : index
    %c0_191 = arith.constant 0 : index
    %242 = vector.load %arg1[%c0_189, %c7_190, %c0_191] : memref<4x10x256xf32, #tpu.memory_space<vmem>>, vector<4x1x256xf32>
    %243 = vector.shape_cast %242 : vector<4x1x256xf32> to vector<4x256xf32>
    %cst_192 = arith.constant 2.59786805E-16 : f32
    %244 = vector.broadcast %cst_192 : f32 to vector<4x256xf32>
    %245 = arith.mulf %244, %243 : vector<4x256xf32>
    %246 = arith.addf %241, %245 : vector<4x256xf32>
    %c0_193 = arith.constant 0 : index
    %c8_194 = arith.constant 8 : index
    %c0_195 = arith.constant 0 : index
    %247 = vector.load %arg1[%c0_193, %c8_194, %c0_195] : memref<4x10x256xf32, #tpu.memory_space<vmem>>, vector<4x1x256xf32>
    %248 = vector.shape_cast %247 : vector<4x1x256xf32> to vector<4x256xf32>
    %cst_196 = arith.constant -0.353553385 : f32
    %249 = vector.broadcast %cst_196 : f32 to vector<4x256xf32>
    %250 = arith.mulf %249, %248 : vector<4x256xf32>
    %251 = arith.addf %246, %250 : vector<4x256xf32>
    %c0_197 = arith.constant 0 : index
    %c9_198 = arith.constant 9 : index
    %c0_199 = arith.constant 0 : index
    %252 = vector.load %arg1[%c0_197, %c9_198, %c0_199] : memref<4x10x256xf32, #tpu.memory_space<vmem>>, vector<4x1x256xf32>
    %253 = vector.shape_cast %252 : vector<4x1x256xf32> to vector<4x256xf32>
    %cst_200 = arith.constant -3.03084615E-16 : f32
    %254 = vector.broadcast %cst_200 : f32 to vector<4x256xf32>
    %255 = arith.mulf %254, %253 : vector<4x256xf32>
    %256 = arith.addf %251, %255 : vector<4x256xf32>
    %c0_201 = arith.constant 0 : index
    %c4_202 = arith.constant 4 : index
    %c0_203 = arith.constant 0 : index
    %257 = vector.load %arg2[%c0_201, %c4_202, %c0_203] : memref<4x8x256xf32, #tpu.memory_space<vmem>>, vector<4x1x256xf32>
    %258 = vector.shape_cast %257 : vector<4x1x256xf32> to vector<4x256xf32>
    %259 = vector.shape_cast %256 : vector<4x256xf32> to vector<4x1x256xf32>
    tpu.vector_store %arg2[%c0_201, %c4_202, %c0_203], %259 {strides = array<i32>} : memref<4x8x256xf32, #tpu.memory_space<vmem>>, vector<4x1x256xf32>,
    %c0_204 = arith.constant 0 : index
    %c0_205 = arith.constant 0 : index
    %c0_206 = arith.constant 0 : index
    %260 = vector.load %arg1[%c0_204, %c0_205, %c0_206] : memref<4x10x256xf32, #tpu.memory_space<vmem>>, vector<4x1x256xf32>
    %261 = vector.shape_cast %260 : vector<4x1x256xf32> to vector<4x256xf32>
    %cst_207 = arith.constant 0.353553385 : f32
    %262 = vector.broadcast %cst_207 : f32 to vector<4x256xf32>
    %263 = arith.mulf %262, %261 : vector<4x256xf32>
    %c0_208 = arith.constant 0 : index
    %c1_209 = arith.constant 1 : index
    %c0_210 = arith.constant 0 : index
    %264 = vector.load %arg1[%c0_208, %c1_209, %c0_210] : memref<4x10x256xf32, #tpu.memory_space<vmem>>, vector<4x1x256xf32>
    %265 = vector.shape_cast %264 : vector<4x1x256xf32> to vector<4x256xf32>
    %cst_211 = arith.constant -0.000000e+00 : f32
    %266 = vector.broadcast %cst_211 : f32 to vector<4x256xf32>
    %267 = arith.mulf %266, %265 : vector<4x256xf32>
    %268 = arith.addf %263, %267 : vector<4x256xf32>
    %c0_212 = arith.constant 0 : index
    %c2_213 = arith.constant 2 : index
    %c0_214 = arith.constant 0 : index
    %269 = vector.load %arg1[%c0_212, %c2_213, %c0_214] : memref<4x10x256xf32, #tpu.memory_space<vmem>>, vector<4x1x256xf32>
    %270 = vector.shape_cast %269 : vector<4x1x256xf32> to vector<4x256xf32>
    %cst_215 = arith.constant -2.500000e-01 : f32
    %271 = vector.broadcast %cst_215 : f32 to vector<4x256xf32>
    %272 = arith.mulf %271, %270 : vector<4x256xf32>
    %273 = arith.addf %268, %272 : vector<4x256xf32>
    %c0_216 = arith.constant 0 : index
    %c3_217 = arith.constant 3 : index
    %c0_218 = arith.constant 0 : index
    %274 = vector.load %arg1[%c0_216, %c3_217, %c0_218] : memref<4x10x256xf32, #tpu.memory_space<vmem>>, vector<4x1x256xf32>
    %275 = vector.shape_cast %274 : vector<4x1x256xf32> to vector<4x256xf32>
    %cst_219 = arith.constant 2.500000e-01 : f32
    %276 = vector.broadcast %cst_219 : f32 to vector<4x256xf32>
    %277 = arith.mulf %276, %275 : vector<4x256xf32>
    %278 = arith.addf %273, %277 : vector<4x256xf32>
    %c0_220 = arith.constant 0 : index
    %c4_221 = arith.constant 4 : index
    %c0_222 = arith.constant 0 : index
    %279 = vector.load %arg1[%c0_220, %c4_221, %c0_222] : memref<4x10x256xf32, #tpu.memory_space<vmem>>, vector<4x1x256xf32>
    %280 = vector.shape_cast %279 : vector<4x1x256xf32> to vector<4x256xf32>
    %cst_223 = arith.constant 1.08244504E-16 : f32
    %281 = vector.broadcast %cst_223 : f32 to vector<4x256xf32>
    %282 = arith.mulf %281, %280 : vector<4x256xf32>
    %283 = arith.addf %278, %282 : vector<4x256xf32>
    %c0_224 = arith.constant 0 : index
    %c5_225 = arith.constant 5 : index
    %c0_226 = arith.constant 0 : index
    %284 = vector.load %arg1[%c0_224, %c5_225, %c0_226] : memref<4x10x256xf32, #tpu.memory_space<vmem>>, vector<4x1x256xf32>
    %285 = vector.shape_cast %284 : vector<4x1x256xf32> to vector<4x256xf32>
    %cst_227 = arith.constant -0.353553385 : f32
    %286 = vector.broadcast %cst_227 : f32 to vector<4x256xf32>
    %287 = arith.mulf %286, %285 : vector<4x256xf32>
    %288 = arith.addf %283, %287 : vector<4x256xf32>
    %c0_228 = arith.constant 0 : index
    %c6_229 = arith.constant 6 : index
    %c0_230 = arith.constant 0 : index
    %289 = vector.load %arg1[%c0_228, %c6_229, %c0_230] : memref<4x10x256xf32, #tpu.memory_space<vmem>>, vector<4x1x256xf32>
    %290 = vector.shape_cast %289 : vector<4x1x256xf32> to vector<4x256xf32>
    %cst_231 = arith.constant -9.52770505E-16 : f32
    %291 = vector.broadcast %cst_231 : f32 to vector<4x256xf32>
    %292 = arith.mulf %291, %290 : vector<4x256xf32>
    %293 = arith.addf %288, %292 : vector<4x256xf32>
    %c0_232 = arith.constant 0 : index
    %c7_233 = arith.constant 7 : index
    %c0_234 = arith.constant 0 : index
    %294 = vector.load %arg1[%c0_232, %c7_233, %c0_234] : memref<4x10x256xf32, #tpu.memory_space<vmem>>, vector<4x1x256xf32>
    %295 = vector.shape_cast %294 : vector<4x1x256xf32> to vector<4x256xf32>
    %cst_235 = arith.constant 0.353553385 : f32
    %296 = vector.broadcast %cst_235 : f32 to vector<4x256xf32>
    %297 = arith.mulf %296, %295 : vector<4x256xf32>
    %298 = arith.addf %293, %297 : vector<4x256xf32>
    %c0_236 = arith.constant 0 : index
    %c8_237 = arith.constant 8 : index
    %c0_238 = arith.constant 0 : index
    %299 = vector.load %arg1[%c0_236, %c8_237, %c0_238] : memref<4x10x256xf32, #tpu.memory_space<vmem>>, vector<4x1x256xf32>
    %300 = vector.shape_cast %299 : vector<4x1x256xf32> to vector<4x256xf32>
    %cst_239 = arith.constant -2.500000e-01 : f32
    %301 = vector.broadcast %cst_239 : f32 to vector<4x256xf32>
    %302 = arith.mulf %301, %300 : vector<4x256xf32>
    %303 = arith.addf %298, %302 : vector<4x256xf32>
    %c0_240 = arith.constant 0 : index
    %c9_241 = arith.constant 9 : index
    %c0_242 = arith.constant 0 : index
    %304 = vector.load %arg1[%c0_240, %c9_241, %c0_242] : memref<4x10x256xf32, #tpu.memory_space<vmem>>, vector<4x1x256xf32>
    %305 = vector.shape_cast %304 : vector<4x1x256xf32> to vector<4x256xf32>
    %cst_243 = arith.constant -2.500000e-01 : f32
    %306 = vector.broadcast %cst_243 : f32 to vector<4x256xf32>
    %307 = arith.mulf %306, %305 : vector<4x256xf32>
    %308 = arith.addf %303, %307 : vector<4x256xf32>
    %c0_244 = arith.constant 0 : index
    %c5_245 = arith.constant 5 : index
    %c0_246 = arith.constant 0 : index
    %309 = vector.load %arg2[%c0_244, %c5_245, %c0_246] : memref<4x8x256xf32, #tpu.memory_space<vmem>>, vector<4x1x256xf32>
    %310 = vector.shape_cast %309 : vector<4x1x256xf32> to vector<4x256xf32>
    %311 = vector.shape_cast %308 : vector<4x256xf32> to vector<4x1x256xf32>
    tpu.vector_store %arg2[%c0_244, %c5_245, %c0_246], %311 {strides = array<i32>} : memref<4x8x256xf32, #tpu.memory_space<vmem>>, vector<4x1x256xf32>,
    %c0_247 = arith.constant 0 : index
    %c0_248 = arith.constant 0 : index
    %c0_249 = arith.constant 0 : index
    %312 = vector.load %arg1[%c0_247, %c0_248, %c0_249] : memref<4x10x256xf32, #tpu.memory_space<vmem>>, vector<4x1x256xf32>
    %313 = vector.shape_cast %312 : vector<4x1x256xf32> to vector<4x256xf32>
    %cst_250 = arith.constant 0.353553385 : f32
    %314 = vector.broadcast %cst_250 : f32 to vector<4x256xf32>
    %315 = arith.mulf %314, %313 : vector<4x256xf32>
    %c0_251 = arith.constant 0 : index
    %c1_252 = arith.constant 1 : index
    %c0_253 = arith.constant 0 : index
    %316 = vector.load %arg1[%c0_251, %c1_252, %c0_253] : memref<4x10x256xf32, #tpu.memory_space<vmem>>, vector<4x1x256xf32>
    %317 = vector.shape_cast %316 : vector<4x1x256xf32> to vector<4x256xf32>
    %cst_254 = arith.constant -0.000000e+00 : f32
    %318 = vector.broadcast %cst_254 : f32 to vector<4x256xf32>
    %319 = arith.mulf %318, %317 : vector<4x256xf32>
    %320 = arith.addf %315, %319 : vector<4x256xf32>
    %c0_255 = arith.constant 0 : index
    %c2_256 = arith.constant 2 : index
    %c0_257 = arith.constant 0 : index
    %321 = vector.load %arg1[%c0_255, %c2_256, %c0_257] : memref<4x10x256xf32, #tpu.memory_space<vmem>>, vector<4x1x256xf32>
    %322 = vector.shape_cast %321 : vector<4x1x256xf32> to vector<4x256xf32>
    %cst_258 = arith.constant -6.494670e-17 : f32
    %323 = vector.broadcast %cst_258 : f32 to vector<4x256xf32>
    %324 = arith.mulf %323, %322 : vector<4x256xf32>
    %325 = arith.addf %320, %324 : vector<4x256xf32>
    %c0_259 = arith.constant 0 : index
    %c3_260 = arith.constant 3 : index
    %c0_261 = arith.constant 0 : index
    %326 = vector.load %arg1[%c0_259, %c3_260, %c0_261] : memref<4x10x256xf32, #tpu.memory_space<vmem>>, vector<4x1x256xf32>
    %327 = vector.shape_cast %326 : vector<4x1x256xf32> to vector<4x256xf32>
    %cst_262 = arith.constant 0.353553385 : f32
    %328 = vector.broadcast %cst_262 : f32 to vector<4x256xf32>
    %329 = arith.mulf %328, %327 : vector<4x256xf32>
    %330 = arith.addf %325, %329 : vector<4x256xf32>
    %c0_263 = arith.constant 0 : index
    %c4_264 = arith.constant 4 : index
    %c0_265 = arith.constant 0 : index
    %331 = vector.load %arg1[%c0_263, %c4_264, %c0_265] : memref<4x10x256xf32, #tpu.memory_space<vmem>>, vector<4x1x256xf32>
    %332 = vector.shape_cast %331 : vector<4x1x256xf32> to vector<4x256xf32>
    %cst_266 = arith.constant -0.353553385 : f32
    %333 = vector.broadcast %cst_266 : f32 to vector<4x256xf32>
    %334 = arith.mulf %333, %332 : vector<4x256xf32>
    %335 = arith.addf %330, %334 : vector<4x256xf32>
    %c0_267 = arith.constant 0 : index
    %c5_268 = arith.constant 5 : index
    %c0_269 = arith.constant 0 : index
    %336 = vector.load %arg1[%c0_267, %c5_268, %c0_269] : memref<4x10x256xf32, #tpu.memory_space<vmem>>, vector<4x1x256xf32>
    %337 = vector.shape_cast %336 : vector<4x1x256xf32> to vector<4x256xf32>
    %cst_270 = arith.constant -1.29893402E-16 : f32
    %338 = vector.broadcast %cst_270 : f32 to vector<4x256xf32>
    %339 = arith.mulf %338, %337 : vector<4x256xf32>
    %340 = arith.addf %335, %339 : vector<4x256xf32>
    %c0_271 = arith.constant 0 : index
    %c6_272 = arith.constant 6 : index
    %c0_273 = arith.constant 0 : index
    %341 = vector.load %arg1[%c0_271, %c6_272, %c0_273] : memref<4x10x256xf32, #tpu.memory_space<vmem>>, vector<4x1x256xf32>
    %342 = vector.shape_cast %341 : vector<4x1x256xf32> to vector<4x256xf32>
    %cst_274 = arith.constant -0.353553385 : f32
    %343 = vector.broadcast %cst_274 : f32 to vector<4x256xf32>
    %344 = arith.mulf %343, %342 : vector<4x256xf32>
    %345 = arith.addf %340, %344 : vector<4x256xf32>
    %c0_275 = arith.constant 0 : index
    %c7_276 = arith.constant 7 : index
    %c0_277 = arith.constant 0 : index
    %346 = vector.load %arg1[%c0_275, %c7_276, %c0_277] : memref<4x10x256xf32, #tpu.memory_space<vmem>>, vector<4x1x256xf32>
    %347 = vector.shape_cast %346 : vector<4x1x256xf32> to vector<4x256xf32>
    %cst_278 = arith.constant -3.89680234E-16 : f32
    %348 = vector.broadcast %cst_278 : f32 to vector<4x256xf32>
    %349 = arith.mulf %348, %347 : vector<4x256xf32>
    %350 = arith.addf %345, %349 : vector<4x256xf32>
    %c0_279 = arith.constant 0 : index
    %c8_280 = arith.constant 8 : index
    %c0_281 = arith.constant 0 : index
    %351 = vector.load %arg1[%c0_279, %c8_280, %c0_281] : memref<4x10x256xf32, #tpu.memory_space<vmem>>, vector<4x1x256xf32>
    %352 = vector.shape_cast %351 : vector<4x1x256xf32> to vector<4x256xf32>
    %cst_282 = arith.constant -1.73410051E-16 : f32
    %353 = vector.broadcast %cst_282 : f32 to vector<4x256xf32>
    %354 = arith.mulf %353, %352 : vector<4x256xf32>
    %355 = arith.addf %350, %354 : vector<4x256xf32>
    %c0_283 = arith.constant 0 : index
    %c9_284 = arith.constant 9 : index
    %c0_285 = arith.constant 0 : index
    %356 = vector.load %arg1[%c0_283, %c9_284, %c0_285] : memref<4x10x256xf32, #tpu.memory_space<vmem>>, vector<4x1x256xf32>
    %357 = vector.shape_cast %356 : vector<4x1x256xf32> to vector<4x256xf32>
    %cst_286 = arith.constant -0.353553385 : f32
    %358 = vector.broadcast %cst_286 : f32 to vector<4x256xf32>
    %359 = arith.mulf %358, %357 : vector<4x256xf32>
    %360 = arith.addf %355, %359 : vector<4x256xf32>
    %c0_287 = arith.constant 0 : index
    %c6_288 = arith.constant 6 : index
    %c0_289 = arith.constant 0 : index
    %361 = vector.load %arg2[%c0_287, %c6_288, %c0_289] : memref<4x8x256xf32, #tpu.memory_space<vmem>>, vector<4x1x256xf32>
    %362 = vector.shape_cast %361 : vector<4x1x256xf32> to vector<4x256xf32>
    %363 = vector.shape_cast %360 : vector<4x256xf32> to vector<4x1x256xf32>
    tpu.vector_store %arg2[%c0_287, %c6_288, %c0_289], %363 {strides = array<i32>} : memref<4x8x256xf32, #tpu.memory_space<vmem>>, vector<4x1x256xf32>,
    %c0_290 = arith.constant 0 : index
    %c0_291 = arith.constant 0 : index
    %c0_292 = arith.constant 0 : index
    %364 = vector.load %arg1[%c0_290, %c0_291, %c0_292] : memref<4x10x256xf32, #tpu.memory_space<vmem>>, vector<4x1x256xf32>
    %365 = vector.shape_cast %364 : vector<4x1x256xf32> to vector<4x256xf32>
    %cst_293 = arith.constant 0.353553385 : f32
    %366 = vector.broadcast %cst_293 : f32 to vector<4x256xf32>
    %367 = arith.mulf %366, %365 : vector<4x256xf32>
    %c0_294 = arith.constant 0 : index
    %c1_295 = arith.constant 1 : index
    %c0_296 = arith.constant 0 : index
    %368 = vector.load %arg1[%c0_294, %c1_295, %c0_296] : memref<4x10x256xf32, #tpu.memory_space<vmem>>, vector<4x1x256xf32>
    %369 = vector.shape_cast %368 : vector<4x1x256xf32> to vector<4x256xf32>
    %cst_297 = arith.constant -0.000000e+00 : f32
    %370 = vector.broadcast %cst_297 : f32 to vector<4x256xf32>
    %371 = arith.mulf %370, %369 : vector<4x256xf32>
    %372 = arith.addf %367, %371 : vector<4x256xf32>
    %c0_298 = arith.constant 0 : index
    %c2_299 = arith.constant 2 : index
    %c0_300 = arith.constant 0 : index
    %373 = vector.load %arg1[%c0_298, %c2_299, %c0_300] : memref<4x10x256xf32, #tpu.memory_space<vmem>>, vector<4x1x256xf32>
    %374 = vector.shape_cast %373 : vector<4x1x256xf32> to vector<4x256xf32>
    %cst_301 = arith.constant 2.500000e-01 : f32
    %375 = vector.broadcast %cst_301 : f32 to vector<4x256xf32>
    %376 = arith.mulf %375, %374 : vector<4x256xf32>
    %377 = arith.addf %372, %376 : vector<4x256xf32>
    %c0_302 = arith.constant 0 : index
    %c3_303 = arith.constant 3 : index
    %c0_304 = arith.constant 0 : index
    %378 = vector.load %arg1[%c0_302, %c3_303, %c0_304] : memref<4x10x256xf32, #tpu.memory_space<vmem>>, vector<4x1x256xf32>
    %379 = vector.shape_cast %378 : vector<4x1x256xf32> to vector<4x256xf32>
    %cst_305 = arith.constant 2.500000e-01 : f32
    %380 = vector.broadcast %cst_305 : f32 to vector<4x256xf32>
    %381 = arith.mulf %380, %379 : vector<4x256xf32>
    %382 = arith.addf %377, %381 : vector<4x256xf32>
    %c0_306 = arith.constant 0 : index
    %c4_307 = arith.constant 4 : index
    %c0_308 = arith.constant 0 : index
    %383 = vector.load %arg1[%c0_306, %c4_307, %c0_308] : memref<4x10x256xf32, #tpu.memory_space<vmem>>, vector<4x1x256xf32>
    %384 = vector.shape_cast %383 : vector<4x1x256xf32> to vector<4x256xf32>
    %cst_309 = arith.constant -1.51542307E-16 : f32
    %385 = vector.broadcast %cst_309 : f32 to vector<4x256xf32>
    %386 = arith.mulf %385, %384 : vector<4x256xf32>
    %387 = arith.addf %382, %386 : vector<4x256xf32>
    %c0_310 = arith.constant 0 : index
    %c5_311 = arith.constant 5 : index
    %c0_312 = arith.constant 0 : index
    %388 = vector.load %arg1[%c0_310, %c5_311, %c0_312] : memref<4x10x256xf32, #tpu.memory_space<vmem>>, vector<4x1x256xf32>
    %389 = vector.shape_cast %388 : vector<4x1x256xf32> to vector<4x256xf32>
    %cst_313 = arith.constant 0.353553385 : f32
    %390 = vector.broadcast %cst_313 : f32 to vector<4x256xf32>
    %391 = arith.mulf %390, %389 : vector<4x256xf32>
    %392 = arith.addf %387, %391 : vector<4x256xf32>
    %c0_314 = arith.constant 0 : index
    %c6_315 = arith.constant 6 : index
    %c0_316 = arith.constant 0 : index
    %393 = vector.load %arg1[%c0_314, %c6_315, %c0_316] : memref<4x10x256xf32, #tpu.memory_space<vmem>>, vector<4x1x256xf32>
    %394 = vector.shape_cast %393 : vector<4x1x256xf32> to vector<4x256xf32>
    %cst_317 = arith.constant -1.73410051E-16 : f32
    %395 = vector.broadcast %cst_317 : f32 to vector<4x256xf32>
    %396 = arith.mulf %395, %394 : vector<4x256xf32>
    %397 = arith.addf %392, %396 : vector<4x256xf32>
    %c0_318 = arith.constant 0 : index
    %c7_319 = arith.constant 7 : index
    %c0_320 = arith.constant 0 : index
    %398 = vector.load %arg1[%c0_318, %c7_319, %c0_320] : memref<4x10x256xf32, #tpu.memory_space<vmem>>, vector<4x1x256xf32>
    %399 = vector.shape_cast %398 : vector<4x1x256xf32> to vector<4x256xf32>
    %cst_321 = arith.constant -0.353553385 : f32
    %400 = vector.broadcast %cst_321 : f32 to vector<4x256xf32>
    %401 = arith.mulf %400, %399 : vector<4x256xf32>
    %402 = arith.addf %397, %401 : vector<4x256xf32>
    %c0_322 = arith.constant 0 : index
    %c8_323 = arith.constant 8 : index
    %c0_324 = arith.constant 0 : index
    %403 = vector.load %arg1[%c0_322, %c8_323, %c0_324] : memref<4x10x256xf32, #tpu.memory_space<vmem>>, vector<4x1x256xf32>
    %404 = vector.shape_cast %403 : vector<4x1x256xf32> to vector<4x256xf32>
    %cst_325 = arith.constant 2.500000e-01 : f32
    %405 = vector.broadcast %cst_325 : f32 to vector<4x256xf32>
    %406 = arith.mulf %405, %404 : vector<4x256xf32>
    %407 = arith.addf %402, %406 : vector<4x256xf32>
    %c0_326 = arith.constant 0 : index
    %c9_327 = arith.constant 9 : index
    %c0_328 = arith.constant 0 : index
    %408 = vector.load %arg1[%c0_326, %c9_327, %c0_328] : memref<4x10x256xf32, #tpu.memory_space<vmem>>, vector<4x1x256xf32>
    %409 = vector.shape_cast %408 : vector<4x1x256xf32> to vector<4x256xf32>
    %cst_329 = arith.constant -2.500000e-01 : f32
    %410 = vector.broadcast %cst_329 : f32 to vector<4x256xf32>
    %411 = arith.mulf %410, %409 : vector<4x256xf32>
    %412 = arith.addf %407, %411 : vector<4x256xf32>
    %c0_330 = arith.constant 0 : index
    %c7_331 = arith.constant 7 : index
    %c0_332 = arith.constant 0 : index
    %413 = vector.load %arg2[%c0_330, %c7_331, %c0_332] : memref<4x8x256xf32, #tpu.memory_space<vmem>>, vector<4x1x256xf32>
    %414 = vector.shape_cast %413 : vector<4x1x256xf32> to vector<4x256xf32>
    %415 = vector.shape_cast %412 : vector<4x256xf32> to vector<4x1x256xf32>
    tpu.vector_store %arg2[%c0_330, %c7_331, %c0_332], %415 {strides = array<i32>} : memref<4x8x256xf32, #tpu.memory_space<vmem>>, vector<4x1x256xf32>,
    return
  }
  func.func @transform_0(%arg0: i32) -> (i32, i32, i32) {
    %c0_i32 = arith.constant 0 : i32
    %c0_i32_0 = arith.constant 0 : i32
    %c0_i32_1 = arith.constant 0 : i32
    return %arg0, %c0_i32, %c0_i32_0 : i32, i32, i32
  }
  func.func @transform_1(%arg0: i32) -> (i32, i32, i32) {
    %c0_i32 = arith.constant 0 : i32
    %c0_i32_0 = arith.constant 0 : i32
    %c0_i32_1 = arith.constant 0 : i32
    return %arg0, %c0_i32, %c0_i32_0 : i32, i32, i32
  }
}

</mosaic_0001>

<bundles_post_ra>
// kernel: custom-call
= control target key start
LH: loop header
LB: loop body
LE: loop exit
PB: predicated region body
PF: predicated region fallthrough
CT: control target
= control target key end

     0   :  { %2 = vsyncpa [#allocation0], 0  ;;  %s55_s0 = inlined_call_operand.hbm [shape: c64[2,4,5,11,6], index: 0, kind: input, shape index: {}]   ;;  %s56_s1 = inlined_call_operand.vmem [shape: f32[2,4,5,11,6], index: 1, kind: output, shape index: {}]  }
   0x1   :  { %s4_s8 = sshll.u32 %s55_s0, 4  ;;  %s6_s11 = sshll.u32 %s56_s1, 4  ;;  %s5_s8 = int_to_ptr.hbm [resolvable:$true] %s4_s8  ;;  %s7_s11 = int_to_ptr.vmem [resolvable:$true] %s6_s11 }
   0x2   :  { %9 = dma.hbm_to_vmem [thread:$0]  %s5_s8, 3840, %s7_s11, [#allocation0] }
   0x3   :  { %37 = dma.done.wait [#allocation0], 3840  }
   0x4   :  { %38 = vsyncadd [#allocation0], 4294963456 }
   0x5   :  { %12 = vsyncpa [#allocation0], 1 }

// kernel: custom-call.1
= control target key start
LH: loop header
LB: loop body
LE: loop exit
PB: predicated region body
PF: predicated region fallthrough
CT: control target
= control target key end

     0   :  { %s56_s0 = inlined_call_operand.hbm [shape: c64[2,4,5,11,6], index: 0, kind: input, shape index: {}]   ;;  %s57_s1 = inlined_call_operand.vmem [shape: f32[2,4,5,11,6], index: 1, kind: output, shape index: {}]  }
   0x1   :  { %s2_s8 = scalar_lea.hbm %s56_s0, 240 }
   0x2   :  { %3 = vsyncpa [#allocation0], 0  ;;  %s5_s9 = sshll.u32 %s2_s8, 4  ;;  %s7_s12 = sshll.u32 %s57_s1, 4  ;;  %s6_s9 = int_to_ptr.hbm [resolvable:$true] %s5_s9  ;;  %s8_s12 = int_to_ptr.vmem [resolvable:$true] %s7_s12 }
   0x3   :  { %10 = dma.hbm_to_vmem [thread:$0]  %s6_s9, 3840, %s8_s12, [#allocation0] }
   0x4   :  { %38 = dma.done.wait [#allocation0], 3840  }
   0x5   :  { %39 = vsyncadd [#allocation0], 4294963456 }
   0x6   :  { %13 = vsyncpa [#allocation0], 1 }

// kernel: a_call__.2
= control target key start
LH: loop header
LB: loop body
LE: loop exit
PB: predicated region body
PF: predicated region fallthrough
CT: control target
= control target key end

     0   :  { %s1169_s9 = smov 0   ;;  %s1171_s10 = smov 0   ;;  %s1554_s0 = inlined_call_operand.vmem [shape: bf16[40,132], index: 0, kind: input, shape index: {}]   ;;  %s1555_s1 = inlined_call_operand.vmem [shape: bf16[132,512], index: 1, kind: input, shape index: {}]   ;;  %s1556_s2 = inlined_call_operand.vmem [shape: f32[40,512], index: 2, kind: output, shape index: {}]  }
   0x1   :  { %s1173_s11 = smov 0  }
   0x2 LB: > { %s1182_s12 = sadd.s32 4294967295, %s1120_s11   ;;  %s1184_s13 = sadd.s32 1, %s1120_s11   ;;  %s1120_s11 = sphi %s1173_s11, %s1567_s11   ;;  %s1116_s10 = sphi %s1171_s10, %s1566_s10   ;;  %s1112_s9 = sphi %s1169_s9, %s1565_s9  }
   0x3   : > { %s63_s14 = ssub.s32 %s1120_s11, %s1184_s13  ;;  %s66_s15 = sadd.s32 1, %s1116_s10 }
   0x4   : > { %p64_p0 = scmp.eq.s32.totalorder %s63_s14, 0  ;;  %p76_p1 = scmp.ne.s32.totalorder %s1116_s10, %s1112_s9 }
   0x5   : > { %p77_p2 = scmp.eq.s32.totalorder %s1182_s12, 1  ;;  %p761_p3 = scmp.ge.s32.totalorder %s1120_s11, 1 }
   0x6   : > { %s1192_s16 = scalar_select %p64_p0, %s1116_s10, %s66_s15  }
   0x7   : > { %p1194_p4 = por %p77_p2, %p76_p1  ;;  %p124_p5 = scmp.lt.s32.totalorder %s1120_s11, 3 }
   0x9   : > { %p125_p6 = pnand %p761_p3, %p124_p5 }
   0xa   : > { %s1229_s14 = smul.u32 (!%p125_p6), 3, %s1182_s12  ;;  %s148_s3 = sand.u32 (!%p125_p6), 1, %s1112_s9  }
   0xb   : > { %128 = sbr.rel (%p125_p6) target bundleno = 293 (0x125), region = 28 }
   0xc   : > { %p157_p7 = scmp.lt.s32.totalorder (!%p125_p6), %s1229_s14, 4  ;;  %s970_s4 = smul.u32 (!%p125_p6), 96, %s148_s3 }
   0xe   : > { %s1444_s5 = scalar_lea.vmem (!%p125_p6), [#allocation2], %s970_s4  }
  0x10   : > { %v886_v0 = vld [vmem:[%s1555_s1 + $0xe0] sm:$0xf]  ;;  %v955_v1 = vld [vmem:[%s1555_s1 + $0xec] sm:$0xf0]  ;;  %v953_v2 = vld [vmem:[%s1555_s1 + $0xe4] sm:$0xf] }
  0x11   : > { %v887_v3 = vor.u32 %v955_v1, %v886_v0  ;;  %v888_v4 = vld [vmem:[%s1555_s1 + $0xf0] sm:$0xf0]  ;;  %v870_v5 = vld [vmem:[%s1555_s1 + $0xc0] sm:$0xf]  ;;  %v951_v6 = vld [vmem:[%s1555_s1 + $0xcc] sm:$0xf0] }
  0x12   : > { %v891_v7 = vor.u32 %v953_v2, %v888_v4  ;;  %v949_v8 = vld [vmem:[%s1555_s1 + $0xc4] sm:$0xf]  ;;  %v872_v9 = vld [vmem:[%s1555_s1 + $0xd0] sm:$0xf0]  ;;  %v871_v11 = vor.u32 %v951_v6, %v870_v5  ;;  %vm404_vm0 = vcmask 1041408   ;;  %s158_s29 = scalar_select %p157_p7, %s1229_s14, 4 }
  0x13   : > { %v210_v10 = vld [vmem:[%s1555_s1 + $0x100] sm:$0x33]  ;;  %417 = vmatpush.bf16.msra.mxu0 %v887_v3  ;;  %v875_v15 = vor.u32 %v949_v8, %v872_v9  ;;  %v947_v16 = vld [vmem:[%s1555_s1 + $0xac] sm:$0xf0]  ;;  %v856_v18 = vld [vmem:[%s1555_s1 + $0xb0] sm:$0xf0] }
  0x14   : > { %v325_v12 = vunpack.c.l.b16 %v210_v10  ;;  %v326_v13 = vunpack.c.h.b16 %v210_v10  ;;  %v854_v14 = vld [vmem:[%s1555_s1 + $0xa0] sm:$0xf]  ;;  %453 = vmatpush.bf16.msra.mxu2 %v891_v7  ;;  %v945_v17 = vld [vmem:[%s1555_s1 + $0xa4] sm:$0xf]  ;;  %v211_v21 = vld [vmem:[%s1555_s1 + $0x108] sm:$0x33] }
  0x15   : > { %v894_v22 = vld [vmem:[%s1555_s1 + $0xe8] sm:$0xf]  ;;  %v327_v23 = vunpack.c.l.b16 %v211_v21  ;;  %v956_v24 = vld [vmem:[%s1555_s1 + $0xf4] sm:$0xf0]  ;;  %v328_v25 = vunpack.c.h.b16 %v211_v21  ;;  %v855_v28 = vor.u32 %v947_v16, %v854_v14  ;;  %v838_v30 = vld [vmem:[%s1555_s1 + $0x80] sm:$0xf]  ;;  %v859_v31 = vor.u32 %v945_v17, %v856_v18 }
  0x16   : > { %v361_v19 = vpack.c.b16 %v325_v12, %v325_v12  ;;  %v362_v20 = vpack.c.b16 %v326_v13, %v326_v13  ;;  %v895_v29 = vor.u32 %v956_v24, %v894_v22  ;;  %v943_v33 = vld [vmem:[%s1555_s1 + $0x8c] sm:$0xf0]  ;;  %v878_v34 = vld [vmem:[%s1555_s1 + $0xc8] sm:$0xf]  ;;  %v952_v35 = vld [vmem:[%s1555_s1 + $0xd4] sm:$0xf0] }
  0x17   : > { %418 = vmatpush.bf16.msra.mxu0 %v871_v11  ;;  %v363_v32 = vpack.c.b16 %v327_v23, %v327_v23  ;;  %s922_s15 = sshll.u32 %s158_s29, 3  ;;  %v941_v36 = vld [vmem:[%s1555_s1 + $0x84] sm:$0xf]  ;;  %v840_v37 = vld [vmem:[%s1555_s1 + $0x90] sm:$0xf0]  ;;  %v879_v38 = vor.u32 %v952_v35, %v878_v34  ;;  %vm397_vm1 = vcmask 31744   ;;  %v364_v40 = vpack.c.b16 %v328_v25, %v328_v25 }
  0x18   : > { %v406_v26 = vsel %vm404_vm0, %v361_v19, 0  ;;  %v409_v27 = vsel %vm404_vm0, %v362_v20, 0  ;;  %454 = vmatpush.bf16.msra.mxu2 %v875_v15  ;;  %s1274_s24 = scalar_lea.vmem %s1554_s0, %s922_s15  ;;  %v839_v43 = vor.u32 %v943_v33, %v838_v30  ;;  %v862_v44 = vld [vmem:[%s1555_s1 + $0xa8] sm:$0xf]  ;;  %v843_v46 = vor.u32 %v941_v36, %v840_v37  ;;  %v822_v47 = vld [vmem:[%s1555_s1 + $0x60] sm:$0xf] }
  0x19   : > { %442 = vmatpush.bf16.msra.mxu1 %v406_v26  ;;  %478 = vmatpush.bf16.msra.mxu3 %v409_v27  ;;  %v412_v39 = vsel %vm404_vm0, %v363_v32, 0  ;;  %v923_v41 = vld [vmem:[%s1274_s24 + $0x4] sm:$0xf]  ;;  %v768_v42 = vld [vmem:[%s1274_s24 + $0x8] sm:$0xf0]  ;;  %v1310_v55 = vsel %vm404_vm0, %v364_v40, 0 }
  0x1a   : > { %v1282_v45 = vor.u32 %v923_v41, %v768_v42  ;;  %v939_v48 = vld [vmem:[%s1555_s1 + $0x6c] sm:$0xf0]  ;;  %v948_v49 = vld [vmem:[%s1555_s1 + $0xb4] sm:$0xf0]  ;;  %v937_v50 = vld [vmem:[%s1555_s1 + $0x64] sm:$0xf] }
  0x1b   : > { %419 = vmatpush.bf16.msra.mxu0 %v855_v28  ;;  %v824_v51 = vld [vmem:[%s1555_s1 + $0x70] sm:$0xf0]  ;;  %v863_v52 = vor.u32 %v948_v49, %v862_v44  ;;  %v846_v53 = vld [vmem:[%s1555_s1 + $0x88] sm:$0xf]  ;;  %v944_v54 = vld [vmem:[%s1555_s1 + $0x94] sm:$0xf0]  ;;  %v823_v56 = vor.u32 %v939_v48, %v822_v47 }
  0x1c   : > { %455 = vmatpush.bf16.msra.mxu2 %v859_v31  ;;  %900 = vmatmul.msk.bf16.vlgmr.msra.gmra.mxu1 %vm397_vm1, %v1282_v45  ;;  %v827_v57 = vor.u32 %v937_v50, %v824_v51  ;;  %v806_v58 = vld [vmem:[%s1555_s1 + $0x40] sm:$0xf]  ;;  %v935_v59 = vld [vmem:[%s1555_s1 + $0x4c] sm:$0xf0]  ;;  %v933_v60 = vld [vmem:[%s1555_s1 + $0x44] sm:$0xf]  ;;  %v847_v62 = vor.u32 %v944_v54, %v846_v53 }
  0x1d   : > { %489 = vmatpush.bf16.msrb.mxu1 %v895_v29  ;;  %514 = vmatpush.bf16.msrb.mxu3 %v412_v39  ;;  %v808_v61 = vld [vmem:[%s1555_s1 + $0x50] sm:$0xf0]  ;;  %v830_v63 = vld [vmem:[%s1555_s1 + $0x68] sm:$0xf]  ;;  %v940_v0 = vld [vmem:[%s1555_s1 + $0x74] sm:$0xf0]  ;;  %v807_v1 = vor.u32 %v935_v59, %v806_v58 }
  0x1e   : > { %902 = vmatmul.msk.bf16.vlgmr.msra.gmra.mxu3 %vm397_vm1, %v1282_v45  ;;  %v1332_v2 = vld [vmem:[%s1274_s24 + $0x10] sm:$0xff]  ;;  %v811_v3 = vor.u32 %v933_v60, %v808_v61  ;;  %v790_v4 = vld [vmem:[%s1555_s1 + $0x20] sm:$0xf]  ;;  %v929_v6 = vld [vmem:[%s1555_s1 + $0x24] sm:$0xf]  ;;  %v831_v8 = vor.u32 %v940_v0, %v830_v63  ;;  %s581_s9 = ssub.s32 (%p1194_p4), 5, %s1229_s14 }
  0x1f   : > { %420 = vmatpush.bf16.msra.mxu0 %v839_v43  ;;  %v931_v5 = vld [vmem:[%s1555_s1 + $0x2c] sm:$0xf0]  ;;  %v792_v7 = vld [vmem:[%s1555_s1 + $0x30] sm:$0xf0]  ;;  %v220_v9 = vunpack.c.h.b16 %v1332_v2  ;;  %v814_v10 = vld [vmem:[%s1555_s1 + $0x48] sm:$0xf] }
  0x20   : > { %456 = vmatpush.bf16.msra.mxu2 %v843_v46  ;;  %v936_v11 = vld [vmem:[%s1555_s1 + $0x54] sm:$0xf0]  ;;  %v791_v12 = vor.u32 %v931_v5, %v790_v4  ;;  %v795_v13 = vor.u32 %v929_v6, %v792_v7  ;;  %v774_v14 = vld [vmem:[%s1555_s1] sm:$0xf]  ;;  %v927_v15 = vld [vmem:[%s1555_s1 + $0xc] sm:$0xf0]  ;;  %v219_v46 = vunpack.c.l.b16 %v1332_v2 }
  0x21   : > { %490 = vmatpush.bf16.msrb.mxu1 %v879_v38  ;;  %969 = vmatpush.bf16.msra.mxu3 %v1310_v55  ;;  %v925_v16 = vld [vmem:[%s1555_s1 + $0x4] sm:$0xf]  ;;  %v776_v17 = vld [vmem:[%s1555_s1 + $0x10] sm:$0xf0]  ;;  %v815_v18 = vor.u32 %v936_v11, %v814_v10  ;;  %v954_v19 = vld [vmem:[%s1555_s1 + $0xec] sm:$0xf]  ;;  %v1371_v21 = vpack.c.b16 %v220_v9, %v220_v9  ;;  %v775_v24 = vor.u32 %v927_v15, %v774_v14 }
  0x22   : > { %v896_v20 = vld [vmem:[%s1555_s1 + $0xf8] sm:$0xf0]  ;;  %v798_v22 = vld [vmem:[%s1555_s1 + $0x28] sm:$0xf]  ;;  %v932_v23 = vld [vmem:[%s1555_s1 + $0x34] sm:$0xf0]  ;;  %v779_v27 = vor.u32 %v925_v16, %v776_v17  ;;  %v223_v50 = vpack.c.b16 %v219_v46, %v219_v46 }
  0x23   : > { %421 = vmatpush.bf16.msra.mxu0 %v823_v56  ;;  %v766_v25 = vld [vmem:[%s1274_s24] sm:$0xf]  ;;  %v924_v26 = vld [vmem:[%s1274_s24 + $0x4] sm:$0xf0]  ;;  %v899_v28 = vor.u32 %v954_v19, %v896_v20  ;;  %v799_v29 = vor.u32 %v932_v23, %v798_v22  ;;  %v950_v30 = vld [vmem:[%s1555_s1 + $0xcc] sm:$0xf] }
  0x24   : > { %457 = vmatpush.bf16.msra.mxu2 %v827_v57  ;;  %v880_v31 = vld [vmem:[%s1555_s1 + $0xd8] sm:$0xf0]  ;;  %v767_v32 = vor.u32 %v924_v26, %v766_v25  ;;  %v782_v33 = vld [vmem:[%s1555_s1 + $0x8] sm:$0xf]  ;;  %v928_v34 = vld [vmem:[%s1555_s1 + $0x14] sm:$0xf0] }
  0x25   : > { %491 = vmatpush.bf16.msrb.mxu1 %v863_v52  ;;  %v883_v35 = vor.u32 %v950_v30, %v880_v31  ;;  %v783_v36 = vor.u32 %v928_v34, %v782_v33  ;;  %v946_v37 = vld [vmem:[%s1555_s1 + $0xac] sm:$0xf]  ;;  %v864_v38 = vld [vmem:[%s1555_s1 + $0xb8] sm:$0xf0]  ;;  %s960_s6 = smul.u32 (%p1194_p4), 96, %s1182_s12  ;;  %p582_p8 = scmp.lt.s32.totalorder (%p1194_p4), %s581_s9, 3 }
  0x26   : > { %v867_v39 = vor.u32 %v946_v37, %v864_v38  ;;  %v942_v40 = vld [vmem:[%s1555_s1 + $0x8c] sm:$0xf]  ;;  %v848_v41 = vld [vmem:[%s1555_s1 + $0x98] sm:$0xf0] }
  0x27   : > { %422 = vmatpush.bf16.msra.mxu0 %v807_v1  ;;  %v851_v42 = vor.u32 %v942_v40, %v848_v41  ;;  %v938_v43 = vld [vmem:[%s1555_s1 + $0x6c] sm:$0xf]  ;;  %v832_v44 = vld [vmem:[%s1555_s1 + $0x78] sm:$0xf0]  ;;  %s1465_s11 = scalar_lea.vmem (%p1194_p4), %s1556_s2, %s960_s6  }
  0x28   : > { %458 = vmatpush.bf16.msra.mxu2 %v811_v3  ;;  %v835_v47 = vor.u32 %v938_v43, %v832_v44  ;;  %v934_v48 = vld [vmem:[%s1555_s1 + $0x4c] sm:$0xf]  ;;  %v816_v49 = vld [vmem:[%s1555_s1 + $0x58] sm:$0xf0] }
  0x29   : > { %492 = vmatpush.bf16.msrb.mxu1 %v847_v62  ;;  %v819_v51 = vor.u32 %v934_v48, %v816_v49  ;;  %v930_v52 = vld [vmem:[%s1555_s1 + $0x2c] sm:$0xf]  ;;  %v800_v53 = vld [vmem:[%s1555_s1 + $0x38] sm:$0xf0] }
  0x2a   : > { %v803_v54 = vor.u32 %v930_v52, %v800_v53  ;;  %v784_v56 = vld [vmem:[%s1555_s1 + $0x18] sm:$0xf0] }
  0x2b   : > { %423 = vmatpush.bf16.msra.mxu0 %v791_v12 }
  0x2c   : > { %459 = vmatpush.bf16.msra.mxu2 %v795_v13  ;;  %901 = vmatmul.msk.bf16.gmra.mxu1 %vm397_vm1, %v1371_v21 }
  0x2d   : > { %493 = vmatpush.bf16.msrb.mxu1 %v831_v8 }
  0x2e   : > { %903 = vmatmul.msk.bf16.gmra.mxu3 %vm397_vm1, %v1371_v21 }
  0x2f   : > { %424 = vmatpush.bf16.msra.mxu0 %v775_v24 }
  0x30   : > { %460 = vmatpush.bf16.msra.mxu2 %v779_v27 }
  0x31   : > { %494 = vmatpush.bf16.msrb.mxu1 %v815_v18 }
  0x32   : > { %425 = vmatmul.bf16.vlgmr.msra.gmra.mxu0 %v767_v32 }
  0x33   : > { %525 = vmatpush.bf16.msrb.mxu0 %v899_v28  ;;  %461 = vmatmul.bf16.vlgmr.msra.gmra.mxu2 %v767_v32 }
  0x34   : > { %550 = vmatpush.bf16.msrb.mxu2 %v1310_v55  ;;  %v926_v55 = vld [vmem:[%s1555_s1 + $0xc] sm:$0xf] }
  0x35   : > { %495 = vmatpush.bf16.msrb.mxu1 %v799_v29  ;;  %v787_v57 = vor.u32 %v926_v55, %v784_v56 }
  0x37   : > { %526 = vmatpush.bf16.msrb.mxu0 %v883_v35 }
  0x39   : > { %496 = vmatpush.bf16.msrb.mxu1 %v783_v36 }
  0x3b   : > { %527 = vmatpush.bf16.msrb.mxu0 %v867_v39 }
  0x3c   : > { %497 = vmatmul.bf16.vlgmr.msrb.gmra.mxu1 %v767_v32 }
  0x3d   : > { %961 = vmatpush.bf16.msra.mxu1 %v899_v28 }
  0x3e   : > { %904 = vmatmul.msk.bf16.vlgmr.msrb.gmra.mxu3 %vm397_vm1, %v1282_v45 }
  0x3f   : > { %528 = vmatpush.bf16.msrb.mxu0 %v851_v42 }
  0x41   : > { %962 = vmatpush.bf16.msra.mxu1 %v883_v35 }
  0x42   : > { %430 = vmatmul.bf16.gmra.mxu0 %v223_v50 }
  0x43   : > { %529 = vmatpush.bf16.msrb.mxu0 %v835_v47  ;;  %466 = vmatmul.bf16.gmra.mxu2 %v223_v50 }
  0x45   : > { %963 = vmatpush.bf16.msra.mxu1 %v867_v39 }
  0x47   : > { %530 = vmatpush.bf16.msrb.mxu0 %v819_v51 }
  0x49   : > { %964 = vmatpush.bf16.msra.mxu1 %v851_v42 }
  0x4b   : > { %531 = vmatpush.bf16.msrb.mxu0 %v803_v54 }
  0x4c   : > { %502 = vmatmul.bf16.gmra.mxu1 %v223_v50 }
  0x4d   : > { %965 = vmatpush.bf16.msra.mxu1 %v835_v47 }
  0x4e   : > { %905 = vmatmul.msk.bf16.gmra.mxu3 %vm397_vm1, %v1371_v21 }
  0x4f   : > { %532 = vmatpush.bf16.msrb.mxu0 %v787_v57 }
  0x51   : > { %966 = vmatpush.bf16.msra.mxu1 %v819_v51 }
  0x52   : > { %533 = vmatmul.bf16.vlgmr.msrb.gmra.mxu0 %v767_v32 }
  0x53   : > { %906 = vmatmul.msk.bf16.vlgmr.msrb.gmra.mxu2 %vm397_vm1, %v1282_v45 }
  0x55   : > { %967 = vmatpush.bf16.msra.mxu1 %v803_v54 }
  0x59   : > { %968 = vmatpush.bf16.msra.mxu1 %v787_v57 }
  0x5c   : > { %538 = vmatmul.bf16.vlgmr.msra.gmra.mxu1 %v223_v50 }
  0x5e   : > { %907 = vmatmul.msk.bf16.vlgmr.msra.gmra.mxu3 %vm397_vm1, %v1371_v21 }
  0x99   : > { %v444_v58 = vpop.f32.mrf.mxu1 }
  0xa1   : > { %v480_v59 = vpop.f32.mrf.mxu3  ;;  %v446_v60 = vpop.f32.mrf.mxu1 }
  0xa9   : > { %v482_v61 = vpop.f32.mrf.mxu3  ;;  %v449_v62 = vpop.f32.mrf.mxu1 }
  0xaf   : > { %v426_v63 = vpop.f32.mrf.mxu0 }
  0xb0   : > { %v445_v0 = vadd.f32 %v444_v58, %v426_v63 }
  0xb1   : > { %v485_v1 = vpop.f32.mrf.mxu3  ;;  %v451_v45 = vpop.f32.mrf.mxu1 }
  0xb2   : > { %561 = vst [vmem:[%s1444_s5] sm:$0xff] %v445_v0 }
  0xb6   : > { %v462_v2 = vpop.f32.mrf.mxu2 }
  0xb7   : > { %v481_v3 = vadd.f32 %v480_v59, %v462_v2  ;;  %v428_v4 = vpop.f32.mrf.mxu0 }
  0xb8   : > { %v447_v5 = vadd.f32 %v446_v60, %v428_v4 }
  0xb9   : > { %562 = vst [vmem:[%s1444_s5 + $0x8] sm:$0xff] %v481_v3  ;;  %v487_v6 = vpop.f32.mrf.mxu3  ;;  %v498_v7 = vpop.f32.mrf.mxu1 }
  0xba   : > { %565 = vst [vmem:[%s1444_s5 + $0x20] sm:$0xff] %v447_v5 }
  0xbe   : > { %v464_v8 = vpop.f32.mrf.mxu2 }
  0xbf   : > { %v483_v9 = vadd.f32 %v482_v61, %v464_v8  ;;  %v431_v10 = vpop.f32.mrf.mxu0 }
  0xc0   : > { %v450_v11 = vadd.f32 %v449_v62, %v431_v10 }
  0xc1   : > { %566 = vst [vmem:[%s1444_s5 + $0x28] sm:$0xff] %v483_v9  ;;  %v516_v12 = vpop.f32.mrf.mxu3  ;;  %v500_v14 = vpop.f32.mrf.mxu1 }
  0xc2   : > { %v517_v13 = vadd.f32 %v516_v12, %v498_v7  ;;  %569 = vst [vmem:[%s1444_s5 + $0x40] sm:$0xff] %v450_v11 }
  0xc4   : > { %563 = vst [vmem:[%s1444_s5 + $0x10] sm:$0xff] %v517_v13 }
  0xc6   : > { %v467_v15 = vpop.f32.mrf.mxu2 }
  0xc7   : > { %v486_v16 = vadd.f32 %v485_v1, %v467_v15  ;;  %v433_v17 = vpop.f32.mrf.mxu0 }
  0xc9   : > { %570 = vst [vmem:[%s1444_s5 + $0x48] sm:$0xff] %v486_v16  ;;  %v518_v18 = vpop.f32.mrf.mxu3  ;;  %v503_v20 = vpop.f32.mrf.mxu1 }
  0xca   : > { %v519_v19 = vadd.f32 %v518_v18, %v500_v14 }
  0xcc   : > { %567 = vst [vmem:[%s1444_s5 + $0x30] sm:$0xff] %v519_v19 }
  0xce   : > { %v469_v21 = vpop.f32.mrf.mxu2 }
  0xcf   : > { %v534_v25 = vpop.f32.mrf.mxu0 }
  0xd1   : > { %v521_v22 = vpop.f32.mrf.mxu3  ;;  %v505_v24 = vpop.f32.mrf.mxu1 }
  0xd2   : > { %v522_v23 = vadd.f32 %v521_v22, %v503_v20 }
  0xd4   : > { %571 = vst [vmem:[%s1444_s5 + $0x50] sm:$0xff] %v522_v23 }
  0xd6   : > { %v552_v26 = vpop.f32.mrf.mxu2 }
  0xd7   : > { %v553_v27 = vadd.f32 %v552_v26, %v534_v25  ;;  %v536_v30 = vpop.f32.mrf.mxu0 }
  0xd9   : > { %564 = vst [vmem:[%s1444_s5 + $0x18] sm:$0xff] %v553_v27  ;;  %v523_v28 = vpop.f32.mrf.mxu3  ;;  %v539_v29 = vpop.f32.mrf.mxu1 }
  0xde   : > { %v554_v31 = vpop.f32.mrf.mxu2 }
  0xdf   : > { %v555_v32 = vadd.f32 %v554_v31, %v536_v30 }
  0xe1   : > { %568 = vst [vmem:[%s1444_s5 + $0x38] sm:$0xff] %v555_v32  ;;  %v557_v33 = vpop.f32.mrf.mxu3  ;;  %v541_v35 = vpop.f32.mrf.mxu1 }
  0xe2   : > { %v558_v34 = vadd.f32 %v557_v33, %v539_v29 }
  0xe4   : > { %572 = vst [vmem:[%s1444_s5 + $0x58] sm:$0xff] %v558_v34 }
  0xe5   : > { %579 = sbr.rel (!%p1194_p4) target bundleno = 293 (0x125), region = 32 }
  0xe9   : > { %v559_v36 = vpop.f32.mrf.mxu3 }
  0xea   : > { %s1569_s9 = smov (!%p582_p8, %s581_s9), 3 }
  0xeb   : > { %s957_s15 = sshll.u32 %s1569_s9, 5 }
  0xec   : > { %p913_p9 = scmp.eq.s32.totalorder %s957_s15, 0 }
  0xed   : > { %1060 = sdivrem.u32 (!%p913_p9), %s1569_s9, 3 }
  0xee   : > { %592 = sbr.rel (%p913_p9) target bundleno = 293 (0x125), region = 36 }
  0xf6   : > { %s1471_s17 = spop.drf %1060 }
  0xf7   : > { %s1062_s18 = spop.drf %1060  ;;  %p914_p10 = scmp.le.s32.totalorder %s1471_s17, 0 }
  0xf8   : > { %s1558_s12 = smov (!%p914_p10), %s1465_s11  ;;  %s1559_s14 = smov (!%p914_p10), %s1444_s5 }
  0xf9   : > { %714 = sbr.rel (%p914_p10) target bundleno = 267 (0x10b), region = 84  ;;  %s1480_s19 = smov (!%p914_p10), 0  }
  0xfa   : > { %s1482_s20 = smov (!%p914_p10), 0  }
  0xfe LB: >> { %v606_v37 = vld [vmem:[%s1128_s14] sm:$0xff]  ;;  %s630_s21 = sadd.s32 1, %s1132_s19  ;;  %v612_v40 = vld [vmem:[%s1128_s14 + $0x8] sm:$0xff]  ;;  %v618_v43 = vld [vmem:[%s1128_s14 + $0x10] sm:$0xff]  ;;  %s600_s20 = sadd.s32 1, %s1136_s20   ;;  %s1136_s20 = sphi %s1482_s20, %s600_s20   ;;  %s1132_s19 = sphi %s1480_s19, %s1562_s19   ;;  %s1128_s14 = sphi %s1559_s14, %s1561_s14   ;;  %s1124_s12 = sphi %s1558_s12, %s1560_s12  }
  0xff   : >> { %v608_v38 = vld [vmem:[%s1128_s14 + $0x20] sm:$0xff]  ;;  %607 = vst [vmem:[%s1124_s12] sm:$0xff] %v606_v37  ;;  %p631_p11 = scmp.ge.s32.totalorder %s630_s21, %s1471_s17  ;;  %v614_v41 = vld [vmem:[%s1128_s14 + $0x28] sm:$0xff]  ;;  %v620_v44 = vld [vmem:[%s1128_s14 + $0x30] sm:$0xff]  ;;  %p599_p12 = scmp.ge.s32.totalorder %s600_s20, %s1471_s17 }
 0x100   : >> { %v610_v39 = vld [vmem:[%s1128_s14 + $0x40] sm:$0xff]  ;;  %609 = vst [vmem:[%s1124_s12 + $0x20] sm:$0xff] %v608_v38  ;;  %v616_v42 = vld [vmem:[%s1128_s14 + $0x48] sm:$0xff]  ;;  %v622_v46 = vld [vmem:[%s1128_s14 + $0x50] sm:$0xff] }
 0x101   : >> { %611 = vst [vmem:[%s1124_s12 + $0x40] sm:$0xff] %v610_v39  ;;  %s1571_s21 = smov (%p631_p11, %s630_s21), 0  ;;  %v624_v47 = vld [vmem:[%s1128_s14 + $0x18] sm:$0xff] }
 0x102   : >> { %613 = vst [vmem:[%s1124_s12 + $0x8] sm:$0xff] %v612_v40  ;;  %s633_s22 = smul.u32 96, %s1571_s21  ;;  %v626_v48 = vld [vmem:[%s1128_s14 + $0x38] sm:$0xff]  ;;  %s1562_s19 = smov %s1571_s21 }
 0x103   : >> { %615 = vst [vmem:[%s1124_s12 + $0x28] sm:$0xff] %v614_v41  ;;  %v628_v49 = vld [vmem:[%s1128_s14 + $0x58] sm:$0xff] }
 0x104   : >> { %617 = vst [vmem:[%s1124_s12 + $0x48] sm:$0xff] %v616_v42  ;;  %s635_s23 = scalar_lea.vmem %s1444_s5, %s633_s22 [#allocation2]   ;;  %s636_s24 = scalar_lea.vmem %s1465_s11, %s633_s22  }
 0x105   : >> { %619 = vst [vmem:[%s1124_s12 + $0x10] sm:$0xff] %v618_v43  ;;  %s1561_s14 = smov %s635_s23 }
 0x106   : >> { %621 = vst [vmem:[%s1124_s12 + $0x30] sm:$0xff] %v620_v44  ;;  %602 = sbr.rel (!%p599_p12) target bundleno = 254 (0xfe), region = 90 }
 0x107   : >> { %623 = vst [vmem:[%s1124_s12 + $0x50] sm:$0xff] %v622_v46 }
 0x108   : >> { %625 = vst [vmem:[%s1124_s12 + $0x18] sm:$0xff] %v624_v47 }
 0x109   : >> { %627 = vst [vmem:[%s1124_s12 + $0x38] sm:$0xff] %v626_v48 }
 0x10a   : >> { %629 = vst [vmem:[%s1124_s12 + $0x58] sm:$0xff] %v628_v49  ;;  %s1560_s12 = smov %s636_s24 }
 0x10b PF: > { %1063 = sdivrem.u32 %s1569_s9, 3 }
 0x10c   : > { %s915_s25 = smul.u32 96, %s1471_s17 }
 0x10e   : > { %s1520_s26 = scalar_lea.vmem %s1444_s5, %s915_s25 [#allocation2]   ;;  %s1523_s27 = scalar_lea.vmem %s1465_s11, %s915_s25  }
 0x114   : > { %s1064_s28 = spop.drf %1063 }
 0x115   : > { %s1525_s29 = spop.drf %1063 }
 0x116   : > { %p917_p13 = scmp.le.s32.totalorder %s1525_s29, 0 }
 0x117   : > { %s1563_s30 = smov (!%p917_p13), %s1523_s27  ;;  %s1564_s3 = smov (!%p917_p13), %s1520_s26 }
 0x118   : > { %728 = sbr.rel (%p917_p13) target bundleno = 293 (0x125), region = 95  ;;  %s1146_s4 = smov (!%p917_p13), 0  }
 0x119   : > { %s1150_s6 = smov (!%p917_p13), 0  }
 0x11d LB: >> { %v653_v50 = vld [vmem:[%s1144_s3] sm:$0xff]  ;;  %v655_v51 = vld [vmem:[%s1144_s3 + $0x8] sm:$0xff]  ;;  %v657_v52 = vld [vmem:[%s1144_s3 + $0x10] sm:$0xff]  ;;  %s661_s5 = sadd.s32 1, %s1148_s4  ;;  %s647_s6 = sadd.s32 1, %s1152_s6   ;;  %s1152_s6 = sphi %s1150_s6, %s647_s6   ;;  %s1148_s4 = sphi %s1146_s4, %s1147_s4   ;;  %s1144_s3 = sphi %s1564_s3, %s666_s3   ;;  %s1140_s30 = sphi %s1563_s30, %s667_s30  }
 0x11e   : >> { %654 = vst [vmem:[%s1140_s30] sm:$0xff] %v653_v50  ;;  %v659_v53 = vld [vmem:[%s1144_s3 + $0x18] sm:$0xff]  ;;  %p662_p0 = scmp.ge.s32.totalorder %s661_s5, %s1525_s29  ;;  %p646_p1 = scmp.ge.s32.totalorder %s647_s6, %s1525_s29 }
 0x11f   : >> { %656 = vst [vmem:[%s1140_s30 + $0x8] sm:$0xff] %v655_v51 }
 0x120   : >> { %658 = vst [vmem:[%s1140_s30 + $0x10] sm:$0xff] %v657_v52  ;;  %s1573_s5 = smov (%p662_p0, %s661_s5), 0  ;;  %649 = sbr.rel (!%p646_p1) target bundleno = 285 (0x11d), region = 101 }
 0x121   : >> { %660 = vst [vmem:[%s1140_s30 + $0x18] sm:$0xff] %v659_v53  ;;  %s918_s9 = sshll.u32 %s1573_s5, 5  ;;  %s1147_s4 = smov %s1573_s5  }
 0x122   : >> { %s666_s3 = scalar_lea.vmem %s1520_s26, %s918_s9 [#allocation2]   ;;  %s667_s30 = scalar_lea.vmem %s1523_s27, %s918_s9  }
 0x125 PF: > { %p9_p2 = scmp.ge.s32.totalorder %s1184_s13, 4   ;;  %s1565_s9 = smov %s1116_s10 }
 0x126   : > { %s1566_s10 = smov %s1192_s16  ;;  %s1567_s11 = smov %s1184_s13 }
 0x127   :  { %11 = sbr.rel (!%p9_p2) target bundleno = 2 (0x2), region = 112 }

// kernel: a_call__.3
= control target key start
LH: loop header
LB: loop body
LE: loop exit
PB: predicated region body
PF: predicated region fallthrough
CT: control target
= control target key end

     0   :  { %s1633_s6 = smov 0   ;;  %s2078_s0 = inlined_call_operand.vmem [shape: f32[8,10,256], index: 0, kind: input, shape index: {}]   ;;  %s2079_s1 = inlined_call_operand.vmem [shape: f32[8,8,256], index: 1, kind: output, shape index: {}]  }
   0x1 LB: > { %s1249_s7 = sadd.s32 4294967295, %s1621_s6   ;;  %p1253_p0 = scmp.ge.s32.totalorder %s1621_s6, 1  ;;  %s1621_s6 = sphi %s1633_s6, %s11_s6  }
   0x2   : > { %p89_p1 = scmp.lt.s32.totalorder %s1621_s6, 3 }
   0x4   : > { %p90_p2 = pnand %p1253_p0, %p89_p1 }
   0x5   : > { %s1254_s8 = sshll.u32 (!%p90_p2), %s1249_s7, 2 }
   0x6   : > { %93 = sbr.rel (%p90_p2) target bundleno = 319 (0x13f), region = 24  ;;  %p112_p3 = scmp.lt.s32.totalorder (!%p90_p2), %s1254_s8, 7 }
   0xb   : > { %s2083_s8 = smov (!%p112_p3, %s1254_s8), 7  ;;  %v280_v35 = vlaneseq }
   0xc   : > { %s1605_s9 = sshll.u32 %s2083_s8, 5  ;;  %s1606_s13 = sshll.u32 %s2083_s8, 4 }
   0xd   : > { %s1647_s12 = scalar_lea.vmem %s2078_s0, %s1605_s9  ;;  %s1671_s16 = scalar_lea.vmem %s2079_s1, %s1606_s13  ;;  %vm1673_vm0 = vcmp.lt.s32.totalorder %v280_v35, 256 }
   0xe   : > { %v125_v0 = vld [vmem:[%s1647_s12] ss:$8 sm:$0x3]  ;;  %v1263_v1 = vld [vmem:[%s1647_s12 + $0x1] ss:$8 sm:$0x3] }
   0xf   : > { %v132_v2 = vmul.f32 0.35355338, %v125_v0  ;;  %v144_v3 = vmul.f32 -0.0, %v1263_v1  ;;  %v1267_v4 = vld [vmem:[%s1647_s12 + $0x2] ss:$8 sm:$0x3] }
  0x10   : > { %v160_v5 = vmul.f32 0.35355338, %v1267_v4  ;;  %v1271_v6 = vld [vmem:[%s1647_s12 + $0x3] ss:$8 sm:$0x3] }
  0x11   : > { %v148_v7 = vadd.f32 %v144_v3, %v132_v2  ;;  %v176_v8 = vmul.f32 -0.0, %v1271_v6  ;;  %v1275_v9 = vld [vmem:[%s1647_s12 + $0x4] ss:$8 sm:$0x3] }
  0x12   : > { %v1279_v10 = vld [vmem:[%s1647_s12 + $0x5] ss:$8 sm:$0x3]  ;;  %v192_v12 = vmul.f32 0.35355338, %v1275_v9 }
  0x13   : > { %v164_v11 = vadd.f32 %v160_v5, %v148_v7  ;;  %v1283_v13 = vld [vmem:[%s1647_s12 + $0x6] ss:$8 sm:$0x3]  ;;  %v208_v15 = vmul.f32 -0.0, %v1279_v10 }
  0x14   : > { %v224_v16 = vmul.f32 0.35355338, %v1283_v13  ;;  %v1287_v17 = vld [vmem:[%s1647_s12 + $0x7] ss:$8 sm:$0x3] }
  0x15   : > { %v180_v14 = vadd.f32 %v176_v8, %v164_v11  ;;  %v1291_v19 = vld [vmem:[%s1647_s12 + $0x10] ss:$8 sm:$0x3]  ;;  %v295_v20 = vld [vmem:[%s1647_s12] ss:$8 sm:$0x3] }
  0x16   : > { %v1295_v21 = vld [vmem:[%s1647_s12 + $0x11] ss:$8 sm:$0x3]  ;;  %v299_v22 = vmul.f32 0.35355338, %v295_v20  ;;  %v240_v25 = vmul.f32 -0.0, %v1287_v17 }
  0x17   : > { %v196_v18 = vadd.f32 %v192_v12, %v180_v14  ;;  %v1305_v23 = vld [vmem:[%s1647_s12 + $0x1] ss:$8 sm:$0x3]  ;;  %v1309_v27 = vld [vmem:[%s1647_s12 + $0x2] ss:$8 sm:$0x3] }
  0x18   : > { %v307_v26 = vmul.f32 -0.0, %v1305_v23  ;;  %v319_v28 = vmul.f32 0.25, %v1309_v27  ;;  %v1313_v29 = vld [vmem:[%s1647_s12 + $0x3] ss:$8 sm:$0x3]  ;;  %v272_v38 = vmul.f32 -0.0, %v1295_v21 }
  0x19   : > { %v212_v24 = vadd.f32 %v208_v15, %v196_v18  ;;  %v256_v31 = vmul.f32 0.35355338, %v1291_v19  ;;  %v331_v33 = vmul.f32 -0.25, %v1313_v29  ;;  %v1317_v34 = vld [vmem:[%s1647_s12 + $0x4] ss:$8 sm:$0x3] }
  0x1a   : > { %v311_v32 = vadd.f32 %v307_v26, %v299_v22  ;;  %v1321_v36 = vld [vmem:[%s1647_s12 + $0x5] ss:$8 sm:$0x3]  ;;  %v343_v40 = vmul.f32 2.1648902e-17, %v1317_v34 }
  0x1b   : > { %v228_v30 = vadd.f32 %v224_v16, %v212_v24  ;;  %v1325_v41 = vld [vmem:[%s1647_s12 + $0x6] ss:$8 sm:$0x3]  ;;  %v1329_v42 = vld [vmem:[%s1647_s12 + $0x7] ss:$8 sm:$0x3] }
  0x1c   : > { %v323_v39 = vadd.f32 %v319_v28, %v311_v32  ;;  %v355_v45 = vmul.f32 -0.35355338, %v1321_v36  ;;  %v367_v47 = vmul.f32 -6.49467e-17, %v1325_v41  ;;  %v379_v51 = vmul.f32 0.35355338, %v1329_v42 }
  0x1d   : > { %v244_v37 = vadd.f32 %v240_v25, %v228_v30  ;;  %v1333_v48 = vld [vmem:[%s1647_s12 + $0x10] ss:$8 sm:$0x3]  ;;  %v423_v52 = vld [vmem:[%s1647_s12] ss:$8 sm:$0x3] }
  0x1e   : > { %v335_v44 = vadd.f32 %v331_v33, %v323_v39  ;;  %v1337_v53 = vld [vmem:[%s1647_s12 + $0x11] ss:$8 sm:$0x3]  ;;  %v427_v54 = vmul.f32 0.35355338, %v423_v52  ;;  %v391_v57 = vmul.f32 0.25, %v1333_v48 }
  0x1f   : > { %v260_v43 = vadd.f32 %v256_v31, %v244_v37  ;;  %v1348_v55 = vld [vmem:[%s1647_s12 + $0x1] ss:$8 sm:$0x3]  ;;  %v1352_v59 = vld [vmem:[%s1647_s12 + $0x2] ss:$8 sm:$0x3] }
  0x20   : > { %v347_v50 = vadd.f32 %v343_v40, %v335_v44  ;;  %v435_v58 = vmul.f32 -0.0, %v1348_v55  ;;  %v1356_v60 = vld [vmem:[%s1647_s12 + $0x3] ss:$8 sm:$0x3]  ;;  %v447_v63 = vmul.f32 2.1648902e-17, %v1352_v59 }
  0x21   : > { %v276_v49 = vadd.f32 %v272_v38, %v260_v43  ;;  %v459_v0 = vmul.f32 -0.35355338, %v1356_v60  ;;  %v1360_v1 = vld [vmem:[%s1647_s12 + $0x4] ss:$8 sm:$0x3]  ;;  %v403_v4 = vmul.f32 0.25, %v1337_v53 }
  0x22   : > { %v359_v56 = vadd.f32 %v355_v45, %v347_v50  ;;  %v439_v62 = vadd.f32 %v435_v58, %v427_v54  ;;  %v1364_v2 = vld [vmem:[%s1647_s12 + $0x5] ss:$8 sm:$0x3]  ;;  %v471_v6 = vmul.f32 -0.35355338, %v1360_v1 }
  0x23   : > { %284 = vst.msk [vmem:[%s1671_s16] ss:$8 sm:$0x3] %vm1673_vm0, %v276_v49  ;;  %v1368_v7 = vld [vmem:[%s1647_s12 + $0x6] ss:$8 sm:$0x3] }
  0x24   : > { %v371_v61 = vadd.f32 %v367_v47, %v359_v56  ;;  %v451_v5 = vadd.f32 %v447_v63, %v439_v62  ;;  %v1372_v8 = vld [vmem:[%s1647_s12 + $0x7] ss:$8 sm:$0x3]  ;;  %v483_v11 = vmul.f32 -4.3297803e-17, %v1364_v2 }
  0x25   : > { %v495_v12 = vmul.f32 -0.35355338, %v1368_v7  ;;  %v507_v13 = vmul.f32 -1.298934e-16, %v1372_v8 }
  0x26   : > { %v383_v3 = vadd.f32 %v379_v51, %v371_v61  ;;  %v463_v10 = vadd.f32 %v459_v0, %v451_v5  ;;  %v1376_v14 = vld [vmem:[%s1647_s12 + $0x10] ss:$8 sm:$0x3]  ;;  %v1380_v18 = vld [vmem:[%s1647_s12 + $0x11] ss:$8 sm:$0x3] }
  0x27   : > { %v519_v17 = vmul.f32 -1.5154231e-16, %v1376_v14  ;;  %v551_v19 = vld [vmem:[%s1647_s12] ss:$8 sm:$0x3] }
  0x28   : > { %v395_v9 = vadd.f32 %v391_v57, %v383_v3  ;;  %v475_v16 = vadd.f32 %v471_v6, %v463_v10  ;;  %v1391_v20 = vld [vmem:[%s1647_s12 + $0x1] ss:$8 sm:$0x3]  ;;  %v555_v22 = vmul.f32 0.35355338, %v551_v19 }
  0x29   : > { %v563_v23 = vmul.f32 -0.0, %v1391_v20  ;;  %v1395_v24 = vld [vmem:[%s1647_s12 + $0x2] ss:$8 sm:$0x3]  ;;  %v531_v31 = vmul.f32 0.35355338, %v1380_v18 }
  0x2a   : > { %v407_v15 = vadd.f32 %v403_v4, %v395_v9  ;;  %v487_v21 = vadd.f32 %v483_v11, %v475_v16  ;;  %v1399_v25 = vld [vmem:[%s1647_s12 + $0x3] ss:$8 sm:$0x3]  ;;  %v575_v28 = vmul.f32 -0.25, %v1395_v24 }
  0x2b   : > { %v567_v27 = vadd.f32 %v563_v23, %v555_v22  ;;  %v587_v29 = vmul.f32 -0.25, %v1399_v25  ;;  %v1403_v30 = vld [vmem:[%s1647_s12 + $0x4] ss:$8 sm:$0x3] }
  0x2c   : > { %1341 = vst.msk [vmem:[%s1671_s16 + $0x1] ss:$8 sm:$0x3] %vm1673_vm0, %v407_v15  ;;  %v499_v26 = vadd.f32 %v495_v12, %v487_v21  ;;  %v1407_v32 = vld [vmem:[%s1647_s12 + $0x5] ss:$8 sm:$0x3] }
  0x2d   : > { %v579_v34 = vadd.f32 %v575_v28, %v567_v27  ;;  %v599_v35 = vmul.f32 -6.49467e-17, %v1403_v30  ;;  %v1411_v36 = vld [vmem:[%s1647_s12 + $0x6] ss:$8 sm:$0x3] }
  0x2e   : > { %v511_v33 = vadd.f32 %v507_v13, %v499_v26  ;;  %v1415_v37 = vld [vmem:[%s1647_s12 + $0x7] ss:$8 sm:$0x3]  ;;  %v611_v40 = vmul.f32 0.35355338, %v1407_v32 }
  0x2f   : > { %v591_v39 = vadd.f32 %v587_v29, %v579_v34  ;;  %v623_v41 = vmul.f32 1.9484012e-16, %v1411_v36  ;;  %v1419_v42 = vld [vmem:[%s1647_s12 + $0x10] ss:$8 sm:$0x3] }
  0x30   : > { %v523_v38 = vadd.f32 %v519_v17, %v511_v33  ;;  %v635_v45 = vmul.f32 -0.35355338, %v1415_v37  ;;  %v679_v47 = vld [vmem:[%s1647_s12] ss:$8 sm:$0x3]  ;;  %v647_v52 = vmul.f32 -0.25, %v1419_v42 }
  0x31   : > { %v603_v44 = vadd.f32 %v599_v35, %v591_v39  ;;  %v1423_v48 = vld [vmem:[%s1647_s12 + $0x11] ss:$8 sm:$0x3]  ;;  %v683_v49 = vmul.f32 0.35355338, %v679_v47 }
  0x32   : > { %v535_v43 = vadd.f32 %v531_v31, %v523_v38  ;;  %v1434_v50 = vld [vmem:[%s1647_s12 + $0x1] ss:$8 sm:$0x3]  ;;  %v1438_v54 = vld [vmem:[%s1647_s12 + $0x2] ss:$8 sm:$0x3] }
  0x33   : > { %v615_v51 = vadd.f32 %v611_v40, %v603_v44  ;;  %v691_v53 = vmul.f32 -0.0, %v1434_v50  ;;  %v1442_v55 = vld [vmem:[%s1647_s12 + $0x3] ss:$8 sm:$0x3]  ;;  %v703_v58 = vmul.f32 -0.35355338, %v1438_v54 }
  0x34   : > { %1384 = vst.msk [vmem:[%s1671_s16 + $0x2] ss:$8 sm:$0x3] %vm1673_vm0, %v535_v43  ;;  %v715_v59 = vmul.f32 -4.3297803e-17, %v1442_v55  ;;  %v659_v63 = vmul.f32 0.25, %v1423_v48 }
  0x35   : > { %v627_v56 = vadd.f32 %v623_v41, %v615_v51  ;;  %v695_v57 = vadd.f32 %v691_v53, %v683_v49  ;;  %v1446_v60 = vld [vmem:[%s1647_s12 + $0x4] ss:$8 sm:$0x3]  ;;  %v1450_v61 = vld [vmem:[%s1647_s12 + $0x5] ss:$8 sm:$0x3] }
  0x36   : > { %v727_v1 = vmul.f32 0.35355338, %v1446_v60  ;;  %v1454_v2 = vld [vmem:[%s1647_s12 + $0x6] ss:$8 sm:$0x3] }
  0x37   : > { %v639_v62 = vadd.f32 %v635_v45, %v627_v56  ;;  %v707_v0 = vadd.f32 %v703_v58, %v695_v57  ;;  %v1458_v3 = vld [vmem:[%s1647_s12 + $0x7] ss:$8 sm:$0x3]  ;;  %v739_v6 = vmul.f32 8.6595606e-17, %v1450_v61 }
  0x38   : > { %v751_v7 = vmul.f32 0.35355338, %v1454_v2  ;;  %v763_v8 = vmul.f32 2.597868e-16, %v1458_v3 }
  0x39   : > { %v651_v4 = vadd.f32 %v647_v52, %v639_v62  ;;  %v719_v5 = vadd.f32 %v715_v59, %v707_v0  ;;  %v1462_v9 = vld [vmem:[%s1647_s12 + $0x10] ss:$8 sm:$0x3]  ;;  %v1466_v13 = vld [vmem:[%s1647_s12 + $0x11] ss:$8 sm:$0x3] }
  0x3a   : > { %v775_v12 = vmul.f32 -0.35355338, %v1462_v9  ;;  %v807_v14 = vld [vmem:[%s1647_s12] ss:$8 sm:$0x3] }
  0x3b   : > { %v663_v10 = vadd.f32 %v659_v63, %v651_v4  ;;  %v731_v11 = vadd.f32 %v727_v1, %v719_v5  ;;  %v1477_v15 = vld [vmem:[%s1647_s12 + $0x1] ss:$8 sm:$0x3]  ;;  %v811_v17 = vmul.f32 0.35355338, %v807_v14 }
  0x3c   : > { %v819_v18 = vmul.f32 -0.0, %v1477_v15  ;;  %v1481_v19 = vld [vmem:[%s1647_s12 + $0x2] ss:$8 sm:$0x3]  ;;  %v787_v26 = vmul.f32 -3.0308461e-16, %v1466_v13 }
  0x3d   : > { %1427 = vst.msk [vmem:[%s1671_s16 + $0x3] ss:$8 sm:$0x3] %vm1673_vm0, %v663_v10  ;;  %v743_v16 = vadd.f32 %v739_v6, %v731_v11  ;;  %v1485_v20 = vld [vmem:[%s1647_s12 + $0x3] ss:$8 sm:$0x3] }
  0x3e   : > { %v823_v22 = vadd.f32 %v819_v18, %v811_v17  ;;  %v831_v23 = vmul.f32 -0.25, %v1481_v19  ;;  %v843_v24 = vmul.f32 0.25, %v1485_v20  ;;  %v1489_v25 = vld [vmem:[%s1647_s12 + $0x4] ss:$8 sm:$0x3] }
  0x3f   : > { %v755_v21 = vadd.f32 %v751_v7, %v743_v16  ;;  %v1493_v27 = vld [vmem:[%s1647_s12 + $0x5] ss:$8 sm:$0x3]  ;;  %v855_v30 = vmul.f32 1.08244504e-16, %v1489_v25 }
  0x40   : > { %v835_v29 = vadd.f32 %v831_v23, %v823_v22  ;;  %v1497_v31 = vld [vmem:[%s1647_s12 + $0x6] ss:$8 sm:$0x3]  ;;  %v1501_v32 = vld [vmem:[%s1647_s12 + $0x7] ss:$8 sm:$0x3] }
  0x41   : > { %v767_v28 = vadd.f32 %v763_v8, %v755_v21  ;;  %v867_v35 = vmul.f32 -0.35355338, %v1493_v27  ;;  %v879_v36 = vmul.f32 -9.527705e-16, %v1497_v31  ;;  %v891_v40 = vmul.f32 0.35355338, %v1501_v32 }
  0x42   : > { %v847_v34 = vadd.f32 %v843_v24, %v835_v29  ;;  %v1505_v37 = vld [vmem:[%s1647_s12 + $0x10] ss:$8 sm:$0x3]  ;;  %v935_v41 = vld [vmem:[%s1647_s12] ss:$8 sm:$0x3] }
  0x43   : > { %v779_v33 = vadd.f32 %v775_v12, %v767_v28  ;;  %v1509_v42 = vld [vmem:[%s1647_s12 + $0x11] ss:$8 sm:$0x3]  ;;  %v939_v43 = vmul.f32 0.35355338, %v935_v41  ;;  %v903_v47 = vmul.f32 -0.25, %v1505_v37 }
  0x44   : > { %v859_v39 = vadd.f32 %v855_v30, %v847_v34  ;;  %v1520_v44 = vld [vmem:[%s1647_s12 + $0x1] ss:$8 sm:$0x3]  ;;  %v1524_v49 = vld [vmem:[%s1647_s12 + $0x2] ss:$8 sm:$0x3] }
  0x45   : > { %v791_v38 = vadd.f32 %v787_v26, %v779_v33  ;;  %v947_v48 = vmul.f32 -0.0, %v1520_v44  ;;  %v1528_v50 = vld [vmem:[%s1647_s12 + $0x3] ss:$8 sm:$0x3]  ;;  %v959_v53 = vmul.f32 -6.49467e-17, %v1524_v49 }
  0x46   : > { %v871_v45 = vadd.f32 %v867_v35, %v859_v39  ;;  %v971_v54 = vmul.f32 0.35355338, %v1528_v50  ;;  %v1532_v55 = vld [vmem:[%s1647_s12 + $0x4] ss:$8 sm:$0x3]  ;;  %v915_v58 = vmul.f32 -0.25, %v1509_v42 }
  0x47   : > { %1470 = vst.msk [vmem:[%s1671_s16 + $0x4] ss:$8 sm:$0x3] %vm1673_vm0, %v791_v38  ;;  %v951_v52 = vadd.f32 %v947_v48, %v939_v43  ;;  %v1536_v56 = vld [vmem:[%s1647_s12 + $0x5] ss:$8 sm:$0x3] }
  0x48   : > { %v883_v51 = vadd.f32 %v879_v36, %v871_v45  ;;  %v983_v60 = vmul.f32 -0.35355338, %v1532_v55  ;;  %v1540_v61 = vld [vmem:[%s1647_s12 + $0x6] ss:$8 sm:$0x3] }
  0x49   : > { %v963_v59 = vadd.f32 %v959_v53, %v951_v52  ;;  %v1544_v62 = vld [vmem:[%s1647_s12 + $0x7] ss:$8 sm:$0x3]  ;;  %v995_v1 = vmul.f32 -1.298934e-16, %v1536_v56 }
  0x4a   : > { %v895_v57 = vadd.f32 %v891_v40, %v883_v51  ;;  %v1007_v2 = vmul.f32 -0.35355338, %v1540_v61  ;;  %v1019_v3 = vmul.f32 -3.8968023e-16, %v1544_v62 }
  0x4b   : > { %v975_v0 = vadd.f32 %v971_v54, %v963_v59  ;;  %v1548_v4 = vld [vmem:[%s1647_s12 + $0x10] ss:$8 sm:$0x3]  ;;  %v1552_v8 = vld [vmem:[%s1647_s12 + $0x11] ss:$8 sm:$0x3] }
  0x4c   : > { %v907_v63 = vadd.f32 %v903_v47, %v895_v57  ;;  %v1031_v7 = vmul.f32 -1.7341005e-16, %v1548_v4  ;;  %v1063_v9 = vld [vmem:[%s1647_s12] ss:$8 sm:$0x3] }
  0x4d   : > { %v987_v6 = vadd.f32 %v983_v60, %v975_v0  ;;  %v1563_v10 = vld [vmem:[%s1647_s12 + $0x1] ss:$8 sm:$0x3]  ;;  %v1067_v12 = vmul.f32 0.35355338, %v1063_v9 }
  0x4e   : > { %v919_v5 = vadd.f32 %v915_v58, %v907_v63  ;;  %v1075_v13 = vmul.f32 -0.0, %v1563_v10  ;;  %v1567_v14 = vld [vmem:[%s1647_s12 + $0x2] ss:$8 sm:$0x3]  ;;  %v1043_v21 = vmul.f32 -0.35355338, %v1552_v8 }
  0x4f   : > { %v999_v11 = vadd.f32 %v995_v1, %v987_v6  ;;  %v1571_v15 = vld [vmem:[%s1647_s12 + $0x3] ss:$8 sm:$0x3]  ;;  %v1087_v18 = vmul.f32 0.25, %v1567_v14 }
  0x50   : > { %1513 = vst.msk [vmem:[%s1671_s16 + $0x5] ss:$8 sm:$0x3] %vm1673_vm0, %v919_v5  ;;  %v1079_v17 = vadd.f32 %v1075_v13, %v1067_v12  ;;  %v1099_v19 = vmul.f32 0.25, %v1571_v15 }
  0x51   : > { %v1011_v16 = vadd.f32 %v1007_v2, %v999_v11  ;;  %v1575_v20 = vld [vmem:[%s1647_s12 + $0x4] ss:$8 sm:$0x3]  ;;  %v1579_v22 = vld [vmem:[%s1647_s12 + $0x5] ss:$8 sm:$0x3] }
  0x52   : > { %v1091_v24 = vadd.f32 %v1087_v18, %v1079_v17  ;;  %v1111_v25 = vmul.f32 -1.5154231e-16, %v1575_v20  ;;  %v1583_v26 = vld [vmem:[%s1647_s12 + $0x6] ss:$8 sm:$0x3] }
  0x53   : > { %v1023_v23 = vadd.f32 %v1019_v3, %v1011_v16  ;;  %v1587_v27 = vld [vmem:[%s1647_s12 + $0x7] ss:$8 sm:$0x3]  ;;  %v1123_v30 = vmul.f32 0.35355338, %v1579_v22 }
  0x54   : > { %v1103_v29 = vadd.f32 %v1099_v19, %v1091_v24  ;;  %v1135_v31 = vmul.f32 -1.7341005e-16, %v1583_v26  ;;  %v1591_v32 = vld [vmem:[%s1647_s12 + $0x10] ss:$8 sm:$0x3] }
  0x55   : > { %v1035_v28 = vadd.f32 %v1031_v7, %v1023_v23  ;;  %v1147_v35 = vmul.f32 -0.35355338, %v1587_v27  ;;  %v1260_v36 = vld [vmem:[%s1647_s12 + $0x20] ss:$8 sm:$0x3]  ;;  %v1159_v41 = vmul.f32 0.25, %v1591_v32 }
  0x56   : > { %v1115_v34 = vadd.f32 %v1111_v25, %v1103_v29  ;;  %v1595_v37 = vld [vmem:[%s1647_s12 + $0x11] ss:$8 sm:$0x3]  ;;  %v133_v38 = vmul.f32 0.35355338, %v1260_v36 }
  0x57   : > { %v1047_v33 = vadd.f32 %v1043_v21, %v1035_v28  ;;  %v1264_v39 = vld [vmem:[%s1647_s12 + $0x21] ss:$8 sm:$0x3]  ;;  %v1268_v43 = vld [vmem:[%s1647_s12 + $0x22] ss:$8 sm:$0x3] }
  0x58   : > { %v1127_v40 = vadd.f32 %v1123_v30, %v1115_v34  ;;  %v145_v42 = vmul.f32 -0.0, %v1264_v39  ;;  %v1272_v44 = vld [vmem:[%s1647_s12 + $0x23] ss:$8 sm:$0x3]  ;;  %v161_v48 = vmul.f32 0.35355338, %v1268_v43 }
  0x59   : > { %1556 = vst.msk [vmem:[%s1671_s16 + $0x6] ss:$8 sm:$0x3] %vm1673_vm0, %v1047_v33  ;;  %v177_v49 = vmul.f32 -0.0, %v1272_v44  ;;  %v1171_v53 = vmul.f32 -0.25, %v1595_v37 }
  0x5a   : > { %v1139_v45 = vadd.f32 %v1135_v31, %v1127_v40  ;;  %v149_v47 = vadd.f32 %v145_v42, %v133_v38  ;;  %v1276_v50 = vld [vmem:[%s1647_s12 + $0x24] ss:$8 sm:$0x3]  ;;  %v1280_v51 = vld [vmem:[%s1647_s12 + $0x25] ss:$8 sm:$0x3] }
  0x5b   : > { %v193_v55 = vmul.f32 0.35355338, %v1276_v50  ;;  %v1284_v56 = vld [vmem:[%s1647_s12 + $0x26] ss:$8 sm:$0x3]  ;;  %v209_v59 = vmul.f32 -0.0, %v1280_v51 }
  0x5c   : > { %v1151_v52 = vadd.f32 %v1147_v35, %v1139_v45  ;;  %v165_v54 = vadd.f32 %v161_v48, %v149_v47  ;;  %v1288_v60 = vld [vmem:[%s1647_s12 + $0x27] ss:$8 sm:$0x3]  ;;  %v1292_v61 = vld [vmem:[%s1647_s12 + $0x30] ss:$8 sm:$0x3] }
  0x5d   : > { %v225_v0 = vmul.f32 0.35355338, %v1284_v56  ;;  %v1302_v1 = vld [vmem:[%s1647_s12 + $0x20] ss:$8 sm:$0x3]  ;;  %v241_v2 = vmul.f32 -0.0, %v1288_v60 }
  0x5e   : > { %v1163_v57 = vadd.f32 %v1159_v41, %v1151_v52  ;;  %v181_v58 = vadd.f32 %v177_v49, %v165_v54  ;;  %v1296_v3 = vld [vmem:[%s1647_s12 + $0x31] ss:$8 sm:$0x3]  ;;  %v300_v4 = vmul.f32 0.35355338, %v1302_v1 }
  0x5f   : > { %v1306_v5 = vld [vmem:[%s1647_s12 + $0x21] ss:$8 sm:$0x3]  ;;  %v257_v7 = vmul.f32 0.35355338, %v1292_v61  ;;  %v273_v18 = vmul.f32 -0.0, %v1296_v3 }
  0x60   : > { %v1175_v62 = vadd.f32 %v1171_v53, %v1163_v57  ;;  %v197_v63 = vadd.f32 %v193_v55, %v181_v58  ;;  %v308_v8 = vmul.f32 -0.0, %v1306_v5  ;;  %v1310_v9 = vld [vmem:[%s1647_s12 + $0x22] ss:$8 sm:$0x3] }
  0x61   : > { %v1314_v10 = vld [vmem:[%s1647_s12 + $0x23] ss:$8 sm:$0x3]  ;;  %v320_v13 = vmul.f32 0.25, %v1310_v9 }
  0x62   : > { %1599 = vst.msk [vmem:[%s1671_s16 + $0x7] ss:$8 sm:$0x3] %vm1673_vm0, %v1175_v62  ;;  %v213_v6 = vadd.f32 %v209_v59, %v197_v63  ;;  %v312_v12 = vadd.f32 %v308_v8, %v300_v4  ;;  %v332_v14 = vmul.f32 -0.25, %v1314_v10 }
  0x63   : > { %v1318_v15 = vld [vmem:[%s1647_s12 + $0x24] ss:$8 sm:$0x3]  ;;  %v1322_v16 = vld [vmem:[%s1647_s12 + $0x25] ss:$8 sm:$0x3] }
  0x64   : > { %v229_v11 = vadd.f32 %v225_v0, %v213_v6  ;;  %v324_v19 = vadd.f32 %v320_v13, %v312_v12  ;;  %v344_v20 = vmul.f32 2.1648902e-17, %v1318_v15  ;;  %v1326_v21 = vld [vmem:[%s1647_s12 + $0x26] ss:$8 sm:$0x3] }
  0x65   : > { %v1330_v22 = vld [vmem:[%s1647_s12 + $0x27] ss:$8 sm:$0x3]  ;;  %v356_v25 = vmul.f32 -0.35355338, %v1322_v16 }
  0x66   : > { %v245_v17 = vadd.f32 %v241_v2, %v229_v11  ;;  %v336_v24 = vadd.f32 %v332_v14, %v324_v19  ;;  %v368_v26 = vmul.f32 -6.49467e-17, %v1326_v21  ;;  %v1334_v27 = vld [vmem:[%s1647_s12 + $0x30] ss:$8 sm:$0x3] }
  0x67   : > { %v380_v30 = vmul.f32 0.35355338, %v1330_v22  ;;  %v1345_v31 = vld [vmem:[%s1647_s12 + $0x20] ss:$8 sm:$0x3]  ;;  %v392_v36 = vmul.f32 0.25, %v1334_v27 }
  0x68   : > { %v261_v23 = vadd.f32 %v257_v7, %v245_v17  ;;  %v348_v29 = vadd.f32 %v344_v20, %v336_v24  ;;  %v1338_v32 = vld [vmem:[%s1647_s12 + $0x31] ss:$8 sm:$0x3]  ;;  %v428_v33 = vmul.f32 0.35355338, %v1345_v31 }
  0x69   : > { %v1349_v34 = vld [vmem:[%s1647_s12 + $0x21] ss:$8 sm:$0x3]  ;;  %v1353_v38 = vld [vmem:[%s1647_s12 + $0x22] ss:$8 sm:$0x3] }
  0x6a   : > { %v277_v28 = vadd.f32 %v273_v18, %v261_v23  ;;  %v360_v35 = vadd.f32 %v356_v25, %v348_v29  ;;  %v436_v37 = vmul.f32 -0.0, %v1349_v34  ;;  %v1357_v39 = vld [vmem:[%s1647_s12 + $0x23] ss:$8 sm:$0x3]  ;;  %v448_v42 = vmul.f32 2.1648902e-17, %v1353_v38 }
  0x6b   : > { %v460_v43 = vmul.f32 -0.35355338, %v1357_v39  ;;  %v1361_v44 = vld [vmem:[%s1647_s12 + $0x24] ss:$8 sm:$0x3]  ;;  %v404_v48 = vmul.f32 0.25, %v1338_v32 }
  0x6c   : > { %1299 = vst.msk [vmem:[%s1671_s16 + $0x10] ss:$8 sm:$0x3] %vm1673_vm0, %v277_v28  ;;  %v372_v40 = vadd.f32 %v368_v26, %v360_v35  ;;  %v440_v41 = vadd.f32 %v436_v37, %v428_v33  ;;  %v1365_v45 = vld [vmem:[%s1647_s12 + $0x25] ss:$8 sm:$0x3] }
  0x6d   : > { %v472_v50 = vmul.f32 -0.35355338, %v1361_v44  ;;  %v1369_v51 = vld [vmem:[%s1647_s12 + $0x26] ss:$8 sm:$0x3] }
  0x6e   : > { %v384_v47 = vadd.f32 %v380_v30, %v372_v40  ;;  %v452_v49 = vadd.f32 %v448_v42, %v440_v41  ;;  %v1373_v52 = vld [vmem:[%s1647_s12 + $0x27] ss:$8 sm:$0x3]  ;;  %v484_v55 = vmul.f32 -4.3297803e-17, %v1365_v45 }
  0x6f   : > { %v496_v56 = vmul.f32 -0.35355338, %v1369_v51  ;;  %v508_v57 = vmul.f32 -1.298934e-16, %v1373_v52 }
  0x70   : > { %v396_v53 = vadd.f32 %v392_v36, %v384_v47  ;;  %v464_v54 = vadd.f32 %v460_v43, %v452_v49  ;;  %v1377_v58 = vld [vmem:[%s1647_s12 + $0x30] ss:$8 sm:$0x3]  ;;  %v1381_v62 = vld [vmem:[%s1647_s12 + $0x31] ss:$8 sm:$0x3] }
  0x71   : > { %v520_v61 = vmul.f32 -1.5154231e-16, %v1377_v58  ;;  %v1388_v63 = vld [vmem:[%s1647_s12 + $0x20] ss:$8 sm:$0x3] }
  0x72   : > { %v408_v59 = vadd.f32 %v404_v48, %v396_v53  ;;  %v476_v60 = vadd.f32 %v472_v50, %v464_v54  ;;  %v1392_v0 = vld [vmem:[%s1647_s12 + $0x21] ss:$8 sm:$0x3]  ;;  %v556_v2 = vmul.f32 0.35355338, %v1388_v63 }
  0x73   : > { %v564_v3 = vmul.f32 -0.0, %v1392_v0  ;;  %v1396_v4 = vld [vmem:[%s1647_s12 + $0x22] ss:$8 sm:$0x3]  ;;  %v532_v11 = vmul.f32 0.35355338, %v1381_v62 }
  0x74   : > { %1342 = vst.msk [vmem:[%s1671_s16 + $0x11] ss:$8 sm:$0x3] %vm1673_vm0, %v408_v59  ;;  %v488_v1 = vadd.f32 %v484_v55, %v476_v60  ;;  %v1400_v5 = vld [vmem:[%s1647_s12 + $0x23] ss:$8 sm:$0x3] }
  0x75   : > { %v568_v7 = vadd.f32 %v564_v3, %v556_v2  ;;  %v576_v8 = vmul.f32 -0.25, %v1396_v4  ;;  %v588_v9 = vmul.f32 -0.25, %v1400_v5  ;;  %v1404_v10 = vld [vmem:[%s1647_s12 + $0x24] ss:$8 sm:$0x3] }
  0x76   : > { %v500_v6 = vadd.f32 %v496_v56, %v488_v1  ;;  %v1408_v12 = vld [vmem:[%s1647_s12 + $0x25] ss:$8 sm:$0x3]  ;;  %v600_v15 = vmul.f32 -6.49467e-17, %v1404_v10 }
  0x77   : > { %v580_v14 = vadd.f32 %v576_v8, %v568_v7  ;;  %v1412_v16 = vld [vmem:[%s1647_s12 + $0x26] ss:$8 sm:$0x3]  ;;  %v1416_v17 = vld [vmem:[%s1647_s12 + $0x27] ss:$8 sm:$0x3] }
  0x78   : > { %v512_v13 = vadd.f32 %v508_v57, %v500_v6  ;;  %v612_v20 = vmul.f32 0.35355338, %v1408_v12  ;;  %v624_v21 = vmul.f32 1.9484012e-16, %v1412_v16  ;;  %v636_v25 = vmul.f32 -0.35355338, %v1416_v17 }
  0x79   : > { %v592_v19 = vadd.f32 %v588_v9, %v580_v14  ;;  %v1420_v22 = vld [vmem:[%s1647_s12 + $0x30] ss:$8 sm:$0x3]  ;;  %v1431_v26 = vld [vmem:[%s1647_s12 + $0x20] ss:$8 sm:$0x3] }
  0x7a   : > { %v524_v18 = vadd.f32 %v520_v61, %v512_v13  ;;  %v1424_v27 = vld [vmem:[%s1647_s12 + $0x31] ss:$8 sm:$0x3]  ;;  %v684_v28 = vmul.f32 0.35355338, %v1431_v26  ;;  %v648_v31 = vmul.f32 -0.25, %v1420_v22 }
  0x7b   : > { %v604_v24 = vadd.f32 %v600_v15, %v592_v19  ;;  %v1435_v29 = vld [vmem:[%s1647_s12 + $0x21] ss:$8 sm:$0x3]  ;;  %v1439_v33 = vld [vmem:[%s1647_s12 + $0x22] ss:$8 sm:$0x3] }
  0x7c   : > { %v536_v23 = vadd.f32 %v532_v11, %v524_v18  ;;  %v692_v32 = vmul.f32 -0.0, %v1435_v29  ;;  %v1443_v34 = vld [vmem:[%s1647_s12 + $0x23] ss:$8 sm:$0x3]  ;;  %v704_v37 = vmul.f32 -0.35355338, %v1439_v33 }
  0x7d   : > { %v616_v30 = vadd.f32 %v612_v20, %v604_v24  ;;  %v716_v38 = vmul.f32 -4.3297803e-17, %v1443_v34  ;;  %v1447_v39 = vld [vmem:[%s1647_s12 + $0x24] ss:$8 sm:$0x3]  ;;  %v660_v42 = vmul.f32 0.25, %v1424_v27 }
  0x7e   : > { %1385 = vst.msk [vmem:[%s1671_s16 + $0x12] ss:$8 sm:$0x3] %vm1673_vm0, %v536_v23  ;;  %v696_v36 = vadd.f32 %v692_v32, %v684_v28  ;;  %v1451_v40 = vld [vmem:[%s1647_s12 + $0x25] ss:$8 sm:$0x3] }
  0x7f   : > { %v628_v35 = vadd.f32 %v624_v21, %v616_v30  ;;  %v728_v44 = vmul.f32 0.35355338, %v1447_v39  ;;  %v1455_v45 = vld [vmem:[%s1647_s12 + $0x26] ss:$8 sm:$0x3] }
  0x80   : > { %v708_v43 = vadd.f32 %v704_v37, %v696_v36  ;;  %v1459_v47 = vld [vmem:[%s1647_s12 + $0x27] ss:$8 sm:$0x3]  ;;  %v740_v50 = vmul.f32 8.6595606e-17, %v1451_v40 }
  0x81   : > { %v640_v41 = vadd.f32 %v636_v25, %v628_v35  ;;  %v752_v51 = vmul.f32 0.35355338, %v1455_v45  ;;  %v764_v52 = vmul.f32 2.597868e-16, %v1459_v47 }
  0x82   : > { %v720_v49 = vadd.f32 %v716_v38, %v708_v43  ;;  %v1463_v53 = vld [vmem:[%s1647_s12 + $0x30] ss:$8 sm:$0x3]  ;;  %v1467_v57 = vld [vmem:[%s1647_s12 + $0x31] ss:$8 sm:$0x3] }
  0x83   : > { %v652_v48 = vadd.f32 %v648_v31, %v640_v41  ;;  %v776_v56 = vmul.f32 -0.35355338, %v1463_v53  ;;  %v1474_v58 = vld [vmem:[%s1647_s12 + $0x20] ss:$8 sm:$0x3] }
  0x84   : > { %v732_v55 = vadd.f32 %v728_v44, %v720_v49  ;;  %v1478_v59 = vld [vmem:[%s1647_s12 + $0x21] ss:$8 sm:$0x3]  ;;  %v812_v61 = vmul.f32 0.35355338, %v1474_v58 }
  0x85   : > { %v664_v54 = vadd.f32 %v660_v42, %v652_v48  ;;  %v820_v62 = vmul.f32 -0.0, %v1478_v59  ;;  %v1482_v63 = vld [vmem:[%s1647_s12 + $0x22] ss:$8 sm:$0x3]  ;;  %v788_v6 = vmul.f32 -3.0308461e-16, %v1467_v57 }
  0x86   : > { %v744_v60 = vadd.f32 %v740_v50, %v732_v55  ;;  %v1486_v0 = vld [vmem:[%s1647_s12 + $0x23] ss:$8 sm:$0x3]  ;;  %v832_v3 = vmul.f32 -0.25, %v1482_v63 }
  0x87   : > { %1428 = vst.msk [vmem:[%s1671_s16 + $0x13] ss:$8 sm:$0x3] %vm1673_vm0, %v664_v54  ;;  %v824_v2 = vadd.f32 %v820_v62, %v812_v61  ;;  %v844_v4 = vmul.f32 0.25, %v1486_v0 }
  0x88   : > { %v756_v1 = vadd.f32 %v752_v51, %v744_v60  ;;  %v1490_v5 = vld [vmem:[%s1647_s12 + $0x24] ss:$8 sm:$0x3]  ;;  %v1494_v7 = vld [vmem:[%s1647_s12 + $0x25] ss:$8 sm:$0x3] }
  0x89   : > { %v836_v9 = vadd.f32 %v832_v3, %v824_v2  ;;  %v856_v10 = vmul.f32 1.08244504e-16, %v1490_v5  ;;  %v1498_v11 = vld [vmem:[%s1647_s12 + $0x26] ss:$8 sm:$0x3] }
  0x8a   : > { %v768_v8 = vadd.f32 %v764_v52, %v756_v1  ;;  %v1502_v12 = vld [vmem:[%s1647_s12 + $0x27] ss:$8 sm:$0x3]  ;;  %v868_v15 = vmul.f32 -0.35355338, %v1494_v7 }
  0x8b   : > { %v848_v14 = vadd.f32 %v844_v4, %v836_v9  ;;  %v880_v16 = vmul.f32 -9.527705e-16, %v1498_v11  ;;  %v1506_v17 = vld [vmem:[%s1647_s12 + $0x30] ss:$8 sm:$0x3] }
  0x8c   : > { %v780_v13 = vadd.f32 %v776_v56, %v768_v8  ;;  %v892_v20 = vmul.f32 0.35355338, %v1502_v12  ;;  %v1517_v21 = vld [vmem:[%s1647_s12 + $0x20] ss:$8 sm:$0x3]  ;;  %v904_v26 = vmul.f32 -0.25, %v1506_v17 }
  0x8d   : > { %v860_v19 = vadd.f32 %v856_v10, %v848_v14  ;;  %v1510_v22 = vld [vmem:[%s1647_s12 + $0x31] ss:$8 sm:$0x3]  ;;  %v940_v23 = vmul.f32 0.35355338, %v1517_v21 }
  0x8e   : > { %v792_v18 = vadd.f32 %v788_v6, %v780_v13  ;;  %v1521_v24 = vld [vmem:[%s1647_s12 + $0x21] ss:$8 sm:$0x3]  ;;  %v1525_v28 = vld [vmem:[%s1647_s12 + $0x22] ss:$8 sm:$0x3] }
  0x8f   : > { %v872_v25 = vadd.f32 %v868_v15, %v860_v19  ;;  %v948_v27 = vmul.f32 -0.0, %v1521_v24  ;;  %v1529_v29 = vld [vmem:[%s1647_s12 + $0x23] ss:$8 sm:$0x3]  ;;  %v960_v32 = vmul.f32 -6.49467e-17, %v1525_v28 }
  0x90   : > { %1471 = vst.msk [vmem:[%s1671_s16 + $0x14] ss:$8 sm:$0x3] %vm1673_vm0, %v792_v18  ;;  %v972_v33 = vmul.f32 0.35355338, %v1529_v29  ;;  %v916_v37 = vmul.f32 -0.25, %v1510_v22 }
  0x91   : > { %v884_v30 = vadd.f32 %v880_v16, %v872_v25  ;;  %v952_v31 = vadd.f32 %v948_v27, %v940_v23  ;;  %v1533_v34 = vld [vmem:[%s1647_s12 + $0x24] ss:$8 sm:$0x3]  ;;  %v1537_v35 = vld [vmem:[%s1647_s12 + $0x25] ss:$8 sm:$0x3] }
  0x92   : > { %v984_v39 = vmul.f32 -0.35355338, %v1533_v34  ;;  %v1541_v40 = vld [vmem:[%s1647_s12 + $0x26] ss:$8 sm:$0x3] }
  0x93   : > { %v896_v36 = vadd.f32 %v892_v20, %v884_v30  ;;  %v964_v38 = vadd.f32 %v960_v32, %v952_v31  ;;  %v1545_v41 = vld [vmem:[%s1647_s12 + $0x27] ss:$8 sm:$0x3]  ;;  %v996_v44 = vmul.f32 -1.298934e-16, %v1537_v35 }
  0x94   : > { %v1008_v45 = vmul.f32 -0.35355338, %v1541_v40  ;;  %v1020_v47 = vmul.f32 -3.8968023e-16, %v1545_v41 }
  0x95   : > { %v908_v42 = vadd.f32 %v904_v26, %v896_v36  ;;  %v976_v43 = vadd.f32 %v972_v33, %v964_v38  ;;  %v1549_v48 = vld [vmem:[%s1647_s12 + $0x30] ss:$8 sm:$0x3]  ;;  %v1553_v52 = vld [vmem:[%s1647_s12 + $0x31] ss:$8 sm:$0x3] }
  0x96   : > { %v1032_v51 = vmul.f32 -1.7341005e-16, %v1549_v48  ;;  %v1560_v53 = vld [vmem:[%s1647_s12 + $0x20] ss:$8 sm:$0x3] }
  0x97   : > { %v920_v49 = vadd.f32 %v916_v37, %v908_v42  ;;  %v988_v50 = vadd.f32 %v984_v39, %v976_v43  ;;  %v1564_v54 = vld [vmem:[%s1647_s12 + $0x21] ss:$8 sm:$0x3]  ;;  %v1068_v56 = vmul.f32 0.35355338, %v1560_v53 }
  0x98   : > { %v1076_v57 = vmul.f32 -0.0, %v1564_v54  ;;  %v1568_v58 = vld [vmem:[%s1647_s12 + $0x22] ss:$8 sm:$0x3]  ;;  %v1044_v1 = vmul.f32 -0.35355338, %v1553_v52 }
  0x99   : > { %1514 = vst.msk [vmem:[%s1671_s16 + $0x15] ss:$8 sm:$0x3] %vm1673_vm0, %v920_v49  ;;  %v1000_v55 = vadd.f32 %v996_v44, %v988_v50  ;;  %v1572_v59 = vld [vmem:[%s1647_s12 + $0x23] ss:$8 sm:$0x3] }
  0x9a   : > { %v1080_v61 = vadd.f32 %v1076_v57, %v1068_v56  ;;  %v1088_v62 = vmul.f32 0.25, %v1568_v58  ;;  %v1100_v63 = vmul.f32 0.25, %v1572_v59  ;;  %v1576_v0 = vld [vmem:[%s1647_s12 + $0x24] ss:$8 sm:$0x3] }
  0x9b   : > { %v1012_v60 = vadd.f32 %v1008_v45, %v1000_v55  ;;  %v1580_v2 = vld [vmem:[%s1647_s12 + $0x25] ss:$8 sm:$0x3]  ;;  %v1112_v5 = vmul.f32 -1.5154231e-16, %v1576_v0 }
  0x9c   : > { %v1092_v4 = vadd.f32 %v1088_v62, %v1080_v61  ;;  %v1584_v6 = vld [vmem:[%s1647_s12 + $0x26] ss:$8 sm:$0x3]  ;;  %v1588_v7 = vld [vmem:[%s1647_s12 + $0x27] ss:$8 sm:$0x3] }
  0x9d   : > { %v1024_v3 = vadd.f32 %v1020_v47, %v1012_v60  ;;  %v1124_v10 = vmul.f32 0.35355338, %v1580_v2  ;;  %v1136_v11 = vmul.f32 -1.7341005e-16, %v1584_v6  ;;  %v1148_v15 = vmul.f32 -0.35355338, %v1588_v7 }
  0x9e   : > { %v1104_v9 = vadd.f32 %v1100_v63, %v1092_v4  ;;  %v1592_v12 = vld [vmem:[%s1647_s12 + $0x30] ss:$8 sm:$0x3]  ;;  %v1261_v16 = vld [vmem:[%s1647_s12 + $0x40] ss:$8 sm:$0x3] }
  0x9f   : > { %v1036_v8 = vadd.f32 %v1032_v51, %v1024_v3  ;;  %v1596_v17 = vld [vmem:[%s1647_s12 + $0x31] ss:$8 sm:$0x3]  ;;  %v134_v18 = vmul.f32 0.35355338, %v1261_v16  ;;  %v1160_v21 = vmul.f32 0.25, %v1592_v12 }
  0xa0   : > { %v1116_v14 = vadd.f32 %v1112_v5, %v1104_v9  ;;  %v1265_v19 = vld [vmem:[%s1647_s12 + $0x41] ss:$8 sm:$0x3]  ;;  %v1269_v23 = vld [vmem:[%s1647_s12 + $0x42] ss:$8 sm:$0x3] }
  0xa1   : > { %v1048_v13 = vadd.f32 %v1044_v1, %v1036_v8  ;;  %v146_v22 = vmul.f32 -0.0, %v1265_v19  ;;  %v1273_v24 = vld [vmem:[%s1647_s12 + $0x43] ss:$8 sm:$0x3]  ;;  %v162_v27 = vmul.f32 0.35355338, %v1269_v23 }
  0xa2   : > { %v1128_v20 = vadd.f32 %v1124_v10, %v1116_v14  ;;  %v178_v28 = vmul.f32 -0.0, %v1273_v24  ;;  %v1277_v29 = vld [vmem:[%s1647_s12 + $0x44] ss:$8 sm:$0x3]  ;;  %v1172_v32 = vmul.f32 -0.25, %v1596_v17 }
  0xa3   : > { %1557 = vst.msk [vmem:[%s1671_s16 + $0x16] ss:$8 sm:$0x3] %vm1673_vm0, %v1048_v13  ;;  %v150_v26 = vadd.f32 %v146_v22, %v134_v18  ;;  %v1281_v30 = vld [vmem:[%s1647_s12 + $0x45] ss:$8 sm:$0x3] }
  0xa4   : > { %v1140_v25 = vadd.f32 %v1136_v11, %v1128_v20  ;;  %v194_v34 = vmul.f32 0.35355338, %v1277_v29  ;;  %v1285_v35 = vld [vmem:[%s1647_s12 + $0x46] ss:$8 sm:$0x3]  ;;  %v210_v38 = vmul.f32 -0.0, %v1281_v30 }
  0xa5   : > { %v166_v33 = vadd.f32 %v162_v27, %v150_v26  ;;  %v1289_v39 = vld [vmem:[%s1647_s12 + $0x47] ss:$8 sm:$0x3]  ;;  %v1293_v40 = vld [vmem:[%s1647_s12 + $0x50] ss:$8 sm:$0x3] }
  0xa6   : > { %v1152_v31 = vadd.f32 %v1148_v15, %v1140_v25  ;;  %v226_v43 = vmul.f32 0.35355338, %v1285_v35  ;;  %v1303_v44 = vld [vmem:[%s1647_s12 + $0x40] ss:$8 sm:$0x3]  ;;  %v242_v45 = vmul.f32 -0.0, %v1289_v39 }
  0xa7   : > { %v182_v37 = vadd.f32 %v178_v28, %v166_v33  ;;  %v1297_v47 = vld [vmem:[%s1647_s12 + $0x51] ss:$8 sm:$0x3]  ;;  %v301_v48 = vmul.f32 0.35355338, %v1303_v44 }
  0xa8   : > { %v1164_v36 = vadd.f32 %v1160_v21, %v1152_v31  ;;  %v1307_v49 = vld [vmem:[%s1647_s12 + $0x41] ss:$8 sm:$0x3]  ;;  %v258_v51 = vmul.f32 0.35355338, %v1293_v40  ;;  %v274_v62 = vmul.f32 -0.0, %v1297_v47 }
  0xa9   : > { %v198_v42 = vadd.f32 %v194_v34, %v182_v37  ;;  %v309_v52 = vmul.f32 -0.0, %v1307_v49  ;;  %v1311_v53 = vld [vmem:[%s1647_s12 + $0x42] ss:$8 sm:$0x3] }
  0xaa   : > { %v1176_v41 = vadd.f32 %v1172_v32, %v1164_v36  ;;  %v1315_v54 = vld [vmem:[%s1647_s12 + $0x43] ss:$8 sm:$0x3]  ;;  %v321_v57 = vmul.f32 0.25, %v1311_v53 }
  0xab   : > { %v214_v50 = vadd.f32 %v210_v38, %v198_v42  ;;  %v313_v56 = vadd.f32 %v309_v52, %v301_v48  ;;  %v333_v58 = vmul.f32 -0.25, %v1315_v54  ;;  %v1319_v59 = vld [vmem:[%s1647_s12 + $0x44] ss:$8 sm:$0x3] }
  0xac   : > { %1600 = vst.msk [vmem:[%s1671_s16 + $0x17] ss:$8 sm:$0x3] %vm1673_vm0, %v1176_v41  ;;  %v1323_v60 = vld [vmem:[%s1647_s12 + $0x45] ss:$8 sm:$0x3] }
  0xad   : > { %v230_v55 = vadd.f32 %v226_v43, %v214_v50  ;;  %v325_v63 = vadd.f32 %v321_v57, %v313_v56  ;;  %v345_v0 = vmul.f32 2.1648902e-17, %v1319_v59  ;;  %v1327_v1 = vld [vmem:[%s1647_s12 + $0x46] ss:$8 sm:$0x3] }
  0xae   : > { %v1331_v2 = vld [vmem:[%s1647_s12 + $0x47] ss:$8 sm:$0x3]  ;;  %v357_v5 = vmul.f32 -0.35355338, %v1323_v60 }
  0xaf   : > { %v246_v61 = vadd.f32 %v242_v45, %v230_v55  ;;  %v337_v4 = vadd.f32 %v333_v58, %v325_v63  ;;  %v369_v6 = vmul.f32 -6.49467e-17, %v1327_v1  ;;  %v1335_v7 = vld [vmem:[%s1647_s12 + $0x50] ss:$8 sm:$0x3] }
  0xb0   : > { %v381_v10 = vmul.f32 0.35355338, %v1331_v2  ;;  %v1346_v11 = vld [vmem:[%s1647_s12 + $0x40] ss:$8 sm:$0x3]  ;;  %v393_v16 = vmul.f32 0.25, %v1335_v7 }
  0xb1   : > { %v262_v3 = vadd.f32 %v258_v51, %v246_v61  ;;  %v349_v9 = vadd.f32 %v345_v0, %v337_v4  ;;  %v1339_v12 = vld [vmem:[%s1647_s12 + $0x51] ss:$8 sm:$0x3]  ;;  %v429_v13 = vmul.f32 0.35355338, %v1346_v11 }
  0xb2   : > { %v1350_v14 = vld [vmem:[%s1647_s12 + $0x41] ss:$8 sm:$0x3]  ;;  %v1354_v18 = vld [vmem:[%s1647_s12 + $0x42] ss:$8 sm:$0x3] }
  0xb3   : > { %v278_v8 = vadd.f32 %v274_v62, %v262_v3  ;;  %v361_v15 = vadd.f32 %v357_v5, %v349_v9  ;;  %v437_v17 = vmul.f32 -0.0, %v1350_v14  ;;  %v1358_v19 = vld [vmem:[%s1647_s12 + $0x43] ss:$8 sm:$0x3]  ;;  %v449_v22 = vmul.f32 2.1648902e-17, %v1354_v18 }
  0xb4   : > { %v461_v23 = vmul.f32 -0.35355338, %v1358_v19  ;;  %v1362_v24 = vld [vmem:[%s1647_s12 + $0x44] ss:$8 sm:$0x3]  ;;  %v405_v27 = vmul.f32 0.25, %v1339_v12 }
  0xb5   : > { %1300 = vst.msk [vmem:[%s1671_s16 + $0x20] ss:$8 sm:$0x3] %vm1673_vm0, %v278_v8  ;;  %v373_v20 = vadd.f32 %v369_v6, %v361_v15  ;;  %v441_v21 = vadd.f32 %v437_v17, %v429_v13  ;;  %v1366_v25 = vld [vmem:[%s1647_s12 + $0x45] ss:$8 sm:$0x3] }
  0xb6   : > { %v473_v29 = vmul.f32 -0.35355338, %v1362_v24  ;;  %v1370_v30 = vld [vmem:[%s1647_s12 + $0x46] ss:$8 sm:$0x3] }
  0xb7   : > { %v385_v26 = vadd.f32 %v381_v10, %v373_v20  ;;  %v453_v28 = vadd.f32 %v449_v22, %v441_v21  ;;  %v1374_v31 = vld [vmem:[%s1647_s12 + $0x47] ss:$8 sm:$0x3]  ;;  %v485_v34 = vmul.f32 -4.3297803e-17, %v1366_v25 }
  0xb8   : > { %v497_v35 = vmul.f32 -0.35355338, %v1370_v30  ;;  %v509_v36 = vmul.f32 -1.298934e-16, %v1374_v31 }
  0xb9   : > { %v397_v32 = vadd.f32 %v393_v16, %v385_v26  ;;  %v465_v33 = vadd.f32 %v461_v23, %v453_v28  ;;  %v1378_v37 = vld [vmem:[%s1647_s12 + $0x50] ss:$8 sm:$0x3]  ;;  %v1382_v41 = vld [vmem:[%s1647_s12 + $0x51] ss:$8 sm:$0x3] }
  0xba   : > { %v521_v40 = vmul.f32 -1.5154231e-16, %v1378_v37  ;;  %v1389_v42 = vld [vmem:[%s1647_s12 + $0x40] ss:$8 sm:$0x3] }
  0xbb   : > { %v409_v38 = vadd.f32 %v405_v27, %v397_v32  ;;  %v477_v39 = vadd.f32 %v473_v29, %v465_v33  ;;  %v1393_v43 = vld [vmem:[%s1647_s12 + $0x41] ss:$8 sm:$0x3]  ;;  %v557_v45 = vmul.f32 0.35355338, %v1389_v42 }
  0xbc   : > { %v565_v47 = vmul.f32 -0.0, %v1393_v43  ;;  %v1397_v48 = vld [vmem:[%s1647_s12 + $0x42] ss:$8 sm:$0x3]  ;;  %v533_v55 = vmul.f32 0.35355338, %v1382_v41 }
  0xbd   : > { %1343 = vst.msk [vmem:[%s1671_s16 + $0x21] ss:$8 sm:$0x3] %vm1673_vm0, %v409_v38  ;;  %v489_v44 = vadd.f32 %v485_v34, %v477_v39  ;;  %v1401_v49 = vld [vmem:[%s1647_s12 + $0x43] ss:$8 sm:$0x3] }
  0xbe   : > { %v569_v51 = vadd.f32 %v565_v47, %v557_v45  ;;  %v577_v52 = vmul.f32 -0.25, %v1397_v48  ;;  %v589_v53 = vmul.f32 -0.25, %v1401_v49  ;;  %v1405_v54 = vld [vmem:[%s1647_s12 + $0x44] ss:$8 sm:$0x3] }
  0xbf   : > { %v501_v50 = vadd.f32 %v497_v35, %v489_v44  ;;  %v1409_v56 = vld [vmem:[%s1647_s12 + $0x45] ss:$8 sm:$0x3]  ;;  %v601_v59 = vmul.f32 -6.49467e-17, %v1405_v54 }
  0xc0   : > { %v581_v58 = vadd.f32 %v577_v52, %v569_v51  ;;  %v1413_v60 = vld [vmem:[%s1647_s12 + $0x46] ss:$8 sm:$0x3]  ;;  %v1417_v61 = vld [vmem:[%s1647_s12 + $0x47] ss:$8 sm:$0x3] }
  0xc1   : > { %v513_v57 = vadd.f32 %v509_v36, %v501_v50  ;;  %v613_v0 = vmul.f32 0.35355338, %v1409_v56  ;;  %v625_v1 = vmul.f32 1.9484012e-16, %v1413_v60  ;;  %v637_v5 = vmul.f32 -0.35355338, %v1417_v61 }
  0xc2   : > { %v593_v63 = vadd.f32 %v589_v53, %v581_v58  ;;  %v1421_v2 = vld [vmem:[%s1647_s12 + $0x50] ss:$8 sm:$0x3]  ;;  %v1432_v6 = vld [vmem:[%s1647_s12 + $0x40] ss:$8 sm:$0x3] }
  0xc3   : > { %v525_v62 = vadd.f32 %v521_v40, %v513_v57  ;;  %v1425_v7 = vld [vmem:[%s1647_s12 + $0x51] ss:$8 sm:$0x3]  ;;  %v685_v8 = vmul.f32 0.35355338, %v1432_v6  ;;  %v649_v11 = vmul.f32 -0.25, %v1421_v2 }
  0xc4   : > { %v605_v4 = vadd.f32 %v601_v59, %v593_v63  ;;  %v1436_v9 = vld [vmem:[%s1647_s12 + $0x41] ss:$8 sm:$0x3]  ;;  %v1440_v13 = vld [vmem:[%s1647_s12 + $0x42] ss:$8 sm:$0x3] }
  0xc5   : > { %v537_v3 = vadd.f32 %v533_v55, %v525_v62  ;;  %v693_v12 = vmul.f32 -0.0, %v1436_v9  ;;  %v1444_v14 = vld [vmem:[%s1647_s12 + $0x43] ss:$8 sm:$0x3]  ;;  %v705_v17 = vmul.f32 -0.35355338, %v1440_v13 }
  0xc6   : > { %v617_v10 = vadd.f32 %v613_v0, %v605_v4  ;;  %v717_v18 = vmul.f32 -4.3297803e-17, %v1444_v14  ;;  %v1448_v19 = vld [vmem:[%s1647_s12 + $0x44] ss:$8 sm:$0x3]  ;;  %v661_v22 = vmul.f32 0.25, %v1425_v7 }
  0xc7   : > { %1386 = vst.msk [vmem:[%s1671_s16 + $0x22] ss:$8 sm:$0x3] %vm1673_vm0, %v537_v3  ;;  %v697_v16 = vadd.f32 %v693_v12, %v685_v8  ;;  %v1452_v20 = vld [vmem:[%s1647_s12 + $0x45] ss:$8 sm:$0x3] }
  0xc8   : > { %v629_v15 = vadd.f32 %v625_v1, %v617_v10  ;;  %v729_v24 = vmul.f32 0.35355338, %v1448_v19  ;;  %v1456_v25 = vld [vmem:[%s1647_s12 + $0x46] ss:$8 sm:$0x3] }
  0xc9   : > { %v709_v23 = vadd.f32 %v705_v17, %v697_v16  ;;  %v1460_v26 = vld [vmem:[%s1647_s12 + $0x47] ss:$8 sm:$0x3]  ;;  %v741_v29 = vmul.f32 8.6595606e-17, %v1452_v20 }
  0xca   : > { %v641_v21 = vadd.f32 %v637_v5, %v629_v15  ;;  %v753_v30 = vmul.f32 0.35355338, %v1456_v25  ;;  %v765_v31 = vmul.f32 2.597868e-16, %v1460_v26 }
  0xcb   : > { %v721_v28 = vadd.f32 %v717_v18, %v709_v23  ;;  %v1464_v32 = vld [vmem:[%s1647_s12 + $0x50] ss:$8 sm:$0x3]  ;;  %v1468_v36 = vld [vmem:[%s1647_s12 + $0x51] ss:$8 sm:$0x3] }
  0xcc   : > { %v653_v27 = vadd.f32 %v649_v11, %v641_v21  ;;  %v777_v35 = vmul.f32 -0.35355338, %v1464_v32  ;;  %v1475_v37 = vld [vmem:[%s1647_s12 + $0x40] ss:$8 sm:$0x3] }
  0xcd   : > { %v733_v34 = vadd.f32 %v729_v24, %v721_v28  ;;  %v1479_v38 = vld [vmem:[%s1647_s12 + $0x41] ss:$8 sm:$0x3]  ;;  %v813_v40 = vmul.f32 0.35355338, %v1475_v37 }
  0xce   : > { %v665_v33 = vadd.f32 %v661_v22, %v653_v27  ;;  %v821_v41 = vmul.f32 -0.0, %v1479_v38  ;;  %v1483_v42 = vld [vmem:[%s1647_s12 + $0x42] ss:$8 sm:$0x3]  ;;  %v789_v50 = vmul.f32 -3.0308461e-16, %v1468_v36 }
  0xcf   : > { %v745_v39 = vadd.f32 %v741_v29, %v733_v34  ;;  %v1487_v43 = vld [vmem:[%s1647_s12 + $0x43] ss:$8 sm:$0x3]  ;;  %v833_v47 = vmul.f32 -0.25, %v1483_v42 }
  0xd0   : > { %1429 = vst.msk [vmem:[%s1671_s16 + $0x23] ss:$8 sm:$0x3] %vm1673_vm0, %v665_v33  ;;  %v825_v45 = vadd.f32 %v821_v41, %v813_v40  ;;  %v845_v48 = vmul.f32 0.25, %v1487_v43 }
  0xd1   : > { %v757_v44 = vadd.f32 %v753_v30, %v745_v39  ;;  %v1491_v49 = vld [vmem:[%s1647_s12 + $0x44] ss:$8 sm:$0x3]  ;;  %v1495_v51 = vld [vmem:[%s1647_s12 + $0x45] ss:$8 sm:$0x3] }
  0xd2   : > { %v837_v53 = vadd.f32 %v833_v47, %v825_v45  ;;  %v857_v54 = vmul.f32 1.08244504e-16, %v1491_v49  ;;  %v1499_v55 = vld [vmem:[%s1647_s12 + $0x46] ss:$8 sm:$0x3] }
  0xd3   : > { %v769_v52 = vadd.f32 %v765_v31, %v757_v44  ;;  %v1503_v56 = vld [vmem:[%s1647_s12 + $0x47] ss:$8 sm:$0x3]  ;;  %v869_v59 = vmul.f32 -0.35355338, %v1495_v51 }
  0xd4   : > { %v849_v58 = vadd.f32 %v845_v48, %v837_v53  ;;  %v881_v60 = vmul.f32 -9.527705e-16, %v1499_v55  ;;  %v1507_v61 = vld [vmem:[%s1647_s12 + $0x50] ss:$8 sm:$0x3] }
  0xd5   : > { %v781_v57 = vadd.f32 %v777_v35, %v769_v52  ;;  %v893_v0 = vmul.f32 0.35355338, %v1503_v56  ;;  %v1518_v1 = vld [vmem:[%s1647_s12 + $0x40] ss:$8 sm:$0x3]  ;;  %v905_v6 = vmul.f32 -0.25, %v1507_v61 }
  0xd6   : > { %v861_v63 = vadd.f32 %v857_v54, %v849_v58  ;;  %v1511_v2 = vld [vmem:[%s1647_s12 + $0x51] ss:$8 sm:$0x3]  ;;  %v941_v3 = vmul.f32 0.35355338, %v1518_v1 }
  0xd7   : > { %v793_v62 = vadd.f32 %v789_v50, %v781_v57  ;;  %v1522_v4 = vld [vmem:[%s1647_s12 + $0x41] ss:$8 sm:$0x3]  ;;  %v1526_v8 = vld [vmem:[%s1647_s12 + $0x42] ss:$8 sm:$0x3] }
  0xd8   : > { %v873_v5 = vadd.f32 %v869_v59, %v861_v63  ;;  %v949_v7 = vmul.f32 -0.0, %v1522_v4  ;;  %v1530_v9 = vld [vmem:[%s1647_s12 + $0x43] ss:$8 sm:$0x3]  ;;  %v961_v12 = vmul.f32 -6.49467e-17, %v1526_v8 }
  0xd9   : > { %1472 = vst.msk [vmem:[%s1671_s16 + $0x24] ss:$8 sm:$0x3] %vm1673_vm0, %v793_v62  ;;  %v973_v13 = vmul.f32 0.35355338, %v1530_v9  ;;  %v917_v17 = vmul.f32 -0.25, %v1511_v2 }
  0xda   : > { %v885_v10 = vadd.f32 %v881_v60, %v873_v5  ;;  %v953_v11 = vadd.f32 %v949_v7, %v941_v3  ;;  %v1534_v14 = vld [vmem:[%s1647_s12 + $0x44] ss:$8 sm:$0x3]  ;;  %v1538_v15 = vld [vmem:[%s1647_s12 + $0x45] ss:$8 sm:$0x3] }
  0xdb   : > { %v985_v19 = vmul.f32 -0.35355338, %v1534_v14  ;;  %v1542_v20 = vld [vmem:[%s1647_s12 + $0x46] ss:$8 sm:$0x3] }
  0xdc   : > { %v897_v16 = vadd.f32 %v893_v0, %v885_v10  ;;  %v965_v18 = vadd.f32 %v961_v12, %v953_v11  ;;  %v1546_v21 = vld [vmem:[%s1647_s12 + $0x47] ss:$8 sm:$0x3]  ;;  %v997_v24 = vmul.f32 -1.298934e-16, %v1538_v15 }
  0xdd   : > { %v1009_v25 = vmul.f32 -0.35355338, %v1542_v20  ;;  %v1021_v26 = vmul.f32 -3.8968023e-16, %v1546_v21 }
  0xde   : > { %v909_v22 = vadd.f32 %v905_v6, %v897_v16  ;;  %v977_v23 = vadd.f32 %v973_v13, %v965_v18  ;;  %v1550_v27 = vld [vmem:[%s1647_s12 + $0x50] ss:$8 sm:$0x3]  ;;  %v1554_v31 = vld [vmem:[%s1647_s12 + $0x51] ss:$8 sm:$0x3] }
  0xdf   : > { %v1033_v30 = vmul.f32 -1.7341005e-16, %v1550_v27  ;;  %v1561_v32 = vld [vmem:[%s1647_s12 + $0x40] ss:$8 sm:$0x3] }
  0xe0   : > { %v921_v28 = vadd.f32 %v917_v17, %v909_v22  ;;  %v989_v29 = vadd.f32 %v985_v19, %v977_v23  ;;  %v1565_v33 = vld [vmem:[%s1647_s12 + $0x41] ss:$8 sm:$0x3]  ;;  %v1069_v35 = vmul.f32 0.35355338, %v1561_v32 }
  0xe1   : > { %v1077_v36 = vmul.f32 -0.0, %v1565_v33  ;;  %v1569_v37 = vld [vmem:[%s1647_s12 + $0x42] ss:$8 sm:$0x3]  ;;  %v1045_v44 = vmul.f32 -0.35355338, %v1554_v31 }
  0xe2   : > { %1515 = vst.msk [vmem:[%s1671_s16 + $0x25] ss:$8 sm:$0x3] %vm1673_vm0, %v921_v28  ;;  %v1001_v34 = vadd.f32 %v997_v24, %v989_v29  ;;  %v1573_v38 = vld [vmem:[%s1647_s12 + $0x43] ss:$8 sm:$0x3] }
  0xe3   : > { %v1081_v40 = vadd.f32 %v1077_v36, %v1069_v35  ;;  %v1089_v41 = vmul.f32 0.25, %v1569_v37  ;;  %v1101_v42 = vmul.f32 0.25, %v1573_v38  ;;  %v1577_v43 = vld [vmem:[%s1647_s12 + $0x44] ss:$8 sm:$0x3] }
  0xe4   : > { %v1013_v39 = vadd.f32 %v1009_v25, %v1001_v34  ;;  %v1581_v45 = vld [vmem:[%s1647_s12 + $0x45] ss:$8 sm:$0x3]  ;;  %v1113_v49 = vmul.f32 -1.5154231e-16, %v1577_v43 }
  0xe5   : > { %v1093_v48 = vadd.f32 %v1089_v41, %v1081_v40  ;;  %v1585_v50 = vld [vmem:[%s1647_s12 + $0x46] ss:$8 sm:$0x3]  ;;  %v1589_v51 = vld [vmem:[%s1647_s12 + $0x47] ss:$8 sm:$0x3] }
  0xe6   : > { %v1025_v47 = vadd.f32 %v1021_v26, %v1013_v39  ;;  %v1125_v54 = vmul.f32 0.35355338, %v1581_v45  ;;  %v1137_v55 = vmul.f32 -1.7341005e-16, %v1585_v50  ;;  %v1149_v59 = vmul.f32 -0.35355338, %v1589_v51 }
  0xe7   : > { %v1105_v53 = vadd.f32 %v1101_v42, %v1093_v48  ;;  %v1593_v56 = vld [vmem:[%s1647_s12 + $0x50] ss:$8 sm:$0x3]  ;;  %v1262_v60 = vld [vmem:[%s1647_s12 + $0x60] ss:$8 sm:$0x3] }
  0xe8   : > { %v1037_v52 = vadd.f32 %v1033_v30, %v1025_v47  ;;  %v1597_v61 = vld [vmem:[%s1647_s12 + $0x51] ss:$8 sm:$0x3]  ;;  %v135_v62 = vmul.f32 0.35355338, %v1262_v60  ;;  %v1161_v1 = vmul.f32 0.25, %v1593_v56 }
  0xe9   : > { %v1117_v58 = vadd.f32 %v1113_v49, %v1105_v53  ;;  %v1266_v63 = vld [vmem:[%s1647_s12 + $0x61] ss:$8 sm:$0x3]  ;;  %v1270_v3 = vld [vmem:[%s1647_s12 + $0x62] ss:$8 sm:$0x3] }
  0xea   : > { %v1049_v57 = vadd.f32 %v1045_v44, %v1037_v52  ;;  %v147_v2 = vmul.f32 -0.0, %v1266_v63  ;;  %v1274_v4 = vld [vmem:[%s1647_s12 + $0x63] ss:$8 sm:$0x3]  ;;  %v163_v7 = vmul.f32 0.35355338, %v1270_v3 }
  0xeb   : > { %v1129_v0 = vadd.f32 %v1125_v54, %v1117_v58  ;;  %v179_v8 = vmul.f32 -0.0, %v1274_v4  ;;  %v1278_v9 = vld [vmem:[%s1647_s12 + $0x64] ss:$8 sm:$0x3]  ;;  %v1173_v12 = vmul.f32 -0.25, %v1597_v61 }
  0xec   : > { %1558 = vst.msk [vmem:[%s1671_s16 + $0x26] ss:$8 sm:$0x3] %vm1673_vm0, %v1049_v57  ;;  %v151_v6 = vadd.f32 %v147_v2, %v135_v62  ;;  %v1282_v10 = vld [vmem:[%s1647_s12 + $0x65] ss:$8 sm:$0x3] }
  0xed   : > { %v1141_v5 = vadd.f32 %v1137_v55, %v1129_v0  ;;  %v195_v14 = vmul.f32 0.35355338, %v1278_v9  ;;  %v1286_v15 = vld [vmem:[%s1647_s12 + $0x66] ss:$8 sm:$0x3]  ;;  %v211_v18 = vmul.f32 -0.0, %v1282_v10 }
  0xee   : > { %v167_v13 = vadd.f32 %v163_v7, %v151_v6  ;;  %v1290_v19 = vld [vmem:[%s1647_s12 + $0x67] ss:$8 sm:$0x3]  ;;  %v1294_v20 = vld [vmem:[%s1647_s12 + $0x70] ss:$8 sm:$0x3] }
  0xef   : > { %v1153_v11 = vadd.f32 %v1149_v59, %v1141_v5  ;;  %v227_v23 = vmul.f32 0.35355338, %v1286_v15  ;;  %v1304_v24 = vld [vmem:[%s1647_s12 + $0x60] ss:$8 sm:$0x3]  ;;  %v243_v25 = vmul.f32 -0.0, %v1290_v19 }
  0xf0   : > { %v183_v17 = vadd.f32 %v179_v8, %v167_v13  ;;  %v1298_v26 = vld [vmem:[%s1647_s12 + $0x71] ss:$8 sm:$0x3]  ;;  %v302_v27 = vmul.f32 0.35355338, %v1304_v24 }
  0xf1   : > { %v1165_v16 = vadd.f32 %v1161_v1, %v1153_v11  ;;  %v1308_v28 = vld [vmem:[%s1647_s12 + $0x61] ss:$8 sm:$0x3]  ;;  %v259_v30 = vmul.f32 0.35355338, %v1294_v20  ;;  %v275_v41 = vmul.f32 -0.0, %v1298_v26 }
  0xf2   : > { %v199_v22 = vadd.f32 %v195_v14, %v183_v17  ;;  %v310_v31 = vmul.f32 -0.0, %v1308_v28  ;;  %v1312_v32 = vld [vmem:[%s1647_s12 + $0x62] ss:$8 sm:$0x3] }
  0xf3   : > { %v1177_v21 = vadd.f32 %v1173_v12, %v1165_v16  ;;  %v1316_v33 = vld [vmem:[%s1647_s12 + $0x63] ss:$8 sm:$0x3]  ;;  %v322_v36 = vmul.f32 0.25, %v1312_v32 }
  0xf4   : > { %v215_v29 = vadd.f32 %v211_v18, %v199_v22  ;;  %v314_v35 = vadd.f32 %v310_v31, %v302_v27  ;;  %v334_v37 = vmul.f32 -0.25, %v1316_v33  ;;  %v1320_v38 = vld [vmem:[%s1647_s12 + $0x64] ss:$8 sm:$0x3] }
  0xf5   : > { %1601 = vst.msk [vmem:[%s1671_s16 + $0x27] ss:$8 sm:$0x3] %vm1673_vm0, %v1177_v21  ;;  %v1324_v39 = vld [vmem:[%s1647_s12 + $0x65] ss:$8 sm:$0x3] }
  0xf6   : > { %v231_v34 = vadd.f32 %v227_v23, %v215_v29  ;;  %v326_v42 = vadd.f32 %v322_v36, %v314_v35  ;;  %v346_v43 = vmul.f32 2.1648902e-17, %v1320_v38  ;;  %v1328_v44 = vld [vmem:[%s1647_s12 + $0x66] ss:$8 sm:$0x3] }
  0xf7   : > { %v1332_v45 = vld [vmem:[%s1647_s12 + $0x67] ss:$8 sm:$0x3]  ;;  %v358_v49 = vmul.f32 -0.35355338, %v1324_v39 }
  0xf8   : > { %v247_v40 = vadd.f32 %v243_v25, %v231_v34  ;;  %v338_v48 = vadd.f32 %v334_v37, %v326_v42  ;;  %v370_v50 = vmul.f32 -6.49467e-17, %v1328_v44  ;;  %v1336_v51 = vld [vmem:[%s1647_s12 + $0x70] ss:$8 sm:$0x3] }
  0xf9   : > { %v382_v54 = vmul.f32 0.35355338, %v1332_v45  ;;  %v1347_v55 = vld [vmem:[%s1647_s12 + $0x60] ss:$8 sm:$0x3]  ;;  %v394_v60 = vmul.f32 0.25, %v1336_v51 }
  0xfa   : > { %v263_v47 = vadd.f32 %v259_v30, %v247_v40  ;;  %v350_v53 = vadd.f32 %v346_v43, %v338_v48  ;;  %v1340_v56 = vld [vmem:[%s1647_s12 + $0x71] ss:$8 sm:$0x3]  ;;  %v430_v57 = vmul.f32 0.35355338, %v1347_v55 }
  0xfb   : > { %v1351_v58 = vld [vmem:[%s1647_s12 + $0x61] ss:$8 sm:$0x3]  ;;  %v1355_v62 = vld [vmem:[%s1647_s12 + $0x62] ss:$8 sm:$0x3] }
  0xfc   : > { %v279_v52 = vadd.f32 %v275_v41, %v263_v47  ;;  %v362_v59 = vadd.f32 %v358_v49, %v350_v53  ;;  %v438_v61 = vmul.f32 -0.0, %v1351_v58  ;;  %v1359_v63 = vld [vmem:[%s1647_s12 + $0x63] ss:$8 sm:$0x3]  ;;  %v450_v2 = vmul.f32 2.1648902e-17, %v1355_v62 }
  0xfd   : > { %v462_v3 = vmul.f32 -0.35355338, %v1359_v63  ;;  %v1363_v4 = vld [vmem:[%s1647_s12 + $0x64] ss:$8 sm:$0x3]  ;;  %v406_v7 = vmul.f32 0.25, %v1340_v56 }
  0xfe   : > { %1301 = vst.msk [vmem:[%s1671_s16 + $0x30] ss:$8 sm:$0x3] %vm1673_vm0, %v279_v52  ;;  %v374_v0 = vadd.f32 %v370_v50, %v362_v59  ;;  %v442_v1 = vadd.f32 %v438_v61, %v430_v57  ;;  %v1367_v5 = vld [vmem:[%s1647_s12 + $0x65] ss:$8 sm:$0x3] }
  0xff   : > { %v474_v9 = vmul.f32 -0.35355338, %v1363_v4  ;;  %v1371_v10 = vld [vmem:[%s1647_s12 + $0x66] ss:$8 sm:$0x3] }
 0x100   : > { %v386_v6 = vadd.f32 %v382_v54, %v374_v0  ;;  %v454_v8 = vadd.f32 %v450_v2, %v442_v1  ;;  %v1375_v11 = vld [vmem:[%s1647_s12 + $0x67] ss:$8 sm:$0x3]  ;;  %v486_v14 = vmul.f32 -4.3297803e-17, %v1367_v5 }
 0x101   : > { %v498_v15 = vmul.f32 -0.35355338, %v1371_v10  ;;  %v510_v16 = vmul.f32 -1.298934e-16, %v1375_v11 }
 0x102   : > { %v398_v12 = vadd.f32 %v394_v60, %v386_v6  ;;  %v466_v13 = vadd.f32 %v462_v3, %v454_v8  ;;  %v1379_v17 = vld [vmem:[%s1647_s12 + $0x70] ss:$8 sm:$0x3]  ;;  %v1383_v21 = vld [vmem:[%s1647_s12 + $0x71] ss:$8 sm:$0x3] }
 0x103   : > { %v522_v20 = vmul.f32 -1.5154231e-16, %v1379_v17  ;;  %v1390_v22 = vld [vmem:[%s1647_s12 + $0x60] ss:$8 sm:$0x3] }
 0x104   : > { %v410_v18 = vadd.f32 %v406_v7, %v398_v12  ;;  %v478_v19 = vadd.f32 %v474_v9, %v466_v13  ;;  %v1394_v23 = vld [vmem:[%s1647_s12 + $0x61] ss:$8 sm:$0x3]  ;;  %v558_v25 = vmul.f32 0.35355338, %v1390_v22 }
 0x105   : > { %v566_v26 = vmul.f32 -0.0, %v1394_v23  ;;  %v1398_v27 = vld [vmem:[%s1647_s12 + $0x62] ss:$8 sm:$0x3]  ;;  %v534_v34 = vmul.f32 0.35355338, %v1383_v21 }
 0x106   : > { %1344 = vst.msk [vmem:[%s1671_s16 + $0x31] ss:$8 sm:$0x3] %vm1673_vm0, %v410_v18  ;;  %v490_v24 = vadd.f32 %v486_v14, %v478_v19  ;;  %v1402_v28 = vld [vmem:[%s1647_s12 + $0x63] ss:$8 sm:$0x3] }
 0x107   : > { %v570_v30 = vadd.f32 %v566_v26, %v558_v25  ;;  %v578_v31 = vmul.f32 -0.25, %v1398_v27  ;;  %v590_v32 = vmul.f32 -0.25, %v1402_v28  ;;  %v1406_v33 = vld [vmem:[%s1647_s12 + $0x64] ss:$8 sm:$0x3] }
 0x108   : > { %v502_v29 = vadd.f32 %v498_v15, %v490_v24  ;;  %v1410_v35 = vld [vmem:[%s1647_s12 + $0x65] ss:$8 sm:$0x3]  ;;  %v602_v38 = vmul.f32 -6.49467e-17, %v1406_v33 }
 0x109   : > { %v582_v37 = vadd.f32 %v578_v31, %v570_v30  ;;  %v1414_v39 = vld [vmem:[%s1647_s12 + $0x66] ss:$8 sm:$0x3]  ;;  %v1418_v40 = vld [vmem:[%s1647_s12 + $0x67] ss:$8 sm:$0x3] }
 0x10a   : > { %v514_v36 = vadd.f32 %v510_v16, %v502_v29  ;;  %v614_v43 = vmul.f32 0.35355338, %v1410_v35  ;;  %v626_v44 = vmul.f32 1.9484012e-16, %v1414_v39  ;;  %v638_v49 = vmul.f32 -0.35355338, %v1418_v40 }
 0x10b   : > { %v594_v42 = vadd.f32 %v590_v32, %v582_v37  ;;  %v1422_v45 = vld [vmem:[%s1647_s12 + $0x70] ss:$8 sm:$0x3]  ;;  %v1433_v50 = vld [vmem:[%s1647_s12 + $0x60] ss:$8 sm:$0x3] }
 0x10c   : > { %v526_v41 = vadd.f32 %v522_v20, %v514_v36  ;;  %v1426_v51 = vld [vmem:[%s1647_s12 + $0x71] ss:$8 sm:$0x3]  ;;  %v686_v52 = vmul.f32 0.35355338, %v1433_v50  ;;  %v650_v55 = vmul.f32 -0.25, %v1422_v45 }
 0x10d   : > { %v606_v48 = vadd.f32 %v602_v38, %v594_v42  ;;  %v1437_v53 = vld [vmem:[%s1647_s12 + $0x61] ss:$8 sm:$0x3]  ;;  %v1441_v57 = vld [vmem:[%s1647_s12 + $0x62] ss:$8 sm:$0x3] }
 0x10e   : > { %v538_v47 = vadd.f32 %v534_v34, %v526_v41  ;;  %v694_v56 = vmul.f32 -0.0, %v1437_v53  ;;  %v1445_v58 = vld [vmem:[%s1647_s12 + $0x63] ss:$8 sm:$0x3]  ;;  %v706_v61 = vmul.f32 -0.35355338, %v1441_v57 }
 0x10f   : > { %v618_v54 = vadd.f32 %v614_v43, %v606_v48  ;;  %v718_v62 = vmul.f32 -4.3297803e-17, %v1445_v58  ;;  %v1449_v63 = vld [vmem:[%s1647_s12 + $0x64] ss:$8 sm:$0x3]  ;;  %v662_v2 = vmul.f32 0.25, %v1426_v51 }
 0x110   : > { %1387 = vst.msk [vmem:[%s1671_s16 + $0x32] ss:$8 sm:$0x3] %vm1673_vm0, %v538_v47  ;;  %v698_v60 = vadd.f32 %v694_v56, %v686_v52  ;;  %v1453_v0 = vld [vmem:[%s1647_s12 + $0x65] ss:$8 sm:$0x3] }
 0x111   : > { %v630_v59 = vadd.f32 %v626_v44, %v618_v54  ;;  %v730_v4 = vmul.f32 0.35355338, %v1449_v63  ;;  %v1457_v5 = vld [vmem:[%s1647_s12 + $0x66] ss:$8 sm:$0x3] }
 0x112   : > { %v710_v3 = vadd.f32 %v706_v61, %v698_v60  ;;  %v1461_v6 = vld [vmem:[%s1647_s12 + $0x67] ss:$8 sm:$0x3]  ;;  %v742_v9 = vmul.f32 8.6595606e-17, %v1453_v0 }
 0x113   : > { %v642_v1 = vadd.f32 %v638_v49, %v630_v59  ;;  %v754_v10 = vmul.f32 0.35355338, %v1457_v5  ;;  %v766_v11 = vmul.f32 2.597868e-16, %v1461_v6 }
 0x114   : > { %v722_v8 = vadd.f32 %v718_v62, %v710_v3  ;;  %v1465_v12 = vld [vmem:[%s1647_s12 + $0x70] ss:$8 sm:$0x3]  ;;  %v1469_v16 = vld [vmem:[%s1647_s12 + $0x71] ss:$8 sm:$0x3] }
 0x115   : > { %v654_v7 = vadd.f32 %v650_v55, %v642_v1  ;;  %v778_v15 = vmul.f32 -0.35355338, %v1465_v12  ;;  %v1476_v17 = vld [vmem:[%s1647_s12 + $0x60] ss:$8 sm:$0x3] }
 0x116   : > { %v734_v14 = vadd.f32 %v730_v4, %v722_v8  ;;  %v1480_v18 = vld [vmem:[%s1647_s12 + $0x61] ss:$8 sm:$0x3]  ;;  %v814_v20 = vmul.f32 0.35355338, %v1476_v17 }
 0x117   : > { %v666_v13 = vadd.f32 %v662_v2, %v654_v7  ;;  %v822_v21 = vmul.f32 -0.0, %v1480_v18  ;;  %v1484_v22 = vld [vmem:[%s1647_s12 + $0x62] ss:$8 sm:$0x3]  ;;  %v790_v29 = vmul.f32 -3.0308461e-16, %v1469_v16 }
 0x118   : > { %v746_v19 = vadd.f32 %v742_v9, %v734_v14  ;;  %v1488_v23 = vld [vmem:[%s1647_s12 + $0x63] ss:$8 sm:$0x3]  ;;  %v834_v26 = vmul.f32 -0.25, %v1484_v22 }
 0x119   : > { %1430 = vst.msk [vmem:[%s1671_s16 + $0x33] ss:$8 sm:$0x3] %vm1673_vm0, %v666_v13  ;;  %v826_v25 = vadd.f32 %v822_v21, %v814_v20  ;;  %v846_v27 = vmul.f32 0.25, %v1488_v23 }
 0x11a   : > { %v758_v24 = vadd.f32 %v754_v10, %v746_v19  ;;  %v1492_v28 = vld [vmem:[%s1647_s12 + $0x64] ss:$8 sm:$0x3]  ;;  %v1496_v30 = vld [vmem:[%s1647_s12 + $0x65] ss:$8 sm:$0x3] }
 0x11b   : > { %v838_v32 = vadd.f32 %v834_v26, %v826_v25  ;;  %v858_v33 = vmul.f32 1.08244504e-16, %v1492_v28  ;;  %v1500_v34 = vld [vmem:[%s1647_s12 + $0x66] ss:$8 sm:$0x3] }
 0x11c   : > { %v770_v31 = vadd.f32 %v766_v11, %v758_v24  ;;  %v1504_v35 = vld [vmem:[%s1647_s12 + $0x67] ss:$8 sm:$0x3]  ;;  %v870_v38 = vmul.f32 -0.35355338, %v1496_v30 }
 0x11d   : > { %v850_v37 = vadd.f32 %v846_v27, %v838_v32  ;;  %v882_v39 = vmul.f32 -9.527705e-16, %v1500_v34  ;;  %v1508_v40 = vld [vmem:[%s1647_s12 + $0x70] ss:$8 sm:$0x3] }
 0x11e   : > { %v782_v36 = vadd.f32 %v778_v15, %v770_v31  ;;  %v894_v43 = vmul.f32 0.35355338, %v1504_v35  ;;  %v1519_v44 = vld [vmem:[%s1647_s12 + $0x60] ss:$8 sm:$0x3]  ;;  %v906_v50 = vmul.f32 -0.25, %v1508_v40 }
 0x11f   : > { %v862_v42 = vadd.f32 %v858_v33, %v850_v37  ;;  %v1512_v45 = vld [vmem:[%s1647_s12 + $0x71] ss:$8 sm:$0x3]  ;;  %v942_v47 = vmul.f32 0.35355338, %v1519_v44 }
 0x120   : > { %v794_v41 = vadd.f32 %v790_v29, %v782_v36  ;;  %v1523_v48 = vld [vmem:[%s1647_s12 + $0x61] ss:$8 sm:$0x3]  ;;  %v1527_v52 = vld [vmem:[%s1647_s12 + $0x62] ss:$8 sm:$0x3] }
 0x121   : > { %v874_v49 = vadd.f32 %v870_v38, %v862_v42  ;;  %v950_v51 = vmul.f32 -0.0, %v1523_v48  ;;  %v1531_v53 = vld [vmem:[%s1647_s12 + $0x63] ss:$8 sm:$0x3]  ;;  %v962_v56 = vmul.f32 -6.49467e-17, %v1527_v52 }
 0x122   : > { %1473 = vst.msk [vmem:[%s1671_s16 + $0x34] ss:$8 sm:$0x3] %vm1673_vm0, %v794_v41  ;;  %v974_v57 = vmul.f32 0.35355338, %v1531_v53  ;;  %v918_v61 = vmul.f32 -0.25, %v1512_v45 }
 0x123   : > { %v886_v54 = vadd.f32 %v882_v39, %v874_v49  ;;  %v954_v55 = vadd.f32 %v950_v51, %v942_v47  ;;  %v1535_v58 = vld [vmem:[%s1647_s12 + $0x64] ss:$8 sm:$0x3]  ;;  %v1539_v59 = vld [vmem:[%s1647_s12 + $0x65] ss:$8 sm:$0x3] }
 0x124   : > { %v986_v63 = vmul.f32 -0.35355338, %v1535_v58  ;;  %v1543_v0 = vld [vmem:[%s1647_s12 + $0x66] ss:$8 sm:$0x3] }
 0x125   : > { %v898_v60 = vadd.f32 %v894_v43, %v886_v54  ;;  %v966_v62 = vadd.f32 %v962_v56, %v954_v55  ;;  %v1547_v1 = vld [vmem:[%s1647_s12 + $0x67] ss:$8 sm:$0x3]  ;;  %v998_v4 = vmul.f32 -1.298934e-16, %v1539_v59 }
 0x126   : > { %v1010_v5 = vmul.f32 -0.35355338, %v1543_v0  ;;  %v1551_v6 = vld [vmem:[%s1647_s12 + $0x70] ss:$8 sm:$0x3] }
 0x127   : > { %v910_v2 = vadd.f32 %v906_v50, %v898_v60  ;;  %v978_v3 = vadd.f32 %v974_v57, %v966_v62  ;;  %v1022_v9 = vmul.f32 -3.8968023e-16, %v1547_v1  ;;  %v1034_v10 = vmul.f32 -1.7341005e-16, %v1551_v6 }
 0x128   : > { %v1555_v11 = vld [vmem:[%s1647_s12 + $0x71] ss:$8 sm:$0x3]  ;;  %v1562_v12 = vld [vmem:[%s1647_s12 + $0x60] ss:$8 sm:$0x3] }
 0x129   : > { %v922_v7 = vadd.f32 %v918_v61, %v910_v2  ;;  %v990_v8 = vadd.f32 %v986_v63, %v978_v3  ;;  %v1566_v13 = vld [vmem:[%s1647_s12 + $0x61] ss:$8 sm:$0x3]  ;;  %v1070_v15 = vmul.f32 0.35355338, %v1562_v12 }
 0x12a   : > { %v1078_v16 = vmul.f32 -0.0, %v1566_v13  ;;  %v1570_v17 = vld [vmem:[%s1647_s12 + $0x62] ss:$8 sm:$0x3]  ;;  %v1046_v26 = vmul.f32 -0.35355338, %v1555_v11 }
 0x12b   : > { %1516 = vst.msk [vmem:[%s1671_s16 + $0x35] ss:$8 sm:$0x3] %vm1673_vm0, %v922_v7  ;;  %v1002_v14 = vadd.f32 %v998_v4, %v990_v8  ;;  %v1574_v18 = vld [vmem:[%s1647_s12 + $0x63] ss:$8 sm:$0x3] }
 0x12c   : > { %v1082_v20 = vadd.f32 %v1078_v16, %v1070_v15  ;;  %v1090_v21 = vmul.f32 0.25, %v1570_v17  ;;  %v1102_v22 = vmul.f32 0.25, %v1574_v18  ;;  %v1578_v23 = vld [vmem:[%s1647_s12 + $0x64] ss:$8 sm:$0x3] }
 0x12d   : > { %v1014_v19 = vadd.f32 %v1010_v5, %v1002_v14  ;;  %v1582_v24 = vld [vmem:[%s1647_s12 + $0x65] ss:$8 sm:$0x3]  ;;  %v1114_v28 = vmul.f32 -1.5154231e-16, %v1578_v23 }
 0x12e   : > { %v1094_v27 = vadd.f32 %v1090_v21, %v1082_v20  ;;  %v1586_v29 = vld [vmem:[%s1647_s12 + $0x66] ss:$8 sm:$0x3]  ;;  %v1126_v32 = vmul.f32 0.35355338, %v1582_v24 }
 0x12f   : > { %v1026_v25 = vadd.f32 %v1022_v9, %v1014_v19  ;;  %v1590_v33 = vld [vmem:[%s1647_s12 + $0x67] ss:$8 sm:$0x3]  ;;  %v1138_v36 = vmul.f32 -1.7341005e-16, %v1586_v29 }
 0x130   : > { %v1106_v31 = vadd.f32 %v1102_v22, %v1094_v27  ;;  %v1594_v37 = vld [vmem:[%s1647_s12 + $0x70] ss:$8 sm:$0x3]  ;;  %v1150_v39 = vmul.f32 -0.35355338, %v1590_v33 }
 0x131   : > { %v1038_v30 = vadd.f32 %v1034_v10, %v1026_v25  ;;  %v1598_v40 = vld [vmem:[%s1647_s12 + $0x71] ss:$8 sm:$0x3]  ;;  %v1162_v42 = vmul.f32 0.25, %v1594_v37 }
 0x132   : > { %v1118_v35 = vadd.f32 %v1114_v28, %v1106_v31  ;;  %v1174_v44 = vmul.f32 -0.25, %v1598_v40 }
 0x133   : > { %v1050_v34 = vadd.f32 %v1046_v26, %v1038_v30 }
 0x134   : > { %v1130_v38 = vadd.f32 %v1126_v32, %v1118_v35 }
 0x135   : > { %1559 = vst.msk [vmem:[%s1671_s16 + $0x36] ss:$8 sm:$0x3] %vm1673_vm0, %v1050_v34 }
 0x136   : > { %v1142_v41 = vadd.f32 %v1138_v36, %v1130_v38 }
 0x138   : > { %v1154_v43 = vadd.f32 %v1150_v39, %v1142_v41 }
 0x13a   : > { %v1166_v45 = vadd.f32 %v1162_v42, %v1154_v43 }
 0x13c   : > { %v1178_v47 = vadd.f32 %v1174_v44, %v1166_v45 }
 0x13e   : > { %1602 = vst.msk [vmem:[%s1671_s16 + $0x37] ss:$8 sm:$0x3] %vm1673_vm0, %v1178_v47 }
 0x13f PF: > { %s11_s6 = sadd.s32 1, %s1621_s6  }
 0x140   : > { %p8_p4 = scmp.ge.s32.totalorder %s11_s6, 4  }
 0x142   :  { %10 = sbr.rel (!%p8_p4) target bundleno = 1 (0x1), region = 124 }

</bundles_post_ra>
